<compile_context>
chip_gen: v5e
topology: v5e:2x2
jax: 0.10.0
libtpu: 0.0.40
codegen_flags: <defaults>
</compile_context>

<pallas_src>
import functools

import jax
import jax.numpy as jnp
from jax.experimental import pallas as pl
from jax.experimental.pallas import tpu as pltpu


# ----------------------- generation-aware VMEM budget -----------------------

def _vmem_limit_bytes():
    try:
        cap = int(pltpu.get_tpu_info().vmem_capacity_bytes)
    except Exception:
        cap = 64 * 1024 * 1024
    # ~half of physical per-TC VMEM: 64 MiB on v5e/v6e (128 MiB), 32 MiB on v7x.
    return int(min(96 * 1024 * 1024, max(32 * 1024 * 1024, cap // 2)))


_VMEM_LIMIT = _vmem_limit_bytes()
_BIG_VMEM = _VMEM_LIMIT >= 64 * 1024 * 1024          # v5e/v6e vs v7x
_FC0_CAP = 8192 if _BIG_VMEM else 4096               # row/lane tile caps
_WPATH_CAP = 16384 if _BIG_VMEM else 8192
_PROJ_CAP = 2048 if _BIG_VMEM else 1024


def _params(dims):
    return pltpu.CompilerParams(dimension_semantics=dims,
                                vmem_limit_bytes=_VMEM_LIMIT)


# ----------------------------- in-kernel math -------------------------------

_SQRT_2_OVER_PI = 0.7978845608028654


def _gelu(x):
    # tanh-form GELU: tanh lowers to the EUP slot, freeing the VALU.
    return 0.5 * x * (1.0 + jnp.tanh(_SQRT_2_OVER_PI * (x + 0.044715 * x * x * x)))


# ------------------------------- kernels ------------------------------------

def _fc0_kernel(x_ref, gb_ref, wt_ref, b_ref, o_ref):
    # Channels-first lifting:
    #   o[w, s] = sum_c wt[w, c] * x[s, c] + gb[w, s] + b[w]
    # x_ref: (1, St, Cin)   gb_ref: (W, St)   wt_ref: (W, Cin)   b_ref: (W, 1)
    yt = jax.lax.dot_general(
        wt_ref[...], x_ref[0],
        dimension_numbers=(((1,), (1,)), ((), ())),      # NT matmul -> (W, St)
        preferred_element_type=jnp.float32)
    o_ref[...] = (yt + gb_ref[...] + b_ref[...])[None].astype(o_ref.dtype)


def _wpath_cf_kernel(x_ref, x1_ref, w_ref, b_ref, o_ref, *, act):
    # Channels-first: o[o,s] = act( sum_i w[o,i]*x[i,s] + b[o] + x1[o,s] )
    # x_ref: (1, Ci, St)  x1_ref: (1, Co, St)  w_ref: (Co, Ci)  b_ref: (Co, 1)
    y = jnp.dot(w_ref[...], x_ref[0], preferred_element_type=jnp.float32)
    y = y + b_ref[...] + x1_ref[0]
    if act:
        y = _gelu(y)
    o_ref[...] = y[None].astype(o_ref.dtype)


def _proj_kernel(x_ref, w1_ref, b1_ref, w2_ref, b2_ref, o_ref):
    # Fused fc1 + GELU + fc2, channels-first, lane-dense (1, St) output.
    # x_ref: (1, W, St)  w1: (H, W)  b1: (H, 1)  w2: (Co, H)  b2: (Co, 1)
    h = jnp.dot(w1_ref[...], x_ref[0], preferred_element_type=jnp.float32)
    h = _gelu(h + b1_ref[...])
    y = jnp.dot(w2_ref[...], h, preferred_element_type=jnp.float32) + b2_ref[...]
    o_ref[...] = y[None].astype(o_ref.dtype)


def _cmul_kernel(xr_ref, xi_ref, wr_ref, wi_ref, or_ref, oi_ref):
    # Complex channel mix, elementwise over the fused (corner, mode) lane axis:
    #   out[b,o,m] = sum_i x[b,i,m] * w[i,o,m]   (complex, split into re/im)
    # xr/xi: (B, Ci, Mt)   wr/wi: (Ci, Co, Mt)   out: (B, Co, Mt)
    xr = xr_ref[...]
    xi = xi_ref[...]
    wr = wr_ref[...]
    wi = wi_ref[...]
    B, Ci, Mt = xr.shape
    Co = wr.shape[1]
    acc_r = jnp.zeros((B, Co, Mt), jnp.float32)
    acc_i = jnp.zeros((B, Co, Mt), jnp.float32)
    for i in range(Ci):                      # static unroll, Ci == width (small)
        xr_i = xr[:, i:i + 1, :]             # (B, 1, Mt)
        xi_i = xi[:, i:i + 1, :]
        wr_i = wr[i:i + 1, :, :]             # (1, Co, Mt)
        wi_i = wi[i:i + 1, :, :]
        acc_r = acc_r + xr_i * wr_i - xi_i * wi_i
        acc_i = acc_i + xr_i * wi_i + xi_i * wr_i
    or_ref[...] = acc_r
    oi_ref[...] = acc_i


# ------------------------------ tiling helpers -------------------------------

def _lane_tile(n, cap):
    """Pad n to a multiple of 128; return (padded, largest tile<=cap dividing it)."""
    npad = -(-n // 128) * 128
    cap = max(128, (cap // 128) * 128)
    best, t = 128, 128
    while t <= min(npad, cap):
        if npad % t == 0:
            best = t
        t += 128
    return npad, best


def _mode_tile(gm, b, ci, co):
    """Tile for the fused (corner, mode) lane axis: vreg-pressure cap + >=2 steps."""
    gmp = -(-gm // 128) * 128
    # acc_r + acc_i (B, Co, Mt) f32 must stay well under the 256 KiB vreg file.
    acc_cap = max(128, ((128 * 1024) // (2 * b * co * 4) // 128) * 128)
    cap = min(acc_cap, 512)
    if gmp >= 256:                 # >=2 grid steps so v7x's 2nd TC gets work
        cap = min(cap, gmp // 2)
    best, t = 128, 128
    while t <= min(gmp, cap):
        if gmp % t == 0:
            best = t
        t += 128
    return gmp, best


# ------------------------------ pallas wrappers -------------------------------

def fc0_pallas(x3, gb_t, wt, b):
    """Lifting layer, channels-first output.

    x3: (B, S, Cin) f32   gb_t: (W, S) grid-bias table (shared across batch)
    wt: (W, Cin)          b: (W,)
    returns (B, W, S) f32.
    """
    B, S, Cin = x3.shape
    W = wt.shape[0]
    Sp, St = _lane_tile(S, _FC0_CAP)
    if Sp != S:
        x3 = jnp.pad(x3, ((0, 0), (0, Sp - S), (0, 0)))
        gb_t = jnp.pad(gb_t, ((0, 0), (0, Sp - S)))
    out = pl.pallas_call(
        _fc0_kernel,
        out_shape=jax.ShapeDtypeStruct((B, W, Sp), jnp.float32),
        grid=(B, Sp // St),
        in_specs=[
            pl.BlockSpec((1, St, Cin), lambda bb, s: (bb, s, 0)),
            pl.BlockSpec((W, St), lambda bb, s: (0, s)),      # reused across batch
            pl.BlockSpec((W, Cin), lambda bb, s: (0, 0)),
            pl.BlockSpec((W, 1), lambda bb, s: (0, 0)),
        ],
        out_specs=pl.BlockSpec((1, W, St), lambda bb, s: (bb, 0, s)),
        compiler_params=_params(("parallel", "parallel")),
    )(x3, gb_t, wt, b.reshape(W, 1))
    return out[:, :, :S] if Sp != S else out


def wpath_cf(x, x1, w, b, *, act):
    """Fused: act(spectral + 1x1-conv(x)), channels-first (B, C, X, Y, Tp)."""
    B, C, X, Y, Tp = x.shape
    Co = w.shape[0]
    S = X * Y * Tp
    xf = x.reshape(B, C, S)
    x1f = x1.reshape(B, Co, S)
    Sp, St = _lane_tile(S, _WPATH_CAP)
    if Sp != S:
        xf = jnp.pad(xf, ((0, 0), (0, 0), (0, Sp - S)))
        x1f = jnp.pad(x1f, ((0, 0), (0, 0), (0, Sp - S)))
    kern = functools.partial(_wpath_cf_kernel, act=act)
    out = pl.pallas_call(
        kern,
        out_shape=jax.ShapeDtypeStruct((B, Co, Sp), jnp.float32),
        grid=(B, Sp // St),
        in_specs=[
            pl.BlockSpec((1, C, St), lambda bb, s: (bb, 0, s)),
            pl.BlockSpec((1, Co, St), lambda bb, s: (bb, 0, s)),
            pl.BlockSpec((Co, C), lambda bb, s: (0, 0)),
            pl.BlockSpec((Co, 1), lambda bb, s: (0, 0)),
        ],
        out_specs=pl.BlockSpec((1, Co, St), lambda bb, s: (bb, 0, s)),
        input_output_aliases={1: 0},   # donate the spectral-path buffer
        compiler_params=_params(("parallel", "parallel")),
    )(xf, x1f, w, b.reshape(Co, 1))
    if Sp != S:
        out = out[:, :, :S]
    return out.reshape(B, Co, X, Y, Tp)


def projection_head(x, w1, b1, w2, b2):
    """Fused fc1 + GELU + fc2 on channels-first (B, W, X, Y, Tp) -> (B, 1, X, Y, Tp)."""
    B, C, X, Y, Tp = x.shape
    H = w1.shape[0]
    Co = w2.shape[0]
    S = X * Y * Tp
    xf = x.reshape(B, C, S)
    Sp, St = _lane_tile(S, _PROJ_CAP)
    if Sp != S:
        xf = jnp.pad(xf, ((0, 0), (0, 0), (0, Sp - S)))
    out = pl.pallas_call(
        _proj_kernel,
        out_shape=jax.ShapeDtypeStruct((B, Co, Sp), jnp.float32),
        grid=(B, Sp // St),
        in_specs=[
            pl.BlockSpec((1, C, St), lambda bb, s: (bb, 0, s)),
            pl.BlockSpec((H, C), lambda bb, s: (0, 0)),
            pl.BlockSpec((H, 1), lambda bb, s: (0, 0)),
            pl.BlockSpec((Co, H), lambda bb, s: (0, 0)),
            pl.BlockSpec((Co, 1), lambda bb, s: (0, 0)),
        ],
        out_specs=pl.BlockSpec((1, Co, St), lambda bb, s: (bb, 0, s)),
        compiler_params=_params(("parallel", "parallel")),
    )(xf, w1, b1.reshape(H, 1), w2, b2.reshape(Co, 1))
    if Sp != S:
        out = out[:, :, :S]
    return out.reshape(B, Co, X, Y, Tp)


def cmul_pallas(xr, xi, wr, wi):
    """Complex per-(corner,mode) channel mixing; lane axis padded to 128-multiple."""
    B, Ci, GM = xr.shape
    Co = wr.shape[1]
    GMp, Mt = _mode_tile(GM, B, Ci, Co)
    if GMp != GM:
        padm = ((0, 0), (0, 0), (0, GMp - GM))
        xr = jnp.pad(xr, padm)
        xi = jnp.pad(xi, padm)
        wr = jnp.pad(wr, padm)
        wi = jnp.pad(wi, padm)
    or_, oi_ = pl.pallas_call(
        _cmul_kernel,
        out_shape=(jax.ShapeDtypeStruct((B, Co, GMp), jnp.float32),
                   jax.ShapeDtypeStruct((B, Co, GMp), jnp.float32)),
        grid=(GMp // Mt,),
        in_specs=[
            pl.BlockSpec((B, Ci, Mt), lambda m: (0, 0, m)),
            pl.BlockSpec((B, Ci, Mt), lambda m: (0, 0, m)),
            pl.BlockSpec((Ci, Co, Mt), lambda m: (0, 0, m)),
            pl.BlockSpec((Ci, Co, Mt), lambda m: (0, 0, m)),
        ],
        out_specs=(pl.BlockSpec((B, Co, Mt), lambda m: (0, 0, m)),
                   pl.BlockSpec((B, Co, Mt), lambda m: (0, 0, m))),
        compiler_params=_params(("parallel",)),
    )(xr, xi, wr, wi)
    if GMp != GM:
        or_ = or_[..., :GM]
        oi_ = oi_[..., :GM]
    return or_, oi_


# --------------------------- model components --------------------------------

def spectral_conv3d(x, swr, swi, m1, m2, m3):
    """SpectralConv3d on channels-first x: (B, C, X, Y, Tp) -> (B, Co, X, Y, Tp).

    swr/swi are pre-fused (C, Co, 4*M) real/imag weights (corners 1..4 contiguous).
    """
    B, C, X, Y, Tp = x.shape
    Tf = Tp // 2 + 1
    Co = swr.shape[1]
    M = m1 * m2 * m3
    x_ft = jnp.fft.rfftn(x, axes=(2, 3, 4))                    # (B, C, X, Y, Tf) c64

    corners = [
        (slice(0, m1), slice(0, m2)),          # weights1
        (slice(X - m1, X), slice(0, m2)),      # weights2
        (slice(0, m1), slice(Y - m2, Y)),      # weights3
        (slice(X - m1, X), slice(Y - m2, Y)),  # weights4
    ]
    # Gather the 4 corners into one fused (corner, mode) lane axis.
    xc = jnp.concatenate(
        [x_ft[:, :, sx, sy, :m3].reshape(B, C, M) for (sx, sy) in corners], axis=-1)

    or_, oi_ = cmul_pallas(jnp.real(xc), jnp.imag(xc), swr, swi)

    def corner(k):
        r = or_[..., k * M:(k + 1) * M]
        i = oi_[..., k * M:(k + 1) * M]
        return (r + 1j * i).reshape(B, Co, m1, m2, m3)

    c1, c2, c3, c4 = corner(0), corner(1), corner(2), corner(3)
    cdt = c1.dtype

    if X >= 2 * m1 and Y >= 2 * m2:
        # Assemble out_ft with concat/pad (no scatter into a zeros buffer).
        ymid = ([jnp.zeros((B, Co, m1, Y - 2 * m2, m3), cdt)] if Y > 2 * m2 else [])
        top = jnp.concatenate([c1] + ymid + [c3], axis=3)      # (B, Co, m1, Y, m3)
        bot = jnp.concatenate([c2] + ymid + [c4], axis=3)
        xmid = ([jnp.zeros((B, Co, X - 2 * m1, Y, m3), cdt)] if X > 2 * m1 else [])
        slab = jnp.concatenate([top] + xmid + [bot], axis=2)   # (B, Co, X, Y, m3)
        out_ft = jnp.pad(slab, ((0, 0), (0, 0), (0, 0), (0, 0), (0, Tf - m3)))
    else:
        # Overlapping corners: mirror PyTorch assignment order.
        out_ft = jnp.zeros((B, Co, X, Y, Tf), cdt)
        out_ft = out_ft.at[:, :, :m1, :m2, :m3].set(c1)
        out_ft = out_ft.at[:, :, X - m1:, :m2, :m3].set(c2)
        out_ft = out_ft.at[:, :, :m1, Y - m2:, :m3].set(c3)
        out_ft = out_ft.at[:, :, X - m1:, Y - m2:, :m3].set(c4)

    return jnp.fft.irfftn(out_ft, s=(X, Y, Tp), axes=(2, 3, 4))


def fno3d_forward(x, params, *, modes, width, padding=6):
    m1, m2, m3 = modes
    B, X, Y, T, Cin = x.shape

    # --- lift (fc0), channels-first, with the coordinate-grid term folded in ---
    w0, b0 = params["fc0"]                       # (Cin+3, W), (W,)
    wt = w0[:Cin].T                              # (W, Cin)
    w_grid = w0[Cin:]                            # (3, W): rows for x, y, t coords
    gx = jnp.linspace(0.0, 1.0, X, dtype=jnp.float32)
    gy = jnp.linspace(0.0, 1.0, Y, dtype=jnp.float32)
    gt = jnp.linspace(0.0, 1.0, T, dtype=jnp.float32)
    S0 = X * Y * T
    coords = jnp.stack([
        jnp.broadcast_to(gx[:, None, None], (X, Y, T)).reshape(S0),
        jnp.broadcast_to(gy[None, :, None], (X, Y, T)).reshape(S0),
        jnp.broadcast_to(gt[None, None, :], (X, Y, T)).reshape(S0),
    ], axis=0)                                    # (3, S0) — tiny
    gb_t = jnp.dot(w_grid.T, coords)              # (W, S0) grid-bias table

    h = fc0_pallas(x.reshape(B, S0, Cin), gb_t, wt, b0)          # (B, W, S0)
    h = h.reshape(B, width, X, Y, T)
    # time padding (== F.pad(x, [0, padding]) in the reference)
    h = jnp.pad(h, ((0, 0), (0, 0), (0, 0), (0, 0), (0, padding)))

    # --- 4 Fourier layers: x = gelu(SpectralConv(x) + Conv1x1(x)) (no act last) ---
    for l in range(4):
        p = params["layers"][l]
        x1 = spectral_conv3d(h, p["swr"], p["swi"], m1, m2, m3)
        h = wpath_cf(h, x1, p["w"], p["b"], act=(l < 3))

    # --- fused projection head on the padded extent (pointwise per site),
    #     then slice the tiny 1-channel output instead of the activation ---
    w1, b1 = params["fc1"]
    w2, b2 = params["fc2"]
    y = projection_head(h, w1, b1, w2, b2)        # (B, 1, X, Y, Tp)
    y = y[..., :T]                                # cheap: 1 channel only
    return jnp.transpose(y, (0, 2, 3, 4, 1))      # (B, X, Y, T, 1)


# ------------------------------ parameters -----------------------------------

def init_params(key, in_channels, width, m1, m2, m3):
    def uniform(k, shape, bound):
        return jax.random.uniform(k, shape, jnp.float32, -bound, bound)

    keys = jax.random.split(key, 7)

    k0w, k0b = jax.random.split(keys[0])
    bnd0 = (in_channels + 3) ** -0.5
    fc0 = (uniform(k0w, (in_channels + 3, width), bnd0), uniform(k0b, (width,), bnd0))

    k1w, k1b = jax.random.split(keys[1])
    bnd1 = width ** -0.5
    fc1 = (uniform(k1w, (128, width), bnd1), uniform(k1b, (128,), bnd1))   # (out, in)

    k2w, k2b = jax.random.split(keys[2])
    bnd2 = 128 ** -0.5
    fc2 = (uniform(k2w, (1, 128), bnd2), uniform(k2b, (1,), bnd2))         # (out, in)

    scale = 1.0 / (width * width)
    M = m1 * m2 * m3
    layers = []
    for l in range(4):
        ks = jax.random.split(keys[3 + l], 3)
        swr4 = scale * jax.random.uniform(ks[0], (4, width, width, m1, m2, m3),
                                          jnp.float32)
        swi4 = scale * jax.random.uniform(ks[1], (4, width, width, m1, m2, m3),
                                          jnp.float32)
        # Pre-fuse once: (4, Ci, Co, m1, m2, m3) -> (Ci, Co, 4*M), corners contiguous.
        swr = jnp.transpose(swr4, (1, 2, 0, 3, 4, 5)).reshape(width, width, 4 * M)
        swi = jnp.transpose(swi4, (1, 2, 0, 3, 4, 5)).reshape(width, width, 4 * M)
        kw, kb = jax.random.split(ks[2])
        bw = width ** -0.5
        layers.append({"swr": swr, "swi": swi,
                       "w": uniform(kw, (width, width), bw),   # 1x1 Conv3d, (out, in)
                       "b": uniform(kb, (width,), bw)})

    return {"fc0": fc0, "fc1": fc1, "fc2": fc2, "layers": layers}


# --------------------------------- main ---------------------------------------

if __name__ == "__main__":
    B, X, Y, T = 2, 8, 8, 6
    C_IN = 64                      # fc0 = Linear(67, width): 64 input channels + 3 grid
    WIDTH = 8
    M1, M2, M3 = 4, 4, 3
    PADDING = 6                    # X*Y*(T+PADDING) = 768: lane-aligned by construction

    key = jax.random.PRNGKey(0)
    kx, kp = jax.random.split(key)
    x = jax.random.normal(kx, (B, X, Y, T, C_IN), dtype=jnp.float32)
    params = init_params(kp, C_IN, WIDTH, M1, M2, M3)

    fwd = jax.jit(functools.partial(fno3d_forward,
                                    modes=(M1, M2, M3),
                                    width=WIDTH,
                                    padding=PADDING))
    out = jax.block_until_ready(fwd(x, params))
    assert out.shape == (B, X, Y, T, 1), out.shape
    assert out.dtype == jnp.float32
    assert bool(jnp.all(jnp.isfinite(out)))
    print("KERNEL_OK")
</pallas_src>

<mosaic_0001>
module attributes {stable_mosaic.version = 11 : i64} {
  func.func @_fc0_kernel(%arg0: i32, %arg1: i32, %arg2: memref<1x384x64xf32, #tpu.memory_space<vmem>>, %arg3: memref<8x384xf32, #tpu.memory_space<vmem>>, %arg4: memref<8x64xf32, #tpu.memory_space<vmem>>, %arg5: memref<8x1xf32, #tpu.memory_space<vmem>>, %arg6: memref<1x8x384xf32, #tpu.memory_space<vmem>>) attributes {dimension_semantics = [#tpu.dimension_semantics<parallel>, #tpu.dimension_semantics<parallel>], iteration_bounds = array<i64: 2, 1>, scalar_prefetch = 0 : i64, scratch_operands = 0 : i64, tpu.core_type = #tpu.core_type<tc>, window_params = [{transform_indices = @transform_0, window_bounds = array<i64: 1, 384, 64>}, {transform_indices = @transform_1, window_bounds = array<i64: 8, 384>}, {pipeline_mode = #tpu.pipeline_mode<synchronous>, transform_indices = @transform_2, window_bounds = array<i64: 8, 64>}, {pipeline_mode = #tpu.pipeline_mode<synchronous>, transform_indices = @transform_3, window_bounds = array<i64: 8, 1>}, {transform_indices = @transform_4, window_bounds = array<i64: 1, 8, 384>}]} {
    %c0 = arith.constant 0 : index
    %c0_0 = arith.constant 0 : index
    %0 = vector.load %arg4[%c0, %c0_0] : memref<8x64xf32, #tpu.memory_space<vmem>>, vector<8x64xf32>
    %c0_1 = arith.constant 0 : index
    %c0_2 = arith.constant 0 : index
    %c0_3 = arith.constant 0 : index
    %1 = vector.load %arg2[%c0_1, %c0_2, %c0_3] : memref<1x384x64xf32, #tpu.memory_space<vmem>>, vector<1x384x64xf32>
    %2 = vector.shape_cast %1 : vector<1x384x64xf32> to vector<384x64xf32>
    %cst = arith.constant dense<0.000000e+00> : vector<8x384xf32>
    %3 = tpu.matmul %0, %2, %cst {dimension_numbers = #tpu.dot_dimension_numbers<[1], [1], [0], [0], [0, 0, 1, 0], [], []>} : vector<8x64xf32>, vector<384x64xf32>, vector<8x384xf32> -> vector<8x384xf32>
    %c0_4 = arith.constant 0 : index
    %c0_5 = arith.constant 0 : index
    %4 = vector.load %arg3[%c0_4, %c0_5] : memref<8x384xf32, #tpu.memory_space<vmem>>, vector<8x384xf32>
    %5 = arith.addf %3, %4 : vector<8x384xf32>
    %c0_6 = arith.constant 0 : index
    %c0_7 = arith.constant 0 : index
    %6 = vector.load %arg5[%c0_6, %c0_7] : memref<8x1xf32, #tpu.memory_space<vmem>>, vector<8x1xf32>
    %7 = vector.broadcast %6 : vector<8x1xf32> to vector<8x384xf32>
    %8 = arith.addf %5, %7 : vector<8x384xf32>
    %9 = vector.shape_cast %8 : vector<8x384xf32> to vector<1x8x384xf32>
    %c0_8 = arith.constant 0 : index
    %c0_9 = arith.constant 0 : index
    %c0_10 = arith.constant 0 : index
    %10 = vector.load %arg6[%c0_8, %c0_9, %c0_10] : memref<1x8x384xf32, #tpu.memory_space<vmem>>, vector<1x8x384xf32>
    tpu.vector_store %arg6[%c0_8, %c0_9, %c0_10], %9 {strides = array<i32>} : memref<1x8x384xf32, #tpu.memory_space<vmem>>, vector<1x8x384xf32>,
    return
  }
  func.func @transform_0(%arg0: i32, %arg1: i32) -> (i32, i32, i32) {
    %c0_i32 = arith.constant 0 : i32
    %c0_i32_0 = arith.constant 0 : i32
    return %arg0, %arg1, %c0_i32 : i32, i32, i32
  }
  func.func @transform_1(%arg0: i32, %arg1: i32) -> (i32, i32) {
    %c0_i32 = arith.constant 0 : i32
    %c0_i32_0 = arith.constant 0 : i32
    return %c0_i32, %arg1 : i32, i32
  }
  func.func @transform_2(%arg0: i32, %arg1: i32) -> (i32, i32) {
    %c0_i32 = arith.constant 0 : i32
    %c0_i32_0 = arith.constant 0 : i32
    %c0_i32_1 = arith.constant 0 : i32
    return %c0_i32, %c0_i32_0 : i32, i32
  }
  func.func @transform_3(%arg0: i32, %arg1: i32) -> (i32, i32) {
    %c0_i32 = arith.constant 0 : i32
    %c0_i32_0 = arith.constant 0 : i32
    %c0_i32_1 = arith.constant 0 : i32
    return %c0_i32, %c0_i32_0 : i32, i32
  }
  func.func @transform_4(%arg0: i32, %arg1: i32) -> (i32, i32, i32) {
    %c0_i32 = arith.constant 0 : i32
    %c0_i32_0 = arith.constant 0 : i32
    return %arg0, %c0_i32, %arg1 : i32, i32, i32
  }
}

module attributes {stable_mosaic.version = 11 : i64} {
  func.func @_cmul_kernel(%arg0: i32, %arg1: memref<2x8x128xf32, #tpu.memory_space<vmem>>, %arg2: memref<2x8x128xf32, #tpu.memory_space<vmem>>, %arg3: memref<8x8x128xf32, #tpu.memory_space<vmem>>, %arg4: memref<8x8x128xf32, #tpu.memory_space<vmem>>, %arg5: memref<2x8x128xf32, #tpu.memory_space<vmem>>, %arg6: memref<2x8x128xf32, #tpu.memory_space<vmem>>) attributes {dimension_semantics = [#tpu.dimension_semantics<parallel>], iteration_bounds = array<i64: 2>, scalar_prefetch = 0 : i64, scratch_operands = 0 : i64, tpu.core_type = #tpu.core_type<tc>, window_params = [{transform_indices = @transform_0, window_bounds = array<i64: 2, 8, 128>}, {transform_indices = @transform_1, window_bounds = array<i64: 2, 8, 128>}, {transform_indices = @transform_2, window_bounds = array<i64: 8, 8, 128>}, {transform_indices = @transform_3, window_bounds = array<i64: 8, 8, 128>}, {transform_indices = @transform_4, window_bounds = array<i64: 2, 8, 128>}, {transform_indices = @transform_5, window_bounds = array<i64: 2, 8, 128>}]} {
    %c0 = arith.constant 0 : index
    %c0_0 = arith.constant 0 : index
    %c0_1 = arith.constant 0 : index
    %0 = vector.load %arg1[%c0, %c0_0, %c0_1] : memref<2x8x128xf32, #tpu.memory_space<vmem>>, vector<2x8x128xf32>
    %c0_2 = arith.constant 0 : index
    %c0_3 = arith.constant 0 : index
    %c0_4 = arith.constant 0 : index
    %1 = vector.load %arg2[%c0_2, %c0_3, %c0_4] : memref<2x8x128xf32, #tpu.memory_space<vmem>>, vector<2x8x128xf32>
    %c0_5 = arith.constant 0 : index
    %c0_6 = arith.constant 0 : index
    %c0_7 = arith.constant 0 : index
    %2 = vector.load %arg3[%c0_5, %c0_6, %c0_7] : memref<8x8x128xf32, #tpu.memory_space<vmem>>, vector<8x8x128xf32>
    %c0_8 = arith.constant 0 : index
    %c0_9 = arith.constant 0 : index
    %c0_10 = arith.constant 0 : index
    %3 = vector.load %arg4[%c0_8, %c0_9, %c0_10] : memref<8x8x128xf32, #tpu.memory_space<vmem>>, vector<8x8x128xf32>
    %cst = arith.constant 0.000000e+00 : f32
    %4 = vector.broadcast %cst : f32 to vector<2x8x128xf32>
    %cst_11 = arith.constant 0.000000e+00 : f32
    %5 = vector.broadcast %cst_11 : f32 to vector<2x8x128xf32>
    %6 = vector.extract_strided_slice %0 {offsets = [0, 0, 0], sizes = [2, 1, 128], strides = [1, 1, 1]} : vector<2x8x128xf32> to vector<2x1x128xf32>
    %7 = vector.extract_strided_slice %1 {offsets = [0, 0, 0], sizes = [2, 1, 128], strides = [1, 1, 1]} : vector<2x8x128xf32> to vector<2x1x128xf32>
    %8 = vector.extract_strided_slice %2 {offsets = [0, 0, 0], sizes = [1, 8, 128], strides = [1, 1, 1]} : vector<8x8x128xf32> to vector<1x8x128xf32>
    %9 = vector.extract_strided_slice %3 {offsets = [0, 0, 0], sizes = [1, 8, 128], strides = [1, 1, 1]} : vector<8x8x128xf32> to vector<1x8x128xf32>
    %10 = vector.broadcast %6 : vector<2x1x128xf32> to vector<2x8x128xf32>
    %11 = vector.broadcast %8 : vector<1x8x128xf32> to vector<2x8x128xf32>
    %12 = arith.mulf %10, %11 : vector<2x8x128xf32>
    %13 = arith.addf %4, %12 : vector<2x8x128xf32>
    %14 = vector.broadcast %7 : vector<2x1x128xf32> to vector<2x8x128xf32>
    %15 = vector.broadcast %9 : vector<1x8x128xf32> to vector<2x8x128xf32>
    %16 = arith.mulf %14, %15 : vector<2x8x128xf32>
    %17 = arith.subf %13, %16 : vector<2x8x128xf32>
    %18 = vector.broadcast %6 : vector<2x1x128xf32> to vector<2x8x128xf32>
    %19 = vector.broadcast %9 : vector<1x8x128xf32> to vector<2x8x128xf32>
    %20 = arith.mulf %18, %19 : vector<2x8x128xf32>
    %21 = arith.addf %5, %20 : vector<2x8x128xf32>
    %22 = vector.broadcast %7 : vector<2x1x128xf32> to vector<2x8x128xf32>
    %23 = vector.broadcast %8 : vector<1x8x128xf32> to vector<2x8x128xf32>
    %24 = arith.mulf %22, %23 : vector<2x8x128xf32>
    %25 = arith.addf %21, %24 : vector<2x8x128xf32>
    %26 = vector.extract_strided_slice %0 {offsets = [0, 1, 0], sizes = [2, 1, 128], strides = [1, 1, 1]} : vector<2x8x128xf32> to vector<2x1x128xf32>
    %27 = vector.extract_strided_slice %1 {offsets = [0, 1, 0], sizes = [2, 1, 128], strides = [1, 1, 1]} : vector<2x8x128xf32> to vector<2x1x128xf32>
    %28 = vector.extract_strided_slice %2 {offsets = [1, 0, 0], sizes = [1, 8, 128], strides = [1, 1, 1]} : vector<8x8x128xf32> to vector<1x8x128xf32>
    %29 = vector.extract_strided_slice %3 {offsets = [1, 0, 0], sizes = [1, 8, 128], strides = [1, 1, 1]} : vector<8x8x128xf32> to vector<1x8x128xf32>
    %30 = vector.broadcast %26 : vector<2x1x128xf32> to vector<2x8x128xf32>
    %31 = vector.broadcast %28 : vector<1x8x128xf32> to vector<2x8x128xf32>
    %32 = arith.mulf %30, %31 : vector<2x8x128xf32>
    %33 = arith.addf %17, %32 : vector<2x8x128xf32>
    %34 = vector.broadcast %27 : vector<2x1x128xf32> to vector<2x8x128xf32>
    %35 = vector.broadcast %29 : vector<1x8x128xf32> to vector<2x8x128xf32>
    %36 = arith.mulf %34, %35 : vector<2x8x128xf32>
    %37 = arith.subf %33, %36 : vector<2x8x128xf32>
    %38 = vector.broadcast %26 : vector<2x1x128xf32> to vector<2x8x128xf32>
    %39 = vector.broadcast %29 : vector<1x8x128xf32> to vector<2x8x128xf32>
    %40 = arith.mulf %38, %39 : vector<2x8x128xf32>
    %41 = arith.addf %25, %40 : vector<2x8x128xf32>
    %42 = vector.broadcast %27 : vector<2x1x128xf32> to vector<2x8x128xf32>
    %43 = vector.broadcast %28 : vector<1x8x128xf32> to vector<2x8x128xf32>
    %44 = arith.mulf %42, %43 : vector<2x8x128xf32>
    %45 = arith.addf %41, %44 : vector<2x8x128xf32>
    %46 = vector.extract_strided_slice %0 {offsets = [0, 2, 0], sizes = [2, 1, 128], strides = [1, 1, 1]} : vector<2x8x128xf32> to vector<2x1x128xf32>
    %47 = vector.extract_strided_slice %1 {offsets = [0, 2, 0], sizes = [2, 1, 128], strides = [1, 1, 1]} : vector<2x8x128xf32> to vector<2x1x128xf32>
    %48 = vector.extract_strided_slice %2 {offsets = [2, 0, 0], sizes = [1, 8, 128], strides = [1, 1, 1]} : vector<8x8x128xf32> to vector<1x8x128xf32>
    %49 = vector.extract_strided_slice %3 {offsets = [2, 0, 0], sizes = [1, 8, 128], strides = [1, 1, 1]} : vector<8x8x128xf32> to vector<1x8x128xf32>
    %50 = vector.broadcast %46 : vector<2x1x128xf32> to vector<2x8x128xf32>
    %51 = vector.broadcast %48 : vector<1x8x128xf32> to vector<2x8x128xf32>
    %52 = arith.mulf %50, %51 : vector<2x8x128xf32>
    %53 = arith.addf %37, %52 : vector<2x8x128xf32>
    %54 = vector.broadcast %47 : vector<2x1x128xf32> to vector<2x8x128xf32>
    %55 = vector.broadcast %49 : vector<1x8x128xf32> to vector<2x8x128xf32>
    %56 = arith.mulf %54, %55 : vector<2x8x128xf32>
    %57 = arith.subf %53, %56 : vector<2x8x128xf32>
    %58 = vector.broadcast %46 : vector<2x1x128xf32> to vector<2x8x128xf32>
    %59 = vector.broadcast %49 : vector<1x8x128xf32> to vector<2x8x128xf32>
    %60 = arith.mulf %58, %59 : vector<2x8x128xf32>
    %61 = arith.addf %45, %60 : vector<2x8x128xf32>
    %62 = vector.broadcast %47 : vector<2x1x128xf32> to vector<2x8x128xf32>
    %63 = vector.broadcast %48 : vector<1x8x128xf32> to vector<2x8x128xf32>
    %64 = arith.mulf %62, %63 : vector<2x8x128xf32>
    %65 = arith.addf %61, %64 : vector<2x8x128xf32>
    %66 = vector.extract_strided_slice %0 {offsets = [0, 3, 0], sizes = [2, 1, 128], strides = [1, 1, 1]} : vector<2x8x128xf32> to vector<2x1x128xf32>
    %67 = vector.extract_strided_slice %1 {offsets = [0, 3, 0], sizes = [2, 1, 128], strides = [1, 1, 1]} : vector<2x8x128xf32> to vector<2x1x128xf32>
    %68 = vector.extract_strided_slice %2 {offsets = [3, 0, 0], sizes = [1, 8, 128], strides = [1, 1, 1]} : vector<8x8x128xf32> to vector<1x8x128xf32>
    %69 = vector.extract_strided_slice %3 {offsets = [3, 0, 0], sizes = [1, 8, 128], strides = [1, 1, 1]} : vector<8x8x128xf32> to vector<1x8x128xf32>
    %70 = vector.broadcast %66 : vector<2x1x128xf32> to vector<2x8x128xf32>
    %71 = vector.broadcast %68 : vector<1x8x128xf32> to vector<2x8x128xf32>
    %72 = arith.mulf %70, %71 : vector<2x8x128xf32>
    %73 = arith.addf %57, %72 : vector<2x8x128xf32>
    %74 = vector.broadcast %67 : vector<2x1x128xf32> to vector<2x8x128xf32>
    %75 = vector.broadcast %69 : vector<1x8x128xf32> to vector<2x8x128xf32>
    %76 = arith.mulf %74, %75 : vector<2x8x128xf32>
    %77 = arith.subf %73, %76 : vector<2x8x128xf32>
    %78 = vector.broadcast %66 : vector<2x1x128xf32> to vector<2x8x128xf32>
    %79 = vector.broadcast %69 : vector<1x8x128xf32> to vector<2x8x128xf32>
    %80 = arith.mulf %78, %79 : vector<2x8x128xf32>
    %81 = arith.addf %65, %80 : vector<2x8x128xf32>
    %82 = vector.broadcast %67 : vector<2x1x128xf32> to vector<2x8x128xf32>
    %83 = vector.broadcast %68 : vector<1x8x128xf32> to vector<2x8x128xf32>
    %84 = arith.mulf %82, %83 : vector<2x8x128xf32>
    %85 = arith.addf %81, %84 : vector<2x8x128xf32>
    %86 = vector.extract_strided_slice %0 {offsets = [0, 4, 0], sizes = [2, 1, 128], strides = [1, 1, 1]} : vector<2x8x128xf32> to vector<2x1x128xf32>
    %87 = vector.extract_strided_slice %1 {offsets = [0, 4, 0], sizes = [2, 1, 128], strides = [1, 1, 1]} : vector<2x8x128xf32> to vector<2x1x128xf32>
    %88 = vector.extract_strided_slice %2 {offsets = [4, 0, 0], sizes = [1, 8, 128], strides = [1, 1, 1]} : vector<8x8x128xf32> to vector<1x8x128xf32>
    %89 = vector.extract_strided_slice %3 {offsets = [4, 0, 0], sizes = [1, 8, 128], strides = [1, 1, 1]} : vector<8x8x128xf32> to vector<1x8x128xf32>
    %90 = vector.broadcast %86 : vector<2x1x128xf32> to vector<2x8x128xf32>
    %91 = vector.broadcast %88 : vector<1x8x128xf32> to vector<2x8x128xf32>
    %92 = arith.mulf %90, %91 : vector<2x8x128xf32>
    %93 = arith.addf %77, %92 : vector<2x8x128xf32>
    %94 = vector.broadcast %87 : vector<2x1x128xf32> to vector<2x8x128xf32>
    %95 = vector.broadcast %89 : vector<1x8x128xf32> to vector<2x8x128xf32>
    %96 = arith.mulf %94, %95 : vector<2x8x128xf32>
    %97 = arith.subf %93, %96 : vector<2x8x128xf32>
    %98 = vector.broadcast %86 : vector<2x1x128xf32> to vector<2x8x128xf32>
    %99 = vector.broadcast %89 : vector<1x8x128xf32> to vector<2x8x128xf32>
    %100 = arith.mulf %98, %99 : vector<2x8x128xf32>
    %101 = arith.addf %85, %100 : vector<2x8x128xf32>
    %102 = vector.broadcast %87 : vector<2x1x128xf32> to vector<2x8x128xf32>
    %103 = vector.broadcast %88 : vector<1x8x128xf32> to vector<2x8x128xf32>
    %104 = arith.mulf %102, %103 : vector<2x8x128xf32>
    %105 = arith.addf %101, %104 : vector<2x8x128xf32>
    %106 = vector.extract_strided_slice %0 {offsets = [0, 5, 0], sizes = [2, 1, 128], strides = [1, 1, 1]} : vector<2x8x128xf32> to vector<2x1x128xf32>
    %107 = vector.extract_strided_slice %1 {offsets = [0, 5, 0], sizes = [2, 1, 128], strides = [1, 1, 1]} : vector<2x8x128xf32> to vector<2x1x128xf32>
    %108 = vector.extract_strided_slice %2 {offsets = [5, 0, 0], sizes = [1, 8, 128], strides = [1, 1, 1]} : vector<8x8x128xf32> to vector<1x8x128xf32>
    %109 = vector.extract_strided_slice %3 {offsets = [5, 0, 0], sizes = [1, 8, 128], strides = [1, 1, 1]} : vector<8x8x128xf32> to vector<1x8x128xf32>
    %110 = vector.broadcast %106 : vector<2x1x128xf32> to vector<2x8x128xf32>
    %111 = vector.broadcast %108 : vector<1x8x128xf32> to vector<2x8x128xf32>
    %112 = arith.mulf %110, %111 : vector<2x8x128xf32>
    %113 = arith.addf %97, %112 : vector<2x8x128xf32>
    %114 = vector.broadcast %107 : vector<2x1x128xf32> to vector<2x8x128xf32>
    %115 = vector.broadcast %109 : vector<1x8x128xf32> to vector<2x8x128xf32>
    %116 = arith.mulf %114, %115 : vector<2x8x128xf32>
    %117 = arith.subf %113, %116 : vector<2x8x128xf32>
    %118 = vector.broadcast %106 : vector<2x1x128xf32> to vector<2x8x128xf32>
    %119 = vector.broadcast %109 : vector<1x8x128xf32> to vector<2x8x128xf32>
    %120 = arith.mulf %118, %119 : vector<2x8x128xf32>
    %121 = arith.addf %105, %120 : vector<2x8x128xf32>
    %122 = vector.broadcast %107 : vector<2x1x128xf32> to vector<2x8x128xf32>
    %123 = vector.broadcast %108 : vector<1x8x128xf32> to vector<2x8x128xf32>
    %124 = arith.mulf %122, %123 : vector<2x8x128xf32>
    %125 = arith.addf %121, %124 : vector<2x8x128xf32>
    %126 = vector.extract_strided_slice %0 {offsets = [0, 6, 0], sizes = [2, 1, 128], strides = [1, 1, 1]} : vector<2x8x128xf32> to vector<2x1x128xf32>
    %127 = vector.extract_strided_slice %1 {offsets = [0, 6, 0], sizes = [2, 1, 128], strides = [1, 1, 1]} : vector<2x8x128xf32> to vector<2x1x128xf32>
    %128 = vector.extract_strided_slice %2 {offsets = [6, 0, 0], sizes = [1, 8, 128], strides = [1, 1, 1]} : vector<8x8x128xf32> to vector<1x8x128xf32>
    %129 = vector.extract_strided_slice %3 {offsets = [6, 0, 0], sizes = [1, 8, 128], strides = [1, 1, 1]} : vector<8x8x128xf32> to vector<1x8x128xf32>
    %130 = vector.broadcast %126 : vector<2x1x128xf32> to vector<2x8x128xf32>
    %131 = vector.broadcast %128 : vector<1x8x128xf32> to vector<2x8x128xf32>
    %132 = arith.mulf %130, %131 : vector<2x8x128xf32>
    %133 = arith.addf %117, %132 : vector<2x8x128xf32>
    %134 = vector.broadcast %127 : vector<2x1x128xf32> to vector<2x8x128xf32>
    %135 = vector.broadcast %129 : vector<1x8x128xf32> to vector<2x8x128xf32>
    %136 = arith.mulf %134, %135 : vector<2x8x128xf32>
    %137 = arith.subf %133, %136 : vector<2x8x128xf32>
    %138 = vector.broadcast %126 : vector<2x1x128xf32> to vector<2x8x128xf32>
    %139 = vector.broadcast %129 : vector<1x8x128xf32> to vector<2x8x128xf32>
    %140 = arith.mulf %138, %139 : vector<2x8x128xf32>
    %141 = arith.addf %125, %140 : vector<2x8x128xf32>
    %142 = vector.broadcast %127 : vector<2x1x128xf32> to vector<2x8x128xf32>
    %143 = vector.broadcast %128 : vector<1x8x128xf32> to vector<2x8x128xf32>
    %144 = arith.mulf %142, %143 : vector<2x8x128xf32>
    %145 = arith.addf %141, %144 : vector<2x8x128xf32>
    %146 = vector.extract_strided_slice %0 {offsets = [0, 7, 0], sizes = [2, 1, 128], strides = [1, 1, 1]} : vector<2x8x128xf32> to vector<2x1x128xf32>
    %147 = vector.extract_strided_slice %1 {offsets = [0, 7, 0], sizes = [2, 1, 128], strides = [1, 1, 1]} : vector<2x8x128xf32> to vector<2x1x128xf32>
    %148 = vector.extract_strided_slice %2 {offsets = [7, 0, 0], sizes = [1, 8, 128], strides = [1, 1, 1]} : vector<8x8x128xf32> to vector<1x8x128xf32>
    %149 = vector.extract_strided_slice %3 {offsets = [7, 0, 0], sizes = [1, 8, 128], strides = [1, 1, 1]} : vector<8x8x128xf32> to vector<1x8x128xf32>
    %150 = vector.broadcast %146 : vector<2x1x128xf32> to vector<2x8x128xf32>
    %151 = vector.broadcast %148 : vector<1x8x128xf32> to vector<2x8x128xf32>
    %152 = arith.mulf %150, %151 : vector<2x8x128xf32>
    %153 = arith.addf %137, %152 : vector<2x8x128xf32>
    %154 = vector.broadcast %147 : vector<2x1x128xf32> to vector<2x8x128xf32>
    %155 = vector.broadcast %149 : vector<1x8x128xf32> to vector<2x8x128xf32>
    %156 = arith.mulf %154, %155 : vector<2x8x128xf32>
    %157 = arith.subf %153, %156 : vector<2x8x128xf32>
    %158 = vector.broadcast %146 : vector<2x1x128xf32> to vector<2x8x128xf32>
    %159 = vector.broadcast %149 : vector<1x8x128xf32> to vector<2x8x128xf32>
    %160 = arith.mulf %158, %159 : vector<2x8x128xf32>
    %161 = arith.addf %145, %160 : vector<2x8x128xf32>
    %162 = vector.broadcast %147 : vector<2x1x128xf32> to vector<2x8x128xf32>
    %163 = vector.broadcast %148 : vector<1x8x128xf32> to vector<2x8x128xf32>
    %164 = arith.mulf %162, %163 : vector<2x8x128xf32>
    %165 = arith.addf %161, %164 : vector<2x8x128xf32>
    %c0_12 = arith.constant 0 : index
    %c0_13 = arith.constant 0 : index
    %c0_14 = arith.constant 0 : index
    %166 = vector.load %arg5[%c0_12, %c0_13, %c0_14] : memref<2x8x128xf32, #tpu.memory_space<vmem>>, vector<2x8x128xf32>
    tpu.vector_store %arg5[%c0_12, %c0_13, %c0_14], %157 {strides = array<i32>} : memref<2x8x128xf32, #tpu.memory_space<vmem>>, vector<2x8x128xf32>,
    %c0_15 = arith.constant 0 : index
    %c0_16 = arith.constant 0 : index
    %c0_17 = arith.constant 0 : index
    %167 = vector.load %arg6[%c0_15, %c0_16, %c0_17] : memref<2x8x128xf32, #tpu.memory_space<vmem>>, vector<2x8x128xf32>
    tpu.vector_store %arg6[%c0_15, %c0_16, %c0_17], %165 {strides = array<i32>} : memref<2x8x128xf32, #tpu.memory_space<vmem>>, vector<2x8x128xf32>,
    return
  }
  func.func @transform_0(%arg0: i32) -> (i32, i32, i32) {
    %c0_i32 = arith.constant 0 : i32
    %c0_i32_0 = arith.constant 0 : i32
    %c0_i32_1 = arith.constant 0 : i32
    return %c0_i32, %c0_i32_0, %arg0 : i32, i32, i32
  }
  func.func @transform_1(%arg0: i32) -> (i32, i32, i32) {
    %c0_i32 = arith.constant 0 : i32
    %c0_i32_0 = arith.constant 0 : i32
    %c0_i32_1 = arith.constant 0 : i32
    return %c0_i32, %c0_i32_0, %arg0 : i32, i32, i32
  }
  func.func @transform_2(%arg0: i32) -> (i32, i32, i32) {
    %c0_i32 = arith.constant 0 : i32
    %c0_i32_0 = arith.constant 0 : i32
    %c0_i32_1 = arith.constant 0 : i32
    return %c0_i32, %c0_i32_0, %arg0 : i32, i32, i32
  }
  func.func @transform_3(%arg0: i32) -> (i32, i32, i32) {
    %c0_i32 = arith.constant 0 : i32
    %c0_i32_0 = arith.constant 0 : i32
    %c0_i32_1 = arith.constant 0 : i32
    return %c0_i32, %c0_i32_0, %arg0 : i32, i32, i32
  }
  func.func @transform_4(%arg0: i32) -> (i32, i32, i32) {
    %c0_i32 = arith.constant 0 : i32
    %c0_i32_0 = arith.constant 0 : i32
    %c0_i32_1 = arith.constant 0 : i32
    return %c0_i32, %c0_i32_0, %arg0 : i32, i32, i32
  }
  func.func @transform_5(%arg0: i32) -> (i32, i32, i32) {
    %c0_i32 = arith.constant 0 : i32
    %c0_i32_0 = arith.constant 0 : i32
    %c0_i32_1 = arith.constant 0 : i32
    return %c0_i32, %c0_i32_0, %arg0 : i32, i32, i32
  }
}

module attributes {stable_mosaic.version = 11 : i64} {
  func.func @_wpath_cf_kernel(%arg0: i32, %arg1: i32, %arg2: memref<1x8x768xf32, #tpu.memory_space<vmem>>, %arg3: memref<1x8x768xf32, #tpu.memory_space<vmem>>, %arg4: memref<8x8xf32, #tpu.memory_space<vmem>>, %arg5: memref<8x1xf32, #tpu.memory_space<vmem>>, %arg6: memref<1x8x768xf32, #tpu.memory_space<vmem>>) attributes {dimension_semantics = [#tpu.dimension_semantics<parallel>, #tpu.dimension_semantics<parallel>], iteration_bounds = array<i64: 2, 1>, scalar_prefetch = 0 : i64, scratch_operands = 0 : i64, tpu.core_type = #tpu.core_type<tc>, window_params = [{transform_indices = @transform_0, window_bounds = array<i64: 1, 8, 768>}, {transform_indices = @transform_1, window_bounds = array<i64: 1, 8, 768>}, {pipeline_mode = #tpu.pipeline_mode<synchronous>, transform_indices = @transform_2, window_bounds = array<i64: 8, 8>}, {pipeline_mode = #tpu.pipeline_mode<synchronous>, transform_indices = @transform_3, window_bounds = array<i64: 8, 1>}, {transform_indices = @transform_4, window_bounds = array<i64: 1, 8, 768>}]} {
    %c0 = arith.constant 0 : index
    %c0_0 = arith.constant 0 : index
    %0 = vector.load %arg4[%c0, %c0_0] : memref<8x8xf32, #tpu.memory_space<vmem>>, vector<8x8xf32>
    %c0_1 = arith.constant 0 : index
    %c0_2 = arith.constant 0 : index
    %c0_3 = arith.constant 0 : index
    %1 = vector.load %arg2[%c0_1, %c0_2, %c0_3] : memref<1x8x768xf32, #tpu.memory_space<vmem>>, vector<1x8x768xf32>
    %2 = vector.shape_cast %1 : vector<1x8x768xf32> to vector<8x768xf32>
    %cst = arith.constant dense<0.000000e+00> : vector<8x768xf32>
    %3 = tpu.matmul %0, %2, %cst {dimension_numbers = #tpu.dot_dimension_numbers<[1], [0], [0], [1], [0, 0, 1, 1], [], []>} : vector<8x8xf32>, vector<8x768xf32>, vector<8x768xf32> -> vector<8x768xf32>
    %c0_4 = arith.constant 0 : index
    %c0_5 = arith.constant 0 : index
    %4 = vector.load %arg5[%c0_4, %c0_5] : memref<8x1xf32, #tpu.memory_space<vmem>>, vector<8x1xf32>
    %5 = vector.broadcast %4 : vector<8x1xf32> to vector<8x768xf32>
    %6 = arith.addf %3, %5 : vector<8x768xf32>
    %c0_6 = arith.constant 0 : index
    %c0_7 = arith.constant 0 : index
    %c0_8 = arith.constant 0 : index
    %7 = vector.load %arg3[%c0_6, %c0_7, %c0_8] : memref<1x8x768xf32, #tpu.memory_space<vmem>>, vector<1x8x768xf32>
    %8 = vector.shape_cast %7 : vector<1x8x768xf32> to vector<8x768xf32>
    %9 = arith.addf %6, %8 : vector<8x768xf32>
    %cst_9 = arith.constant 5.000000e-01 : f32
    %10 = vector.broadcast %cst_9 : f32 to vector<8x768xf32>
    %11 = arith.mulf %10, %9 : vector<8x768xf32>
    %cst_10 = arith.constant 4.471500e-02 : f32
    %12 = vector.broadcast %cst_10 : f32 to vector<8x768xf32>
    %13 = arith.mulf %12, %9 : vector<8x768xf32>
    %14 = arith.mulf %13, %9 : vector<8x768xf32>
    %15 = arith.mulf %14, %9 : vector<8x768xf32>
    %16 = arith.addf %9, %15 : vector<8x768xf32>
    %cst_11 = arith.constant 0.797884583 : f32
    %17 = vector.broadcast %cst_11 : f32 to vector<8x768xf32>
    %18 = arith.mulf %17, %16 : vector<8x768xf32>
    %19 = math.tanh %18 : vector<8x768xf32>
    %cst_12 = arith.constant 1.000000e+00 : f32
    %20 = vector.broadcast %cst_12 : f32 to vector<8x768xf32>
    %21 = arith.addf %20, %19 : vector<8x768xf32>
    %22 = arith.mulf %11, %21 : vector<8x768xf32>
    %23 = vector.shape_cast %22 : vector<8x768xf32> to vector<1x8x768xf32>
    %c0_13 = arith.constant 0 : index
    %c0_14 = arith.constant 0 : index
    %c0_15 = arith.constant 0 : index
    %24 = vector.load %arg6[%c0_13, %c0_14, %c0_15] : memref<1x8x768xf32, #tpu.memory_space<vmem>>, vector<1x8x768xf32>
    tpu.vector_store %arg6[%c0_13, %c0_14, %c0_15], %23 {strides = array<i32>} : memref<1x8x768xf32, #tpu.memory_space<vmem>>, vector<1x8x768xf32>,
    return
  }
  func.func @transform_0(%arg0: i32, %arg1: i32) -> (i32, i32, i32) {
    %c0_i32 = arith.constant 0 : i32
    %c0_i32_0 = arith.constant 0 : i32
    return %arg0, %c0_i32, %arg1 : i32, i32, i32
  }
  func.func @transform_1(%arg0: i32, %arg1: i32) -> (i32, i32, i32) {
    %c0_i32 = arith.constant 0 : i32
    %c0_i32_0 = arith.constant 0 : i32
    return %arg0, %c0_i32, %arg1 : i32, i32, i32
  }
  func.func @transform_2(%arg0: i32, %arg1: i32) -> (i32, i32) {
    %c0_i32 = arith.constant 0 : i32
    %c0_i32_0 = arith.constant 0 : i32
    %c0_i32_1 = arith.constant 0 : i32
    return %c0_i32, %c0_i32_0 : i32, i32
  }
  func.func @transform_3(%arg0: i32, %arg1: i32) -> (i32, i32) {
    %c0_i32 = arith.constant 0 : i32
    %c0_i32_0 = arith.constant 0 : i32
    %c0_i32_1 = arith.constant 0 : i32
    return %c0_i32, %c0_i32_0 : i32, i32
  }
  func.func @transform_4(%arg0: i32, %arg1: i32) -> (i32, i32, i32) {
    %c0_i32 = arith.constant 0 : i32
    %c0_i32_0 = arith.constant 0 : i32
    return %arg0, %c0_i32, %arg1 : i32, i32, i32
  }
}

module attributes {stable_mosaic.version = 11 : i64} {
  func.func @_wpath_cf_kernel(%arg0: i32, %arg1: i32, %arg2: memref<1x8x768xf32, #tpu.memory_space<vmem>>, %arg3: memref<1x8x768xf32, #tpu.memory_space<vmem>>, %arg4: memref<8x8xf32, #tpu.memory_space<vmem>>, %arg5: memref<8x1xf32, #tpu.memory_space<vmem>>, %arg6: memref<1x8x768xf32, #tpu.memory_space<vmem>>) attributes {dimension_semantics = [#tpu.dimension_semantics<parallel>, #tpu.dimension_semantics<parallel>], iteration_bounds = array<i64: 2, 1>, scalar_prefetch = 0 : i64, scratch_operands = 0 : i64, tpu.core_type = #tpu.core_type<tc>, window_params = [{transform_indices = @transform_0, window_bounds = array<i64: 1, 8, 768>}, {transform_indices = @transform_1, window_bounds = array<i64: 1, 8, 768>}, {pipeline_mode = #tpu.pipeline_mode<synchronous>, transform_indices = @transform_2, window_bounds = array<i64: 8, 8>}, {pipeline_mode = #tpu.pipeline_mode<synchronous>, transform_indices = @transform_3, window_bounds = array<i64: 8, 1>}, {transform_indices = @transform_4, window_bounds = array<i64: 1, 8, 768>}]} {
    %c0 = arith.constant 0 : index
    %c0_0 = arith.constant 0 : index
    %0 = vector.load %arg4[%c0, %c0_0] : memref<8x8xf32, #tpu.memory_space<vmem>>, vector<8x8xf32>
    %c0_1 = arith.constant 0 : index
    %c0_2 = arith.constant 0 : index
    %c0_3 = arith.constant 0 : index
    %1 = vector.load %arg2[%c0_1, %c0_2, %c0_3] : memref<1x8x768xf32, #tpu.memory_space<vmem>>, vector<1x8x768xf32>
    %2 = vector.shape_cast %1 : vector<1x8x768xf32> to vector<8x768xf32>
    %cst = arith.constant dense<0.000000e+00> : vector<8x768xf32>
    %3 = tpu.matmul %0, %2, %cst {dimension_numbers = #tpu.dot_dimension_numbers<[1], [0], [0], [1], [0, 0, 1, 1], [], []>} : vector<8x8xf32>, vector<8x768xf32>, vector<8x768xf32> -> vector<8x768xf32>
    %c0_4 = arith.constant 0 : index
    %c0_5 = arith.constant 0 : index
    %4 = vector.load %arg5[%c0_4, %c0_5] : memref<8x1xf32, #tpu.memory_space<vmem>>, vector<8x1xf32>
    %5 = vector.broadcast %4 : vector<8x1xf32> to vector<8x768xf32>
    %6 = arith.addf %3, %5 : vector<8x768xf32>
    %c0_6 = arith.constant 0 : index
    %c0_7 = arith.constant 0 : index
    %c0_8 = arith.constant 0 : index
    %7 = vector.load %arg3[%c0_6, %c0_7, %c0_8] : memref<1x8x768xf32, #tpu.memory_space<vmem>>, vector<1x8x768xf32>
    %8 = vector.shape_cast %7 : vector<1x8x768xf32> to vector<8x768xf32>
    %9 = arith.addf %6, %8 : vector<8x768xf32>
    %10 = vector.shape_cast %9 : vector<8x768xf32> to vector<1x8x768xf32>
    %c0_9 = arith.constant 0 : index
    %c0_10 = arith.constant 0 : index
    %c0_11 = arith.constant 0 : index
    %11 = vector.load %arg6[%c0_9, %c0_10, %c0_11] : memref<1x8x768xf32, #tpu.memory_space<vmem>>, vector<1x8x768xf32>
    tpu.vector_store %arg6[%c0_9, %c0_10, %c0_11], %10 {strides = array<i32>} : memref<1x8x768xf32, #tpu.memory_space<vmem>>, vector<1x8x768xf32>,
    return
  }
  func.func @transform_0(%arg0: i32, %arg1: i32) -> (i32, i32, i32) {
    %c0_i32 = arith.constant 0 : i32
    %c0_i32_0 = arith.constant 0 : i32
    return %arg0, %c0_i32, %arg1 : i32, i32, i32
  }
  func.func @transform_1(%arg0: i32, %arg1: i32) -> (i32, i32, i32) {
    %c0_i32 = arith.constant 0 : i32
    %c0_i32_0 = arith.constant 0 : i32
    return %arg0, %c0_i32, %arg1 : i32, i32, i32
  }
  func.func @transform_2(%arg0: i32, %arg1: i32) -> (i32, i32) {
    %c0_i32 = arith.constant 0 : i32
    %c0_i32_0 = arith.constant 0 : i32
    %c0_i32_1 = arith.constant 0 : i32
    return %c0_i32, %c0_i32_0 : i32, i32
  }
  func.func @transform_3(%arg0: i32, %arg1: i32) -> (i32, i32) {
    %c0_i32 = arith.constant 0 : i32
    %c0_i32_0 = arith.constant 0 : i32
    %c0_i32_1 = arith.constant 0 : i32
    return %c0_i32, %c0_i32_0 : i32, i32
  }
  func.func @transform_4(%arg0: i32, %arg1: i32) -> (i32, i32, i32) {
    %c0_i32 = arith.constant 0 : i32
    %c0_i32_0 = arith.constant 0 : i32
    return %arg0, %c0_i32, %arg1 : i32, i32, i32
  }
}

module attributes {stable_mosaic.version = 11 : i64} {
  func.func @_proj_kernel(%arg0: i32, %arg1: i32, %arg2: memref<1x8x768xf32, #tpu.memory_space<vmem>>, %arg3: memref<128x8xf32, #tpu.memory_space<vmem>>, %arg4: memref<128x1xf32, #tpu.memory_space<vmem>>, %arg5: memref<1x128xf32, #tpu.memory_space<vmem>>, %arg6: memref<1x1xf32, #tpu.memory_space<vmem>>, %arg7: memref<1x1x768xf32, #tpu.memory_space<vmem>>) attributes {dimension_semantics = [#tpu.dimension_semantics<parallel>, #tpu.dimension_semantics<parallel>], iteration_bounds = array<i64: 2, 1>, scalar_prefetch = 0 : i64, scratch_operands = 0 : i64, tpu.core_type = #tpu.core_type<tc>, window_params = [{transform_indices = @transform_0, window_bounds = array<i64: 1, 8, 768>}, {pipeline_mode = #tpu.pipeline_mode<synchronous>, transform_indices = @transform_1, window_bounds = array<i64: 128, 8>}, {pipeline_mode = #tpu.pipeline_mode<synchronous>, transform_indices = @transform_2, window_bounds = array<i64: 128, 1>}, {pipeline_mode = #tpu.pipeline_mode<synchronous>, transform_indices = @transform_3, window_bounds = array<i64: 1, 128>}, {pipeline_mode = #tpu.pipeline_mode<synchronous>, transform_indices = @transform_4, window_bounds = array<i64: 1, 1>}, {transform_indices = @transform_5, window_bounds = array<i64: 1, 1, 768>}]} {
    %c0 = arith.constant 0 : index
    %c0_0 = arith.constant 0 : index
    %0 = vector.load %arg3[%c0, %c0_0] : memref<128x8xf32, #tpu.memory_space<vmem>>, vector<128x8xf32>
    %c0_1 = arith.constant 0 : index
    %c0_2 = arith.constant 0 : index
    %c0_3 = arith.constant 0 : index
    %1 = vector.load %arg2[%c0_1, %c0_2, %c0_3] : memref<1x8x768xf32, #tpu.memory_space<vmem>>, vector<1x8x768xf32>
    %2 = vector.shape_cast %1 : vector<1x8x768xf32> to vector<8x768xf32>
    %cst = arith.constant dense<0.000000e+00> : vector<128x768xf32>
    %3 = tpu.matmul %0, %2, %cst {dimension_numbers = #tpu.dot_dimension_numbers<[1], [0], [0], [1], [0, 0, 1, 1], [], []>} : vector<128x8xf32>, vector<8x768xf32>, vector<128x768xf32> -> vector<128x768xf32>
    %c0_4 = arith.constant 0 : index
    %c0_5 = arith.constant 0 : index
    %4 = vector.load %arg4[%c0_4, %c0_5] : memref<128x1xf32, #tpu.memory_space<vmem>>, vector<128x1xf32>
    %5 = vector.broadcast %4 : vector<128x1xf32> to vector<128x768xf32>
    %6 = arith.addf %3, %5 : vector<128x768xf32>
    %cst_6 = arith.constant 5.000000e-01 : f32
    %7 = vector.broadcast %cst_6 : f32 to vector<128x768xf32>
    %8 = arith.mulf %7, %6 : vector<128x768xf32>
    %cst_7 = arith.constant 4.471500e-02 : f32
    %9 = vector.broadcast %cst_7 : f32 to vector<128x768xf32>
    %10 = arith.mulf %9, %6 : vector<128x768xf32>
    %11 = arith.mulf %10, %6 : vector<128x768xf32>
    %12 = arith.mulf %11, %6 : vector<128x768xf32>
    %13 = arith.addf %6, %12 : vector<128x768xf32>
    %cst_8 = arith.constant 0.797884583 : f32
    %14 = vector.broadcast %cst_8 : f32 to vector<128x768xf32>
    %15 = arith.mulf %14, %13 : vector<128x768xf32>
    %16 = math.tanh %15 : vector<128x768xf32>
    %cst_9 = arith.constant 1.000000e+00 : f32
    %17 = vector.broadcast %cst_9 : f32 to vector<128x768xf32>
    %18 = arith.addf %17, %16 : vector<128x768xf32>
    %19 = arith.mulf %8, %18 : vector<128x768xf32>
    %c0_10 = arith.constant 0 : index
    %c0_11 = arith.constant 0 : index
    %20 = vector.load %arg5[%c0_10, %c0_11] : memref<1x128xf32, #tpu.memory_space<vmem>>, vector<1x128xf32>
    %cst_12 = arith.constant dense<0.000000e+00> : vector<1x768xf32>
    %21 = tpu.matmul %20, %19, %cst_12 {dimension_numbers = #tpu.dot_dimension_numbers<[1], [0], [0], [1], [0, 0, 1, 1], [], []>} : vector<1x128xf32>, vector<128x768xf32>, vector<1x768xf32> -> vector<1x768xf32>
    %c0_13 = arith.constant 0 : index
    %c0_14 = arith.constant 0 : index
    %22 = vector.load %arg6[%c0_13, %c0_14] : memref<1x1xf32, #tpu.memory_space<vmem>>, vector<1x1xf32>
    %23 = vector.broadcast %22 : vector<1x1xf32> to vector<1x768xf32>
    %24 = arith.addf %21, %23 : vector<1x768xf32>
    %25 = vector.shape_cast %24 : vector<1x768xf32> to vector<1x1x768xf32>
    %c0_15 = arith.constant 0 : index
    %c0_16 = arith.constant 0 : index
    %c0_17 = arith.constant 0 : index
    %26 = vector.load %arg7[%c0_15, %c0_16, %c0_17] : memref<1x1x768xf32, #tpu.memory_space<vmem>>, vector<1x1x768xf32>
    tpu.vector_store %arg7[%c0_15, %c0_16, %c0_17], %25 {strides = array<i32>} : memref<1x1x768xf32, #tpu.memory_space<vmem>>, vector<1x1x768xf32>,
    return
  }
  func.func @transform_0(%arg0: i32, %arg1: i32) -> (i32, i32, i32) {
    %c0_i32 = arith.constant 0 : i32
    %c0_i32_0 = arith.constant 0 : i32
    return %arg0, %c0_i32, %arg1 : i32, i32, i32
  }
  func.func @transform_1(%arg0: i32, %arg1: i32) -> (i32, i32) {
    %c0_i32 = arith.constant 0 : i32
    %c0_i32_0 = arith.constant 0 : i32
    %c0_i32_1 = arith.constant 0 : i32
    return %c0_i32, %c0_i32_0 : i32, i32
  }
  func.func @transform_2(%arg0: i32, %arg1: i32) -> (i32, i32) {
    %c0_i32 = arith.constant 0 : i32
    %c0_i32_0 = arith.constant 0 : i32
    %c0_i32_1 = arith.constant 0 : i32
    return %c0_i32, %c0_i32_0 : i32, i32
  }
  func.func @transform_3(%arg0: i32, %arg1: i32) -> (i32, i32) {
    %c0_i32 = arith.constant 0 : i32
    %c0_i32_0 = arith.constant 0 : i32
    %c0_i32_1 = arith.constant 0 : i32
    return %c0_i32, %c0_i32_0 : i32, i32
  }
  func.func @transform_4(%arg0: i32, %arg1: i32) -> (i32, i32) {
    %c0_i32 = arith.constant 0 : i32
    %c0_i32_0 = arith.constant 0 : i32
    %c0_i32_1 = arith.constant 0 : i32
    return %c0_i32, %c0_i32_0 : i32, i32
  }
  func.func @transform_5(%arg0: i32, %arg1: i32) -> (i32, i32, i32) {
    %c0_i32 = arith.constant 0 : i32
    %c0_i32_0 = arith.constant 0 : i32
    return %arg0, %c0_i32, %arg1 : i32, i32, i32
  }
}

</mosaic_0001>

<bundles_post_ra>
// kernel: fno3d_forward.10
= control target key start
LH: loop header
LB: loop body
LE: loop exit
PB: predicated region body
PF: predicated region fallthrough
CT: control target
= control target key end

     0   :  { %s772_s15 = smov 0   ;;  %s774_s16 = smov 0   ;;  %s925_s0 = inlined_call_operand.vmem [shape: f32[2,384,64], index: 0, kind: input, shape index: {}]   ;;  %s926_s1 = inlined_call_operand.vmem [shape: f32[8,384], index: 1, kind: input, shape index: {}]   ;;  %s927_s2 = inlined_call_operand.vmem [shape: f32[8,64], index: 2, kind: input, shape index: {}]   ;;  %s928_s3 = inlined_call_operand.vmem [shape: f32[8,1], index: 3, kind: input, shape index: {}]   ;;  %s929_s4 = inlined_call_operand.vmem [shape: f32[2,8,384], index: 4, kind: output, shape index: {}]  }
   0x1   :  { %s776_s17 = smov 0  }
   0x2 LB: > { %s26_s18 = sadd.s32 1, %s740_s16  ;;  %p638_p0 = scmp.ge.s32.totalorder %s744_s17, 1  ;;  %s744_s17 = sphi %s776_s17, %s14_s17   ;;  %s740_s16 = sphi %s774_s16, %s931_s16   ;;  %s736_s15 = sphi %s772_s15, %s930_s15  }
   0x3   : > { %p28_p1 = scmp.ge.s32.totalorder %s26_s18, 2  ;;  %p194_p2 = scmp.lt.s32.totalorder %s744_s17, 3 }
   0x5   : > { %s933_s18 = smov (%p28_p1, %s26_s18), 0  ;;  %p195_p3 = pnand %p638_p0, %p194_p2 }
   0x6   : > { %p234_p4 = scmp.lt.s32.totalorder (!%p195_p3), %s736_s15, 1 }
   0x7   : > { %198 = sbr.rel (%p195_p3) target bundleno = 217 (0xd9), region = 36 }
   0xc   : > { %s935_s15 = smov (!%p234_p4, %s736_s15), 1  ;;  %vm311_vm0 = vcmask 523264   ;;  %v519_v27 = vld [vmem:[%s928_s3] sm:$0xff]  ;;  %v746_v30 = vmov 0   ;;  %v309_v52 = vld [vmem:[%s926_s1 + $0x8] sm:$0xff]  ;;  %v310_v59 = vld [vmem:[%s926_s1 + $0x10] sm:$0xff] }
   0xd   : > { %s694_s19 = smul.u32 384, %s935_s15  ;;  %721 = vset.pattern.permute.xlu0 %v746_v30  ;;  %v259_v50 = vld [vmem:[%s927_s2] sm:$0xff] }
   0xe   : > { %522 = vperm.xlu0 %721, %v519_v27   ;;  %v308_v51 = vld [vmem:[%s926_s1] sm:$0xff]  ;;  %s695_s29 = smul.u32 24, %s935_s15 }
   0xf   : > { %s796_s22 = scalar_lea.vmem %s925_s0, %s694_s19 }
  0x10   : > { %v307_v0 = vld [vmem:[%s796_s22 + $0x178] sm:$0xff]  ;;  %v306_v3 = vld [vmem:[%s796_s22 + $0x170] sm:$0xff]  ;;  %v305_v6 = vld [vmem:[%s796_s22 + $0x168] sm:$0xff]  ;;  %s257_s8 = scalar_lea.vmem %s929_s4, %s695_s29 }
  0x11   : > { %v275_v1 = vld [vmem:[%s796_s22 + $0x78] sm:$0xff]  ;;  %675 = vmatpush.xpose.msk.msra.mxu2 %vm311_vm0, %v307_v0  ;;  %v274_v4 = vld [vmem:[%s796_s22 + $0x70] sm:$0xff]  ;;  %v273_v7 = vld [vmem:[%s796_s22 + $0x68] sm:$0xff] }
  0x12   : > { %641 = vmatpush.xpose.msk.msra.mxu0 %vm311_vm0, %v275_v1  ;;  %v291_v2 = vld [vmem:[%s796_s22 + $0xf8] sm:$0xff]  ;;  %v290_v5 = vld [vmem:[%s796_s22 + $0xf0] sm:$0xff]  ;;  %v289_v8 = vld [vmem:[%s796_s22 + $0xe8] sm:$0xff] }
  0x13   : > { %658 = vmatpush.xpose.msk.msra.mxu1 %vm311_vm0, %v291_v2  ;;  %v304_v9 = vld [vmem:[%s796_s22 + $0x160] sm:$0xff]  ;;  %v303_v12 = vld [vmem:[%s796_s22 + $0x158] sm:$0xff]  ;;  %v302_v15 = vld [vmem:[%s796_s22 + $0x150] sm:$0xff] }
  0x14   : > { %v272_v10 = vld [vmem:[%s796_s22 + $0x60] sm:$0xff]  ;;  %v271_v13 = vld [vmem:[%s796_s22 + $0x58] sm:$0xff]  ;;  %v270_v16 = vld [vmem:[%s796_s22 + $0x50] sm:$0xff] }
  0x15   : > { %676 = vmatpush.xpose.msk.msra.mxu2 %vm311_vm0, %v306_v3  ;;  %v288_v11 = vld [vmem:[%s796_s22 + $0xe0] sm:$0xff]  ;;  %v287_v14 = vld [vmem:[%s796_s22 + $0xd8] sm:$0xff]  ;;  %v286_v17 = vld [vmem:[%s796_s22 + $0xd0] sm:$0xff] }
  0x16   : > { %642 = vmatpush.xpose.msk.msra.mxu0 %vm311_vm0, %v274_v4  ;;  %v301_v18 = vld [vmem:[%s796_s22 + $0x148] sm:$0xff]  ;;  %v300_v21 = vld [vmem:[%s796_s22 + $0x140] sm:$0xff]  ;;  %v299_v24 = vld [vmem:[%s796_s22 + $0x138] sm:$0xff] }
  0x17   : > { %659 = vmatpush.xpose.msk.msra.mxu1 %vm311_vm0, %v290_v5  ;;  %v269_v19 = vld [vmem:[%s796_s22 + $0x48] sm:$0xff]  ;;  %v268_v22 = vld [vmem:[%s796_s22 + $0x40] sm:$0xff]  ;;  %v267_v25 = vld [vmem:[%s796_s22 + $0x38] sm:$0xff] }
  0x18   : > { %v285_v20 = vld [vmem:[%s796_s22 + $0xc8] sm:$0xff]  ;;  %v284_v23 = vld [vmem:[%s796_s22 + $0xc0] sm:$0xff]  ;;  %v283_v26 = vld [vmem:[%s796_s22 + $0xb8] sm:$0xff] }
  0x19   : > { %677 = vmatpush.xpose.msk.msra.mxu2 %vm311_vm0, %v305_v6  ;;  %v298_v28 = vld [vmem:[%s796_s22 + $0x130] sm:$0xff]  ;;  %v297_v32 = vld [vmem:[%s796_s22 + $0x128] sm:$0xff]  ;;  %v296_v35 = vld [vmem:[%s796_s22 + $0x120] sm:$0xff] }
  0x1a   : > { %643 = vmatpush.xpose.msk.msra.mxu0 %vm311_vm0, %v273_v7  ;;  %v266_v29 = vld [vmem:[%s796_s22 + $0x30] sm:$0xff]  ;;  %v265_v33 = vld [vmem:[%s796_s22 + $0x28] sm:$0xff]  ;;  %v264_v36 = vld [vmem:[%s796_s22 + $0x20] sm:$0xff] }
  0x1b   : > { %660 = vmatpush.xpose.msk.msra.mxu1 %vm311_vm0, %v289_v8  ;;  %v282_v31 = vld [vmem:[%s796_s22 + $0xb0] sm:$0xff]  ;;  %v281_v34 = vld [vmem:[%s796_s22 + $0xa8] sm:$0xff]  ;;  %v280_v37 = vld [vmem:[%s796_s22 + $0xa0] sm:$0xff] }
  0x1c   : > { %v295_v38 = vld [vmem:[%s796_s22 + $0x118] sm:$0xff]  ;;  %v294_v41 = vld [vmem:[%s796_s22 + $0x110] sm:$0xff]  ;;  %v293_v44 = vld [vmem:[%s796_s22 + $0x108] sm:$0xff] }
  0x1d   : > { %678 = vmatpush.xpose.msk.msra.mxu2 %vm311_vm0, %v304_v9  ;;  %v263_v39 = vld [vmem:[%s796_s22 + $0x18] sm:$0xff]  ;;  %v262_v42 = vld [vmem:[%s796_s22 + $0x10] sm:$0xff]  ;;  %v261_v45 = vld [vmem:[%s796_s22 + $0x8] sm:$0xff] }
  0x1e   : > { %644 = vmatpush.xpose.msk.msra.mxu0 %vm311_vm0, %v272_v10  ;;  %v279_v40 = vld [vmem:[%s796_s22 + $0x98] sm:$0xff]  ;;  %v278_v43 = vld [vmem:[%s796_s22 + $0x90] sm:$0xff]  ;;  %v277_v46 = vld [vmem:[%s796_s22 + $0x88] sm:$0xff] }
  0x1f   : > { %661 = vmatpush.xpose.msk.msra.mxu1 %vm311_vm0, %v288_v11  ;;  %v292_v47 = vld [vmem:[%s796_s22 + $0x100] sm:$0xff] }
  0x20   : > { %v260_v48 = vld [vmem:[%s796_s22] sm:$0xff] }
  0x21   : > { %679 = vmatpush.xpose.msk.msra.mxu2 %vm311_vm0, %v303_v12  ;;  %v276_v49 = vld [vmem:[%s796_s22 + $0x80] sm:$0xff] }
  0x22   : > { %645 = vmatpush.xpose.msk.msra.mxu0 %vm311_vm0, %v271_v13 }
  0x23   : > { %662 = vmatpush.xpose.msk.msra.mxu1 %vm311_vm0, %v287_v14 }
  0x25   : > { %680 = vmatpush.xpose.msk.msra.mxu2 %vm311_vm0, %v302_v15 }
  0x26   : > { %646 = vmatpush.xpose.msk.msra.mxu0 %vm311_vm0, %v270_v16 }
  0x27   : > { %663 = vmatpush.xpose.msk.msra.mxu1 %vm311_vm0, %v286_v17 }
  0x29   : > { %681 = vmatpush.xpose.msk.msra.mxu2 %vm311_vm0, %v301_v18 }
  0x2a   : > { %647 = vmatpush.xpose.msk.msra.mxu0 %vm311_vm0, %v269_v19 }
  0x2b   : > { %664 = vmatpush.xpose.msk.msra.mxu1 %vm311_vm0, %v285_v20 }
  0x2d   : > { %682 = vmatpush.xpose.msk.msra.mxu2 %vm311_vm0, %v300_v21 }
  0x2e   : > { %648 = vmatpush.xpose.msk.msra.mxu0 %vm311_vm0, %v268_v22 }
  0x2f   : > { %665 = vmatpush.xpose.msk.msra.mxu1 %vm311_vm0, %v284_v23 }
  0x31   : > { %683 = vmatpush.xpose.msk.msra.mxu2 %vm311_vm0, %v299_v24 }
  0x32   : > { %649 = vmatpush.xpose.msk.msra.mxu0 %vm311_vm0, %v267_v25 }
  0x33   : > { %666 = vmatpush.xpose.msk.msra.mxu1 %vm311_vm0, %v283_v26 }
  0x35   : > { %684 = vmatpush.xpose.msk.msra.mxu2 %vm311_vm0, %v298_v28 }
  0x36   : > { %650 = vmatpush.xpose.msk.msra.mxu0 %vm311_vm0, %v266_v29 }
  0x37   : > { %667 = vmatpush.xpose.msk.msra.mxu1 %vm311_vm0, %v282_v31 }
  0x39   : > { %685 = vmatpush.xpose.msk.msra.mxu2 %vm311_vm0, %v297_v32 }
  0x3a   : > { %651 = vmatpush.xpose.msk.msra.mxu0 %vm311_vm0, %v265_v33 }
  0x3b   : > { %668 = vmatpush.xpose.msk.msra.mxu1 %vm311_vm0, %v281_v34 }
  0x3d   : > { %686 = vmatpush.xpose.msk.msra.mxu2 %vm311_vm0, %v296_v35 }
  0x3e   : > { %652 = vmatpush.xpose.msk.msra.mxu0 %vm311_vm0, %v264_v36 }
  0x3f   : > { %669 = vmatpush.xpose.msk.msra.mxu1 %vm311_vm0, %v280_v37 }
  0x41   : > { %687 = vmatpush.xpose.msk.msra.mxu2 %vm311_vm0, %v295_v38 }
  0x42   : > { %653 = vmatpush.xpose.msk.msra.mxu0 %vm311_vm0, %v263_v39 }
  0x43   : > { %670 = vmatpush.xpose.msk.msra.mxu1 %vm311_vm0, %v279_v40 }
  0x45   : > { %688 = vmatpush.xpose.msk.msra.mxu2 %vm311_vm0, %v294_v41 }
  0x46   : > { %654 = vmatpush.xpose.msk.msra.mxu0 %vm311_vm0, %v262_v42 }
  0x47   : > { %671 = vmatpush.xpose.msk.msra.mxu1 %vm311_vm0, %v278_v43 }
  0x49   : > { %689 = vmatpush.xpose.msk.msra.mxu2 %vm311_vm0, %v293_v44 }
  0x4a   : > { %655 = vmatpush.xpose.msk.msra.mxu0 %vm311_vm0, %v261_v45 }
  0x4b   : > { %672 = vmatpush.xpose.msk.msra.mxu1 %vm311_vm0, %v277_v46 }
  0x4d   : > { %690 = vmatpush.xpose.msk.msra.mxu2 %vm311_vm0, %v292_v47 }
  0x4e   : > { %656 = vmatpush.xpose.msk.msra.mxu0 %vm311_vm0, %v260_v48 }
  0x4f   : > { %673 = vmatpush.xpose.msk.msra.mxu1 %vm311_vm0, %v276_v49 }
  0x50   : > { %691 = vmatmul.msk.f32.vlgmr.msra.gmra.mxu2 %vm311_vm0, %v259_v50 }
  0x51   : > { %657 = vmatmul.msk.f32.vlgmr.msra.gmra.mxu0 %vm311_vm0, %v259_v50 }
  0x52   : > { %674 = vmatmul.msk.f32.vlgmr.msra.gmra.mxu1 %vm311_vm0, %v259_v50 }
  0x80   : > { %v523_v54 = vpop.permute.xlu0 %522 }
  0xce   : > { %v476_v53 = vpop.f32.mrf.mxu0 }
  0xcf   : > { %v477_v55 = vadd.f32 %v476_v53, %v308_v51  ;;  %v496_v56 = vpop.f32.mrf.mxu1 }
  0xd0   : > { %v497_v57 = vadd.f32 %v496_v56, %v309_v52 }
  0xd1   : > { %v525_v58 = vadd.f32 %v523_v54, %v477_v55 }
  0xd2   : > { %v526_v60 = vadd.f32 %v523_v54, %v497_v57 }
  0xd3   : > { %528 = vst [vmem:[%s257_s8] sm:$0xff] %v525_v58  ;;  %v516_v61 = vpop.f32.mrf.mxu2 }
  0xd4   : > { %529 = vst [vmem:[%s257_s8 + $0x8] sm:$0xff] %v526_v60  ;;  %v517_v62 = vadd.f32 %v516_v61, %v310_v59 }
  0xd6   : > { %v527_v63 = vadd.f32 %v523_v54, %v517_v62 }
  0xd8   : > { %530 = vst [vmem:[%s257_s8 + $0x10] sm:$0xff] %v527_v63 }
  0xd9 PF: > { %s14_s17 = sadd.s32 1, %s744_s17   ;;  %s930_s15 = smov %s740_s16 }
  0xda   : > { %p11_p5 = scmp.ge.s32.totalorder %s14_s17, 4   ;;  %s931_s16 = smov %s933_s18 }
  0xdc   :  { %13 = sbr.rel (!%p11_p5) target bundleno = 2 (0x2), region = 69 }

// kernel: fno3d_forward.11
= control target key start
LH: loop header
LB: loop body
LE: loop exit
PB: predicated region body
PF: predicated region fallthrough
CT: control target
= control target key end

     0   :  { %s1007_s18 = smov 0   ;;  %s1009_s19 = smov 0   ;;  %s1355_s0 = inlined_call_operand.vmem [shape: f32[2,8,256], index: 0, kind: input, shape index: {}]   ;;  %s1356_s1 = inlined_call_operand.vmem [shape: f32[2,8,256], index: 1, kind: input, shape index: {}]   ;;  %s1357_s2 = inlined_call_operand.vmem [shape: f32[8,8,256], index: 2, kind: input, shape index: {}]   ;;  %s1358_s3 = inlined_call_operand.vmem [shape: f32[8,8,256], index: 3, kind: input, shape index: {}]   ;;  %s1359_s4 = inlined_call_operand.vmem [shape: f32[2,8,256], index: 4, kind: output, shape index: {0}]   ;;  %s1360_s5 = inlined_call_operand.vmem [shape: f32[2,8,256], index: 5, kind: output, shape index: {1}]  }
   0x1   :  { %s1011_s20 = smov 0  }
   0x2 LB: > { %s1023_s21 = sadd.s32 4294967295, %s975_s20   ;;  %s1026_s22 = sadd.s32 1, %s975_s20   ;;  %s975_s20 = sphi %s1011_s20, %s1365_s20   ;;  %s971_s19 = sphi %s1009_s19, %s1364_s19   ;;  %s967_s18 = sphi %s1007_s18, %s1363_s18  }
   0x3   : > { %s20_s23 = ssub.s32 %s975_s20, %s1026_s22  ;;  %s23_s24 = sadd.s32 1, %s971_s19 }
   0x4   : > { %p21_p0 = scmp.eq.s32.totalorder %s20_s23, 0  ;;  %p30_p1 = scmp.ne.s32.totalorder %s971_s19, %s967_s18 }
   0x5   : > { %p31_p2 = scmp.eq.s32.totalorder %s975_s20, 0  ;;  %p138_p3 = scmp.eq.s32.totalorder %s1023_s21, 1 }
   0x6   : > { %s1036_s25 = scalar_select %p21_p0, %s971_s19, %s23_s24  }
   0x7   : > { %p1038_p4 = por %p31_p2, %p30_p1  ;;  %p1042_p5 = por %p138_p3, %p30_p1 }
   0x8   : > { %p907_p6 = scmp.ge.s32.totalorder %s975_s20, 2 }
   0xa   : > { %186 = sbr.rel (%p907_p6) target bundleno = 51 (0x33), region = 16 }
   0xf   : > { %189 = sbr.rel (!%p1038_p4) target bundleno = 21 (0x15), region = 20  ;;  %s191_s28 = sand.u32 (%p1038_p4), 1, %s971_s19  }
  0x10   : > { %s909_s29 = sshll.u32 (%p1038_p4), %s975_s20, 3  ;;  %s908_s30 = sshll.u32 (%p1038_p4), %s191_s28, 4 }
  0x11   : > { %s195_s8 = scalar_lea.vmem (%p1038_p4), %s1355_s0, %s909_s29  ;;  %s193_s9 = scalar_lea.vmem (%p1038_p4), [#allocation2], %s908_s30 }
  0x12   : > { %v226_v0 = vld [vmem:[%s195_s8] sm:$0xff] (%p1038_p4)  ;;  %v228_v1 = vld [vmem:[%s195_s8 + $0x10] sm:$0xff] (%p1038_p4) }
  0x13   : > { %227 = vst [vmem:[%s193_s9] sm:$0xff] (%p1038_p4), %v226_v0 }
  0x14   : > { %229 = vst [vmem:[%s193_s9 + $0x8] sm:$0xff] %v228_v1 }
  0x15 PF: > { %235 = sbr.rel (!%p1038_p4) target bundleno = 27 (0x1b), region = 58  ;;  %s237_s10 = sand.u32 (%p1038_p4), 1, %s971_s19  }
  0x16   : > { %s911_s11 = sshll.u32 (%p1038_p4), %s975_s20, 3  ;;  %s910_s12 = sshll.u32 (%p1038_p4), %s237_s10, 4 }
  0x17   : > { %s241_s15 = scalar_lea.vmem (%p1038_p4), %s1356_s1, %s911_s11  ;;  %s239_s16 = scalar_lea.vmem (%p1038_p4), [#allocation3], %s910_s12 }
  0x18   : > { %v272_v2 = vld [vmem:[%s241_s15] sm:$0xff] (%p1038_p4)  ;;  %v274_v3 = vld [vmem:[%s241_s15 + $0x10] sm:$0xff] (%p1038_p4) }
  0x19   : > { %273 = vst [vmem:[%s239_s16] sm:$0xff] (%p1038_p4), %v272_v2 }
  0x1a   : > { %275 = vst [vmem:[%s239_s16 + $0x8] sm:$0xff] %v274_v3 }
  0x1b PF: > { %281 = sbr.rel (!%p1038_p4) target bundleno = 39 (0x27), region = 96  ;;  %s283_s17 = sand.u32 (%p1038_p4), 1, %s971_s19  }
  0x1c   : > { %s913_s23 = sshll.u32 (%p1038_p4), %s975_s20, 3  ;;  %s912_s24 = sshll.u32 (%p1038_p4), %s283_s17, 6 }
  0x1d   : > { %s287_s30 = scalar_lea.vmem (%p1038_p4), %s1357_s2, %s913_s23  ;;  %s285_s6 = scalar_lea.vmem (%p1038_p4), [#allocation4], %s912_s24 }
  0x1e   : > { %v330_v4 = vld [vmem:[%s287_s30] sm:$0xff] (%p1038_p4)  ;;  %v332_v5 = vld [vmem:[%s287_s30 + $0x10] sm:$0xff] (%p1038_p4) }
  0x1f   : > { %v334_v6 = vld [vmem:[%s287_s30 + $0x20] sm:$0xff] (%p1038_p4)  ;;  %331 = vst [vmem:[%s285_s6] sm:$0xff] (%p1038_p4), %v330_v4  ;;  %v336_v7 = vld [vmem:[%s287_s30 + $0x30] sm:$0xff] (%p1038_p4) }
  0x20   : > { %333 = vst [vmem:[%s285_s6 + $0x8] sm:$0xff] %v332_v5  ;;  %v338_v8 = vld [vmem:[%s287_s30 + $0x40] sm:$0xff]  ;;  %v340_v9 = vld [vmem:[%s287_s30 + $0x50] sm:$0xff] }
  0x21   : > { %335 = vst [vmem:[%s285_s6 + $0x10] sm:$0xff] %v334_v6  ;;  %v342_v10 = vld [vmem:[%s287_s30 + $0x60] sm:$0xff]  ;;  %v344_v11 = vld [vmem:[%s287_s30 + $0x70] sm:$0xff] }
  0x22   : > { %337 = vst [vmem:[%s285_s6 + $0x18] sm:$0xff] %v336_v7 }
  0x23   : > { %339 = vst [vmem:[%s285_s6 + $0x20] sm:$0xff] %v338_v8 }
  0x24   : > { %341 = vst [vmem:[%s285_s6 + $0x28] sm:$0xff] %v340_v9 }
  0x25   : > { %343 = vst [vmem:[%s285_s6 + $0x30] sm:$0xff] %v342_v10 }
  0x26   : > { %345 = vst [vmem:[%s285_s6 + $0x38] sm:$0xff] %v344_v11 }
  0x27 PF: > { %351 = sbr.rel (!%p1038_p4) target bundleno = 51 (0x33), region = 134  ;;  %s353_s7 = sand.u32 (%p1038_p4), 1, %s971_s19  }
  0x28   : > { %s915_s8 = sshll.u32 (%p1038_p4), %s975_s20, 3  ;;  %s914_s9 = sshll.u32 (%p1038_p4), %s353_s7, 6 }
  0x29   : > { %s357_s12 = scalar_lea.vmem (%p1038_p4), %s1358_s3, %s915_s8  ;;  %s355_s13 = scalar_lea.vmem (%p1038_p4), [#allocation5], %s914_s9 }
  0x2a   : > { %v400_v12 = vld [vmem:[%s357_s12] sm:$0xff] (%p1038_p4)  ;;  %v402_v13 = vld [vmem:[%s357_s12 + $0x10] sm:$0xff] (%p1038_p4) }
  0x2b   : > { %v404_v14 = vld [vmem:[%s357_s12 + $0x20] sm:$0xff] (%p1038_p4)  ;;  %401 = vst [vmem:[%s355_s13] sm:$0xff] (%p1038_p4), %v400_v12  ;;  %v406_v15 = vld [vmem:[%s357_s12 + $0x30] sm:$0xff] (%p1038_p4) }
  0x2c   : > { %403 = vst [vmem:[%s355_s13 + $0x8] sm:$0xff] %v402_v13  ;;  %v408_v16 = vld [vmem:[%s357_s12 + $0x40] sm:$0xff]  ;;  %v410_v17 = vld [vmem:[%s357_s12 + $0x50] sm:$0xff] }
  0x2d   : > { %405 = vst [vmem:[%s355_s13 + $0x10] sm:$0xff] %v404_v14  ;;  %v412_v18 = vld [vmem:[%s357_s12 + $0x60] sm:$0xff]  ;;  %v414_v19 = vld [vmem:[%s357_s12 + $0x70] sm:$0xff] }
  0x2e   : > { %407 = vst [vmem:[%s355_s13 + $0x18] sm:$0xff] %v406_v15 }
  0x2f   : > { %409 = vst [vmem:[%s355_s13 + $0x20] sm:$0xff] %v408_v16 }
  0x30   : > { %411 = vst [vmem:[%s355_s13 + $0x28] sm:$0xff] %v410_v17 }
  0x31   : > { %413 = vst [vmem:[%s355_s13 + $0x30] sm:$0xff] %v412_v18 }
  0x32   : > { %415 = vst [vmem:[%s355_s13 + $0x38] sm:$0xff] %v414_v19 }
  0x33 PF: > { %p916_p7 = scmp.ge.s32.totalorder %s975_s20, 1  ;;  %p420_p8 = scmp.lt.s32.totalorder %s975_s20, 3 }
  0x35   : > { %p421_p9 = pnand %p916_p7, %p420_p8 }
  0x36   : > { %s427_s26 = sand.u32 (!%p421_p9), 1, %s967_s18  }
  0x37   : > { %424 = sbr.rel (%p421_p9) target bundleno = 122 (0x7a), region = 172  ;;  %s1078_s14 = sshll.u32 (!%p421_p9), %s427_s26, 4 }
  0x38   : > { %s919_s15 = sshll.u32 (!%p421_p9), %s427_s26, 6  ;;  %s429_s16 = scalar_lea.vmem (!%p421_p9), [#allocation2], %s1078_s14 }
  0x39   : > { %s436_s17 = scalar_lea.vmem (!%p421_p9), [#allocation3], %s1078_s14  ;;  %s1090_s20 = scalar_lea.vmem (!%p421_p9), [#allocation4], %s919_s15 }
  0x3a   : > { %s1100_s18 = scalar_lea.vmem (!%p421_p9), [#allocation5], %s919_s15  ;;  %s1291_s23 = scalar_lea.vmem (!%p421_p9), [#allocation6], %s1078_s14 }
  0x3b   : > { %s489_s24 = scalar_lea.vmem (!%p421_p9), [#allocation7], %s1078_s14 }
  0x3c   : > { %v1081_v20 = vld [vmem:[%s429_s16] sm:$0xff]  ;;  %v1086_v22 = vld [vmem:[%s429_s16 + $0x8] sm:$0xff]  ;;  %s925_s28 = sshll.u32 (%p1042_p5), %s1023_s21, 3 }
  0x3d   : > { %v1084_v21 = vld [vmem:[%s436_s17] sm:$0xff]  ;;  %v1088_v23 = vld [vmem:[%s436_s17 + $0x8] sm:$0xff]  ;;  %v510_v25 = vperm.slane %v1081_v20, 0  ;;  %v530_v28 = vperm.slane %v1081_v20, 1  ;;  %v511_v32 = vperm.slane %v1086_v22, 0  ;;  %v531_v38 = vperm.slane %v1086_v22, 1  ;;  %s686_s6 = scalar_lea.vmem (%p1042_p5), %s1359_s4, %s925_s28 }
  0x3e   : > { %v494_v24 = vld [vmem:[%s1090_s20] sm:$0xff]  ;;  %v1095_v26 = vld [vmem:[%s1090_s20 + $0x8] sm:$0xff]  ;;  %v516_v27 = vperm.slane %v1084_v21, 0  ;;  %v536_v30 = vperm.slane %v1084_v21, 1  ;;  %v517_v33 = vperm.slane %v1088_v23, 0  ;;  %v1107_v36 = vld [vmem:[%s1090_s20 + $0x10] sm:$0xff] }
  0x3f   : > { %v512_v29 = vmul.f32 %v510_v25, %v494_v24  ;;  %v502_v31 = vld [vmem:[%s1100_s18] sm:$0xff]  ;;  %v532_v35 = vmul.f32 %v530_v28, %v1095_v26  ;;  %v503_v37 = vld [vmem:[%s1100_s18 + $0x8] sm:$0xff]  ;;  %v550_v41 = vperm.slane %v1081_v20, 2  ;;  %v556_v42 = vperm.slane %v1084_v21, 2  ;;  %v1121_v49 = vld [vmem:[%s1090_s20 + $0x18] sm:$0xff] }
  0x40   : > { %v518_v34 = vmul.f32 %v516_v27, %v502_v31  ;;  %v538_v40 = vmul.f32 %v536_v30, %v503_v37  ;;  %v513_v43 = vmul.f32 %v511_v32, %v494_v24  ;;  %v519_v44 = vmul.f32 %v517_v33, %v502_v31  ;;  %v1124_v50 = vld [vmem:[%s1100_s18 + $0x10] sm:$0xff]  ;;  %v1137_v61 = vld [vmem:[%s1100_s18 + $0x18] sm:$0xff]  ;;  %v1146_v2 = vld [vmem:[%s1090_s20 + $0x20] sm:$0xff] }
  0x41   : > { %v537_v46 = vperm.slane %v1088_v23, 1  ;;  %v552_v47 = vmul.f32 %v550_v41, %v1107_v36  ;;  %v570_v48 = vperm.slane %v1081_v20, 3  ;;  %v533_v51 = vmul.f32 %v531_v38, %v1095_v26  ;;  %v1159_v11 = vld [vmem:[%s1090_s20 + $0x28] sm:$0xff] }
  0x42   : > { %v520_v39 = vsub.f32 %v512_v29, %v518_v34  ;;  %v576_v52 = vperm.slane %v1084_v21, 3  ;;  %v526_v53 = vmul.f32 %v516_v27, %v494_v24  ;;  %v551_v55 = vperm.slane %v1086_v22, 2 }
  0x43   : > { %v558_v56 = vmul.f32 %v556_v42, %v1124_v50  ;;  %v522_v57 = vmul.f32 %v510_v25, %v502_v31  ;;  %v1132_v58 = vmul.f32 %v511_v32, %v502_v31  ;;  %v1134_v59 = vmul.f32 %v517_v33, %v494_v24  ;;  %v1172_v24 = vld [vmem:[%s1100_s18 + $0x20] sm:$0xff]  ;;  %v1180_v31 = vld [vmem:[%s1090_s20 + $0x30] sm:$0xff] }
  0x44   : > { %v534_v45 = vadd.f32 %v532_v35, %v520_v39  ;;  %v521_v60 = vsub.f32 %v513_v43, %v519_v44  ;;  %v572_v63 = vmul.f32 %v570_v48, %v1121_v49  ;;  %v590_v0 = vperm.slane %v1081_v20, 4 }
  0x45   : > { %v539_v1 = vmul.f32 %v537_v46, %v503_v37  ;;  %v578_v3 = vmul.f32 %v576_v52, %v1137_v61  ;;  %v596_v4 = vperm.slane %v1084_v21, 4  ;;  %v610_v5 = vperm.slane %v1081_v20, 5 }
  0x46   : > { %v540_v54 = vsub.f32 %v534_v45, %v538_v40  ;;  %v535_v6 = vadd.f32 %v533_v51, %v521_v60  ;;  %v553_v8 = vmul.f32 %v551_v55, %v1107_v36  ;;  %v557_v9 = vperm.slane %v1088_v23, 2 }
  0x47   : > { %v571_v10 = vperm.slane %v1086_v22, 3  ;;  %v542_v12 = vmul.f32 %v530_v28, %v503_v37  ;;  %v1161_v13 = vmul.f32 %v531_v38, %v503_v37  ;;  %v577_v15 = vperm.slane %v1088_v23, 3  ;;  %v1190_v37 = vld [vmem:[%s1100_s18 + $0x28] sm:$0xff] }
  0x48   : > { %v554_v62 = vadd.f32 %v552_v47, %v540_v54  ;;  %v541_v14 = vsub.f32 %v535_v6, %v539_v1  ;;  %v592_v17 = vmul.f32 %v590_v0, %v1146_v2  ;;  %v616_v18 = vperm.slane %v1084_v21, 5  ;;  %v1202_v54 = vld [vmem:[%s1090_s20 + $0x38] sm:$0xff]  ;;  %v1212_v1 = vld [vmem:[%s1100_s18 + $0x30] sm:$0xff] }
  0x49   : > { %v559_v19 = vmul.f32 %v557_v9, %v1124_v50  ;;  %v630_v25 = vperm.slane %v1081_v20, 6  ;;  %v573_v28 = vmul.f32 %v571_v10, %v1121_v49  ;;  %v591_v29 = vperm.slane %v1086_v22, 4 }
  0x4a   : > { %v560_v7 = vsub.f32 %v554_v62, %v558_v56  ;;  %v555_v27 = vadd.f32 %v553_v8, %v541_v14  ;;  %v598_v33 = vmul.f32 %v596_v4, %v1172_v24  ;;  %v612_v34 = vmul.f32 %v610_v5, %v1159_v11 }
  0x4b   : > { %v636_v35 = vperm.slane %v1084_v21, 6  ;;  %v650_v38 = vperm.slane %v1081_v20, 7  ;;  %v579_v40 = vmul.f32 %v577_v15, %v1137_v61  ;;  %v597_v43 = vperm.slane %v1088_v23, 4 }
  0x4c   : > { %v574_v16 = vadd.f32 %v572_v63, %v560_v7  ;;  %v561_v39 = vsub.f32 %v555_v27, %v559_v19  ;;  %v618_v45 = vmul.f32 %v616_v18, %v1190_v37  ;;  %v656_v47 = vperm.slane %v1084_v21, 7 }
  0x4d   : > { %v528_v51 = vadd.f32 %v526_v53, %v522_v57  ;;  %v632_v56 = vmul.f32 %v630_v25, %v1180_v31  ;;  %v593_v62 = vmul.f32 %v591_v29, %v1146_v2  ;;  %v611_v63 = vperm.slane %v1086_v22, 5 }
  0x4e   : > { %v580_v32 = vsub.f32 %v574_v16, %v578_v3  ;;  %v575_v60 = vadd.f32 %v573_v28, %v561_v39  ;;  %v546_v53 = vmul.f32 %v536_v30, %v1095_v26  ;;  %v562_v57 = vmul.f32 %v550_v41, %v1124_v50 }
  0x4f   : > { %v544_v6 = vadd.f32 %v542_v12, %v528_v51  ;;  %v638_v7 = vmul.f32 %v636_v35, %v1212_v1  ;;  %v599_v14 = vmul.f32 %v597_v43, %v1172_v24  ;;  %v617_v16 = vperm.slane %v1088_v23, 5  ;;  %v1228_v12 = vld [vmem:[%s1100_s18 + $0x38] sm:$0xff] }
  0x50   : > { %v594_v44 = vadd.f32 %v592_v17, %v580_v32  ;;  %v581_v8 = vsub.f32 %v575_v60, %v579_v40  ;;  %v652_v30 = vmul.f32 %v650_v38, %v1202_v54  ;;  %v566_v41 = vmul.f32 %v556_v42, %v1107_v36 }
  0x51   : > { %v548_v19 = vadd.f32 %v546_v53, %v544_v6  ;;  %v658_v27 = vmul.f32 %v656_v47, %v1228_v12  ;;  %v613_v32 = vmul.f32 %v611_v63, %v1159_v11  ;;  %v637_v39 = vperm.slane %v1088_v23, 6 }
  0x52   : > { %v600_v3 = vsub.f32 %v594_v44, %v598_v33  ;;  %v595_v28 = vadd.f32 %v593_v62, %v581_v8  ;;  %v631_v33 = vperm.slane %v1086_v22, 6  ;;  %v582_v44 = vmul.f32 %v570_v48, %v1137_v61 }
  0x53   : > { %v564_v40 = vadd.f32 %v562_v57, %v548_v19  ;;  %v619_v51 = vmul.f32 %v617_v16, %v1190_v37  ;;  %v529_v60 = vadd.f32 %v1134_v59, %v1132_v58  ;;  %v547_v62 = vmul.f32 %v537_v46, %v1095_v26 }
  0x54   : > { %v614_v17 = vadd.f32 %v612_v34, %v600_v3  ;;  %v601_v42 = vsub.f32 %v595_v28, %v599_v14  ;;  %v651_v3 = vperm.slane %v1086_v22, 7  ;;  %v586_v48 = vmul.f32 %v576_v52, %v1121_v49 }
  0x55   : > { %v568_v6 = vadd.f32 %v566_v41, %v564_v40  ;;  %v633_v57 = vmul.f32 %v631_v33, %v1180_v31  ;;  %v545_v8 = vadd.f32 %v1161_v13, %v529_v60  ;;  %v563_v58 = vmul.f32 %v551_v55, %v1124_v50 }
  0x56   : > { %v620_v34 = vsub.f32 %v614_v17, %v618_v45  ;;  %v615_v53 = vadd.f32 %v613_v32, %v601_v42  ;;  %v657_v46 = vperm.slane %v1088_v23, 7  ;;  %v639_v14 = vmul.f32 %v637_v39, %v1212_v1 }
  0x57   : > { %v584_v59 = vadd.f32 %v582_v44, %v568_v6  ;;  %v549_v17 = vadd.f32 %v547_v62, %v545_v8  ;;  %v567_v13 = vmul.f32 %v557_v9, %v1107_v36  ;;  %v583_v28 = vmul.f32 %v571_v10, %v1137_v61 }
  0x58   : > { %v634_v45 = vadd.f32 %v632_v56, %v620_v34  ;;  %v602_v56 = vmul.f32 %v590_v0, %v1172_v24  ;;  %v621_v52 = vsub.f32 %v615_v53, %v619_v51  ;;  %v653_v0 = vmul.f32 %v651_v3, %v1202_v54 }
  0x59   : > { %v588_v55 = vadd.f32 %v586_v48, %v584_v59  ;;  %v565_v41 = vadd.f32 %v563_v58, %v549_v17  ;;  %v622_v36 = vmul.f32 %v610_v5, %v1190_v37  ;;  %v626_v10 = vmul.f32 %v616_v18, %v1159_v11 }
  0x5a   : > { %v640_v26 = vsub.f32 %v634_v45, %v638_v7  ;;  %v606_v7 = vmul.f32 %v596_v4, %v1146_v2  ;;  %v635_v19 = vadd.f32 %v633_v57, %v621_v52  ;;  %v587_v4 = vmul.f32 %v577_v15, %v1121_v49 }
  0x5b   : > { %v604_v34 = vadd.f32 %v602_v56, %v588_v55  ;;  %v569_v40 = vadd.f32 %v567_v13, %v565_v41  ;;  %v603_v44 = vmul.f32 %v591_v29, %v1172_v24  ;;  %v642_v49 = vmul.f32 %v630_v25, %v1212_v1 }
  0x5c   : > { %v654_v50 = vadd.f32 %v652_v30, %v640_v26  ;;  %v641_v9 = vsub.f32 %v635_v19, %v639_v14  ;;  %v659_v30 = vmul.f32 %v657_v46, %v1228_v12  ;;  %v607_v60 = vmul.f32 %v597_v43, %v1146_v2 }
  0x5d   : > { %v608_v61 = vadd.f32 %v606_v7, %v604_v34  ;;  %v585_v5 = vadd.f32 %v583_v28, %v569_v40  ;;  %v646_v18 = vmul.f32 %v636_v35, %v1180_v31  ;;  %v623_v24 = vmul.f32 %v611_v63, %v1190_v37 }
  0x5e   : > { %v660_v32 = vsub.f32 %v654_v50, %v658_v27  ;;  %v655_v27 = vadd.f32 %v653_v0, %v641_v9  ;;  %v662_v25 = vmul.f32 %v650_v38, %v1228_v12  ;;  %v627_v2 = vmul.f32 %v617_v16, %v1159_v11 }
  0x5f   : > { %v624_v42 = vadd.f32 %v622_v36, %v608_v61  ;;  %v589_v51 = vadd.f32 %v587_v4, %v585_v5  ;;  %v666_v35 = vmul.f32 %v656_v47, %v1202_v54  ;;  %v643_v37 = vmul.f32 %v631_v33, %v1212_v1 }
  0x60   : > { %670 = vst [vmem:[%s1291_s23] sm:$0xff] %v660_v32  ;;  %v661_v15 = vsub.f32 %v655_v27, %v659_v30  ;;  %v647_v20 = vmul.f32 %v637_v39, %v1180_v31  ;;  %v663_v11 = vmul.f32 %v651_v3, %v1228_v12  ;;  %v667_v21 = vmul.f32 %v657_v46, %v1202_v54 }
  0x61   : > { %v628_v62 = vadd.f32 %v626_v10, %v624_v42  ;;  %v605_v45 = vadd.f32 %v603_v44, %v589_v51 }
  0x62   : > { %671 = vst [vmem:[%s1291_s23 + $0x8] sm:$0xff] %v661_v15 }
  0x63   : > { %v644_v29 = vadd.f32 %v642_v49, %v628_v62  ;;  %v609_v6 = vadd.f32 %v607_v60, %v605_v45 }
  0x65   : > { %v648_v43 = vadd.f32 %v646_v18, %v644_v29  ;;  %v625_v48 = vadd.f32 %v623_v24, %v609_v6 }
  0x67   : > { %v664_v63 = vadd.f32 %v662_v25, %v648_v43  ;;  %v629_v53 = vadd.f32 %v627_v2, %v625_v48  ;;  %v717_v22 = vld [vmem:[%s1291_s23] sm:$0xff] (%p1042_p5) }
  0x68   : > { %718 = vst [vmem:[%s686_s6] sm:$0xff] (%p1042_p5), %v717_v22 }
  0x69   : > { %v668_v38 = vadd.f32 %v666_v35, %v664_v63  ;;  %v645_v57 = vadd.f32 %v643_v37, %v629_v53  ;;  %v719_v23 = vld [vmem:[%s1291_s23 + $0x8] sm:$0xff] (%p1042_p5) }
  0x6a   : > { %720 = vst [vmem:[%s686_s6 + $0x10] sm:$0xff] (%p1042_p5), %v719_v23 }
  0x6b   : > { %672 = vst [vmem:[%s489_s24] sm:$0xff] %v668_v38  ;;  %v649_v16 = vadd.f32 %v647_v20, %v645_v57 }
  0x6d   : > { %v665_v47 = vadd.f32 %v663_v11, %v649_v16  ;;  %684 = sbr.rel (!%p1042_p5) target bundleno = 114 (0x72), region = 192 }
  0x6f   : > { %v669_v8 = vadd.f32 %v667_v21, %v665_v47 }
  0x71   : > { %673 = vst [vmem:[%s489_s24 + $0x8] sm:$0xff] %v669_v8 }
  0x72 PF: > { %726 = sbr.rel (!%p1042_p5) target bundleno = 122 (0x7a), region = 230  ;;  %s926_s7 = sshll.u32 (%p1042_p5), %s1023_s21, 3  ;;  %v759_v31 = vld [vmem:[%s489_s24] sm:$0xff] (%p1042_p5) }
  0x73   : > { %s728_s10 = scalar_lea.vmem (%p1042_p5), %s1360_s5, %s926_s7 }
  0x74   : > { %760 = vst [vmem:[%s728_s10] sm:$0xff] (%p1042_p5), %v759_v31 }
  0x78   : > { %v761_v54 = vld [vmem:[%s489_s24 + $0x8] sm:$0xff] }
  0x79   : > { %762 = vst [vmem:[%s728_s10 + $0x10] sm:$0xff] %v761_v54 }
  0x7a PF: > { %p13_p10 = scmp.ge.s32.totalorder %s1026_s22, 4   ;;  %s1363_s18 = smov %s971_s19 }
  0x7b   : > { %s1364_s19 = smov %s1036_s25  ;;  %s1365_s20 = smov %s1026_s22 }
  0x7c   :  { %15 = sbr.rel (!%p13_p10) target bundleno = 2 (0x2), region = 335 }

// kernel: reverse.8
= control target key start
LH: loop header
LB: loop body
LE: loop exit
PB: predicated region body
PF: predicated region fallthrough
CT: control target
= control target key end

     0   :  { %s968_s0 = inlined_call_operand.vmem [shape: f32[2,8,8,8,5], index: 0, kind: input, shape index: {}]   ;;  %s969_s1 = inlined_call_operand.vmem [shape: f32[2,8,8,8,5], index: 1, kind: output, shape index: {}]  }
   0x1   :  { %v320_v0 = vld [vmem:[%s968_s0 + $0x20] sm:$0xff]  ;;  %v323_v2 = vld [vmem:[%s968_s0 + $0x48] sm:$0xff]  ;;  %v327_v4 = vld [vmem:[%s968_s0 + $0x70] sm:$0xff] }
   0x2   :  { %v321_v1 = vld [vmem:[%s968_s0 + $0x160] sm:$0xff]  ;;  %4 = vst [vmem:[%s969_s1] sm:$0xff] %v320_v0  ;;  %v325_v3 = vld [vmem:[%s968_s0 + $0x188] sm:$0xff]  ;;  %v329_v5 = vld [vmem:[%s968_s0 + $0x1b0] sm:$0xff] }
   0x3   :  { %322 = vst [vmem:[%s969_s1 + $0x140] sm:$0xff] %v321_v1  ;;  %v331_v6 = vld [vmem:[%s968_s0 + $0x98] sm:$0xff]  ;;  %v335_v8 = vld [vmem:[%s968_s0 + $0xc0] sm:$0xff]  ;;  %v339_v10 = vld [vmem:[%s968_s0 + $0xe8] sm:$0xff] }
   0x4   :  { %324 = vst [vmem:[%s969_s1 + $0x28] sm:$0xff] %v323_v2  ;;  %v333_v7 = vld [vmem:[%s968_s0 + $0x1d8] sm:$0xff]  ;;  %v337_v9 = vld [vmem:[%s968_s0 + $0x200] sm:$0xff]  ;;  %v341_v11 = vld [vmem:[%s968_s0 + $0x228] sm:$0xff] }
   0x5   :  { %326 = vst [vmem:[%s969_s1 + $0x168] sm:$0xff] %v325_v3  ;;  %v343_v12 = vld [vmem:[%s968_s0 + $0x110] sm:$0xff]  ;;  %v347_v14 = vld [vmem:[%s968_s0 + $0x138] sm:$0xff]  ;;  %v355_v18 = vld [vmem:[%s968_s0 + $0x40] sm:$0xff] }
   0x6   :  { %328 = vst [vmem:[%s969_s1 + $0x50] sm:$0xff] %v327_v4  ;;  %v345_v13 = vld [vmem:[%s968_s0 + $0x250] sm:$0xff]  ;;  %v349_v15 = vld [vmem:[%s968_s0 + $0x278] sm:$0xff]  ;;  %v357_v19 = vld [vmem:[%s968_s0 + $0x180] sm:$0xff] }
   0x7   :  { %330 = vst [vmem:[%s969_s1 + $0x190] sm:$0xff] %v329_v5  ;;  %v351_v16 = vld [vmem:[%s968_s0 + $0x18] sm:$0xff]  ;;  %v359_v20 = vld [vmem:[%s968_s0 + $0x68] sm:$0xff]  ;;  %v363_v22 = vld [vmem:[%s968_s0 + $0x90] sm:$0xff] }
   0x8   :  { %332 = vst [vmem:[%s969_s1 + $0x78] sm:$0xff] %v331_v6  ;;  %v353_v17 = vld [vmem:[%s968_s0 + $0x158] sm:$0xff]  ;;  %v361_v21 = vld [vmem:[%s968_s0 + $0x1a8] sm:$0xff]  ;;  %v365_v23 = vld [vmem:[%s968_s0 + $0x1d0] sm:$0xff] }
   0x9   :  { %334 = vst [vmem:[%s969_s1 + $0x1b8] sm:$0xff] %v333_v7  ;;  %v367_v24 = vld [vmem:[%s968_s0 + $0xb8] sm:$0xff]  ;;  %v371_v26 = vld [vmem:[%s968_s0 + $0xe0] sm:$0xff]  ;;  %v375_v28 = vld [vmem:[%s968_s0 + $0x108] sm:$0xff] }
   0xa   :  { %336 = vst [vmem:[%s969_s1 + $0xa0] sm:$0xff] %v335_v8  ;;  %v369_v25 = vld [vmem:[%s968_s0 + $0x1f8] sm:$0xff]  ;;  %v373_v27 = vld [vmem:[%s968_s0 + $0x220] sm:$0xff]  ;;  %v377_v29 = vld [vmem:[%s968_s0 + $0x248] sm:$0xff] }
   0xb   :  { %338 = vst [vmem:[%s969_s1 + $0x1e0] sm:$0xff] %v337_v9  ;;  %v379_v30 = vld [vmem:[%s968_s0 + $0x130] sm:$0xff]  ;;  %v387_v34 = vld [vmem:[%s968_s0 + $0x38] sm:$0xff]  ;;  %v391_v36 = vld [vmem:[%s968_s0 + $0x60] sm:$0xff] }
   0xc   :  { %340 = vst [vmem:[%s969_s1 + $0xc8] sm:$0xff] %v339_v10  ;;  %v381_v31 = vld [vmem:[%s968_s0 + $0x270] sm:$0xff]  ;;  %v389_v35 = vld [vmem:[%s968_s0 + $0x178] sm:$0xff]  ;;  %v393_v37 = vld [vmem:[%s968_s0 + $0x1a0] sm:$0xff] }
   0xd   :  { %342 = vst [vmem:[%s969_s1 + $0x208] sm:$0xff] %v341_v11  ;;  %v383_v32 = vld [vmem:[%s968_s0 + $0x10] sm:$0xff]  ;;  %v395_v38 = vld [vmem:[%s968_s0 + $0x88] sm:$0xff]  ;;  %v403_v42 = vld [vmem:[%s968_s0 + $0xd8] sm:$0xff] }
   0xe   :  { %344 = vst [vmem:[%s969_s1 + $0xf0] sm:$0xff] %v343_v12  ;;  %v385_v33 = vld [vmem:[%s968_s0 + $0x150] sm:$0xff]  ;;  %v397_v39 = vld [vmem:[%s968_s0 + $0x1c8] sm:$0xff]  ;;  %v405_v43 = vld [vmem:[%s968_s0 + $0x218] sm:$0xff] }
   0xf   :  { %346 = vst [vmem:[%s969_s1 + $0x230] sm:$0xff] %v345_v13  ;;  %v399_v40 = vld [vmem:[%s968_s0 + $0xb0] sm:$0xff]  ;;  %v407_v44 = vld [vmem:[%s968_s0 + $0x100] sm:$0xff]  ;;  %v411_v46 = vld [vmem:[%s968_s0 + $0x128] sm:$0xff] }
  0x10   :  { %348 = vst [vmem:[%s969_s1 + $0x118] sm:$0xff] %v347_v14  ;;  %v401_v41 = vld [vmem:[%s968_s0 + $0x1f0] sm:$0xff]  ;;  %v409_v45 = vld [vmem:[%s968_s0 + $0x240] sm:$0xff]  ;;  %v413_v47 = vld [vmem:[%s968_s0 + $0x268] sm:$0xff] }
  0x11   :  { %350 = vst [vmem:[%s969_s1 + $0x258] sm:$0xff] %v349_v15  ;;  %v415_v48 = vld [vmem:[%s968_s0 + $0x8] sm:$0xff]  ;;  %v419_v50 = vld [vmem:[%s968_s0 + $0x30] sm:$0xff]  ;;  %v423_v52 = vld [vmem:[%s968_s0 + $0x58] sm:$0xff] }
  0x12   :  { %352 = vst [vmem:[%s969_s1 + $0x8] sm:$0xff] %v351_v16  ;;  %v417_v49 = vld [vmem:[%s968_s0 + $0x148] sm:$0xff]  ;;  %v421_v51 = vld [vmem:[%s968_s0 + $0x170] sm:$0xff]  ;;  %v425_v53 = vld [vmem:[%s968_s0 + $0x198] sm:$0xff] }
  0x13   :  { %354 = vst [vmem:[%s969_s1 + $0x148] sm:$0xff] %v353_v17  ;;  %v427_v54 = vld [vmem:[%s968_s0 + $0x80] sm:$0xff]  ;;  %v431_v56 = vld [vmem:[%s968_s0 + $0xa8] sm:$0xff]  ;;  %v435_v58 = vld [vmem:[%s968_s0 + $0xd0] sm:$0xff] }
  0x14   :  { %356 = vst [vmem:[%s969_s1 + $0x30] sm:$0xff] %v355_v18  ;;  %v429_v55 = vld [vmem:[%s968_s0 + $0x1c0] sm:$0xff]  ;;  %v433_v57 = vld [vmem:[%s968_s0 + $0x1e8] sm:$0xff]  ;;  %v437_v59 = vld [vmem:[%s968_s0 + $0x210] sm:$0xff] }
  0x15   :  { %358 = vst [vmem:[%s969_s1 + $0x170] sm:$0xff] %v357_v19  ;;  %v439_v60 = vld [vmem:[%s968_s0 + $0xf8] sm:$0xff]  ;;  %v443_v62 = vld [vmem:[%s968_s0 + $0x120] sm:$0xff]  ;;  %v450_v2 = vld [vmem:[%s968_s0 + $0x28] sm:$0xff] }
  0x16   :  { %360 = vst [vmem:[%s969_s1 + $0x58] sm:$0xff] %v359_v20  ;;  %v441_v61 = vld [vmem:[%s968_s0 + $0x238] sm:$0xff]  ;;  %v445_v63 = vld [vmem:[%s968_s0 + $0x260] sm:$0xff]  ;;  %v452_v3 = vld [vmem:[%s968_s0 + $0x168] sm:$0xff] }
  0x17   :  { %362 = vst [vmem:[%s969_s1 + $0x198] sm:$0xff] %v361_v21  ;;  %v257_v0 = vld [vmem:[%s968_s0] sm:$0xff]  ;;  %v454_v4 = vld [vmem:[%s968_s0 + $0x50] sm:$0xff]  ;;  %v458_v6 = vld [vmem:[%s968_s0 + $0x78] sm:$0xff] }
  0x18   :  { %364 = vst [vmem:[%s969_s1 + $0x80] sm:$0xff] %v363_v22  ;;  %v448_v1 = vld [vmem:[%s968_s0 + $0x140] sm:$0xff]  ;;  %v456_v5 = vld [vmem:[%s968_s0 + $0x190] sm:$0xff]  ;;  %v460_v7 = vld [vmem:[%s968_s0 + $0x1b8] sm:$0xff] }
  0x19   :  { %366 = vst [vmem:[%s969_s1 + $0x1c0] sm:$0xff] %v365_v23  ;;  %v462_v8 = vld [vmem:[%s968_s0 + $0xa0] sm:$0xff]  ;;  %v466_v10 = vld [vmem:[%s968_s0 + $0xc8] sm:$0xff]  ;;  %v470_v12 = vld [vmem:[%s968_s0 + $0xf0] sm:$0xff] }
  0x1a   :  { %368 = vst [vmem:[%s969_s1 + $0xa8] sm:$0xff] %v367_v24  ;;  %v464_v9 = vld [vmem:[%s968_s0 + $0x1e0] sm:$0xff]  ;;  %v468_v11 = vld [vmem:[%s968_s0 + $0x208] sm:$0xff]  ;;  %v472_v13 = vld [vmem:[%s968_s0 + $0x230] sm:$0xff] }
  0x1b   :  { %370 = vst [vmem:[%s969_s1 + $0x1e8] sm:$0xff] %v369_v25  ;;  %v474_v14 = vld [vmem:[%s968_s0 + $0x118] sm:$0xff] }
  0x1c   :  { %372 = vst [vmem:[%s969_s1 + $0xd0] sm:$0xff] %v371_v26  ;;  %v476_v15 = vld [vmem:[%s968_s0 + $0x258] sm:$0xff] }
  0x1d   :  { %374 = vst [vmem:[%s969_s1 + $0x210] sm:$0xff] %v373_v27 }
  0x1e   :  { %376 = vst [vmem:[%s969_s1 + $0xf8] sm:$0xff] %v375_v28 }
  0x1f   :  { %378 = vst [vmem:[%s969_s1 + $0x238] sm:$0xff] %v377_v29 }
  0x20   :  { %380 = vst [vmem:[%s969_s1 + $0x120] sm:$0xff] %v379_v30 }
  0x21   :  { %382 = vst [vmem:[%s969_s1 + $0x260] sm:$0xff] %v381_v31 }
  0x22   :  { %384 = vst [vmem:[%s969_s1 + $0x10] sm:$0xff] %v383_v32 }
  0x23   :  { %386 = vst [vmem:[%s969_s1 + $0x150] sm:$0xff] %v385_v33 }
  0x24   :  { %388 = vst [vmem:[%s969_s1 + $0x38] sm:$0xff] %v387_v34 }
  0x25   :  { %390 = vst [vmem:[%s969_s1 + $0x178] sm:$0xff] %v389_v35 }
  0x26   :  { %392 = vst [vmem:[%s969_s1 + $0x60] sm:$0xff] %v391_v36 }
  0x27   :  { %394 = vst [vmem:[%s969_s1 + $0x1a0] sm:$0xff] %v393_v37 }
  0x28   :  { %396 = vst [vmem:[%s969_s1 + $0x88] sm:$0xff] %v395_v38 }
  0x29   :  { %398 = vst [vmem:[%s969_s1 + $0x1c8] sm:$0xff] %v397_v39 }
  0x2a   :  { %400 = vst [vmem:[%s969_s1 + $0xb0] sm:$0xff] %v399_v40 }
  0x2b   :  { %402 = vst [vmem:[%s969_s1 + $0x1f0] sm:$0xff] %v401_v41 }
  0x2c   :  { %404 = vst [vmem:[%s969_s1 + $0xd8] sm:$0xff] %v403_v42 }
  0x2d   :  { %406 = vst [vmem:[%s969_s1 + $0x218] sm:$0xff] %v405_v43 }
  0x2e   :  { %408 = vst [vmem:[%s969_s1 + $0x100] sm:$0xff] %v407_v44 }
  0x2f   :  { %410 = vst [vmem:[%s969_s1 + $0x240] sm:$0xff] %v409_v45 }
  0x30   :  { %412 = vst [vmem:[%s969_s1 + $0x128] sm:$0xff] %v411_v46 }
  0x31   :  { %414 = vst [vmem:[%s969_s1 + $0x268] sm:$0xff] %v413_v47 }
  0x32   :  { %416 = vst [vmem:[%s969_s1 + $0x18] sm:$0xff] %v415_v48 }
  0x33   :  { %418 = vst [vmem:[%s969_s1 + $0x158] sm:$0xff] %v417_v49 }
  0x34   :  { %420 = vst [vmem:[%s969_s1 + $0x40] sm:$0xff] %v419_v50 }
  0x35   :  { %422 = vst [vmem:[%s969_s1 + $0x180] sm:$0xff] %v421_v51 }
  0x36   :  { %424 = vst [vmem:[%s969_s1 + $0x68] sm:$0xff] %v423_v52 }
  0x37   :  { %426 = vst [vmem:[%s969_s1 + $0x1a8] sm:$0xff] %v425_v53 }
  0x38   :  { %428 = vst [vmem:[%s969_s1 + $0x90] sm:$0xff] %v427_v54 }
  0x39   :  { %430 = vst [vmem:[%s969_s1 + $0x1d0] sm:$0xff] %v429_v55 }
  0x3a   :  { %432 = vst [vmem:[%s969_s1 + $0xb8] sm:$0xff] %v431_v56 }
  0x3b   :  { %434 = vst [vmem:[%s969_s1 + $0x1f8] sm:$0xff] %v433_v57 }
  0x3c   :  { %436 = vst [vmem:[%s969_s1 + $0xe0] sm:$0xff] %v435_v58 }
  0x3d   :  { %438 = vst [vmem:[%s969_s1 + $0x220] sm:$0xff] %v437_v59 }
  0x3e   :  { %440 = vst [vmem:[%s969_s1 + $0x108] sm:$0xff] %v439_v60 }
  0x3f   :  { %442 = vst [vmem:[%s969_s1 + $0x248] sm:$0xff] %v441_v61 }
  0x40   :  { %444 = vst [vmem:[%s969_s1 + $0x130] sm:$0xff] %v443_v62 }
  0x41   :  { %446 = vst [vmem:[%s969_s1 + $0x270] sm:$0xff] %v445_v63 }
  0x42   :  { %447 = vst [vmem:[%s969_s1 + $0x20] sm:$0xff] %v257_v0 }
  0x43   :  { %449 = vst [vmem:[%s969_s1 + $0x160] sm:$0xff] %v448_v1 }
  0x44   :  { %451 = vst [vmem:[%s969_s1 + $0x48] sm:$0xff] %v450_v2 }
  0x45   :  { %453 = vst [vmem:[%s969_s1 + $0x188] sm:$0xff] %v452_v3 }
  0x46   :  { %455 = vst [vmem:[%s969_s1 + $0x70] sm:$0xff] %v454_v4 }
  0x47   :  { %457 = vst [vmem:[%s969_s1 + $0x1b0] sm:$0xff] %v456_v5 }
  0x48   :  { %459 = vst [vmem:[%s969_s1 + $0x98] sm:$0xff] %v458_v6 }
  0x49   :  { %461 = vst [vmem:[%s969_s1 + $0x1d8] sm:$0xff] %v460_v7 }
  0x4a   :  { %463 = vst [vmem:[%s969_s1 + $0xc0] sm:$0xff] %v462_v8 }
  0x4b   :  { %465 = vst [vmem:[%s969_s1 + $0x200] sm:$0xff] %v464_v9 }
  0x4c   :  { %467 = vst [vmem:[%s969_s1 + $0xe8] sm:$0xff] %v466_v10 }
  0x4d   :  { %469 = vst [vmem:[%s969_s1 + $0x228] sm:$0xff] %v468_v11 }
  0x4e   :  { %471 = vst [vmem:[%s969_s1 + $0x110] sm:$0xff] %v470_v12 }
  0x4f   :  { %473 = vst [vmem:[%s969_s1 + $0x250] sm:$0xff] %v472_v13 }
  0x50   :  { %475 = vst [vmem:[%s969_s1 + $0x138] sm:$0xff] %v474_v14 }
  0x51   :  { %477 = vst [vmem:[%s969_s1 + $0x278] sm:$0xff] %v476_v15 }

// kernel: fno3d_forward.12
= control target key start
LH: loop header
LB: loop body
LE: loop exit
PB: predicated region body
PF: predicated region fallthrough
CT: control target
= control target key end

     0   :  { %s692_s15 = smov 0   ;;  %s694_s16 = smov 0   ;;  %s739_s0 = inlined_call_operand.vmem [shape: f32[2,8,768], index: 0, kind: input, shape index: {}]   ;;  %s740_s1 = inlined_call_operand.vmem [shape: f32[2,8,768], index: 1, kind: input, shape index: {}, may-alias: {1,4}]   ;;  %s741_s2 = inlined_call_operand.vmem [shape: f32[8,8], index: 2, kind: input, shape index: {}]   ;;  %s742_s3 = inlined_call_operand.vmem [shape: f32[8,1], index: 3, kind: input, shape index: {}]   ;;  %s743_s4 = inlined_call_operand.vmem [shape: f32[2,8,768], index: 4, kind: output, shape index: {}, may-alias: {1,4}]  }
   0x1   :  { %s696_s17 = smov 0  }
   0x2 LB: > { %s26_s18 = sadd.s32 1, %s660_s16  ;;  %p591_p0 = scmp.ge.s32.totalorder %s664_s17, 1  ;;  %s664_s17 = sphi %s696_s17, %s14_s17   ;;  %s660_s16 = sphi %s694_s16, %s745_s16   ;;  %s656_s15 = sphi %s692_s15, %s744_s15  }
   0x3   : > { %p28_p1 = scmp.ge.s32.totalorder %s26_s18, 2  ;;  %p200_p2 = scmp.lt.s32.totalorder %s664_s17, 3 }
   0x5   : > { %s747_s18 = smov (%p28_p1, %s26_s18), 0  ;;  %p201_p3 = pnand %p591_p0, %p200_p2 }
   0x6   : > { %p244_p4 = scmp.lt.s32.totalorder (!%p201_p3), %s656_s15, 1 }
   0x7   : > { %204 = sbr.rel (%p201_p3) target bundleno = 181 (0xb5), region = 36 }
   0xc   : > { %v280_v0 = vld [vmem:[%s742_s3] sm:$0xff]  ;;  %v666_v1 = vmov 0   ;;  %s749_s15 = smov (!%p244_p4, %s656_s15), 1  ;;  %vm286_vm0 = vcmask 64512  }
   0xd   : > { %629 = vset.pattern.permute.xlu0 %v666_v1  ;;  %s713_s21 = smul.u32 48, %s749_s15  ;;  %v273_v2 = vld [vmem:[%s741_s2] sm:$0xff] }
   0xe   : > { %283 = vperm.xlu0 %629, %v280_v0  }
   0xf   : > { %s251_s24 = scalar_lea.vmem %s739_s0, %s713_s21  ;;  %s261_s29 = scalar_lea.vmem %s740_s1, %s713_s21 }
  0x10   : > { %v274_v3 = vld [vmem:[%s251_s24] sm:$0xff]  ;;  %v275_v4 = vld [vmem:[%s251_s24 + $0x8] sm:$0xff]  ;;  %v276_v5 = vld [vmem:[%s251_s24 + $0x10] sm:$0xff]  ;;  %s271_s6 = scalar_lea.vmem %s743_s4, %s713_s21 }
  0x11   : > { %305 = vmatpush.msra.mxu0 %v274_v3  ;;  %325 = vmatpush.msra.mxu1 %v275_v4  ;;  %v277_v6 = vld [vmem:[%s251_s24 + $0x18] sm:$0xff]  ;;  %v278_v7 = vld [vmem:[%s251_s24 + $0x20] sm:$0xff]  ;;  %v279_v8 = vld [vmem:[%s251_s24 + $0x28] sm:$0xff] }
  0x12   : > { %345 = vmatpush.msra.mxu2 %v276_v5  ;;  %365 = vmatpush.msra.mxu3 %v277_v6  ;;  %v410_v11 = vld [vmem:[%s261_s29] sm:$0xff]  ;;  %v411_v13 = vld [vmem:[%s261_s29 + $0x8] sm:$0xff]  ;;  %v412_v23 = vld [vmem:[%s261_s29 + $0x10] sm:$0xff] }
  0x13   : > { %595 = vmatmul.msk.f32.vlgmr.msra.gmra.mxu0 %vm286_vm0, %v273_v2  ;;  %596 = vmatmul.msk.f32.vlgmr.msra.gmra.mxu1 %vm286_vm0, %v273_v2  ;;  %v413_v25 = vld [vmem:[%s261_s29 + $0x18] sm:$0xff]  ;;  %v414_v29 = vld [vmem:[%s261_s29 + $0x20] sm:$0xff]  ;;  %v415_v31 = vld [vmem:[%s261_s29 + $0x28] sm:$0xff] }
  0x14   : > { %597 = vmatmul.msk.f32.vlgmr.msra.gmra.mxu2 %vm286_vm0, %v273_v2  ;;  %598 = vmatmul.msk.f32.vlgmr.msra.gmra.mxu3 %vm286_vm0, %v273_v2 }
  0x15   : > { %385 = vmatpush.msrb.mxu0 %v278_v7  ;;  %405 = vmatpush.msrb.mxu1 %v279_v8 }
  0x1b   : > { %599 = vmatmul.msk.f32.vlgmr.msrb.gmra.mxu0 %vm286_vm0, %v273_v2  ;;  %600 = vmatmul.msk.f32.vlgmr.msrb.gmra.mxu1 %vm286_vm0, %v273_v2 }
  0x80   : > { %v284_v9 = vpop.permute.xlu0 %283 }
  0x90   : > { %v307_v10 = vpop.f32.mrf.mxu0  ;;  %v327_v12 = vpop.f32.mrf.mxu1 }
  0x91   : > { %v308_v14 = vadd.f32 %v307_v10, %v284_v9  ;;  %v328_v15 = vadd.f32 %v327_v12, %v284_v9 }
  0x93   : > { %v416_v16 = vadd.f32 %v410_v11, %v308_v14  ;;  %v417_v17 = vadd.f32 %v411_v13, %v328_v15 }
  0x95   : > { %v428_v18 = vmul.f32 0.044715, %v416_v16  ;;  %v429_v19 = vmul.f32 0.044715, %v417_v17  ;;  %v422_v0 = vmul.f32 0.5, %v416_v16  ;;  %v423_v3 = vmul.f32 0.5, %v417_v17 }
  0x97   : > { %v434_v20 = vmul.f32 %v428_v18, %v416_v16  ;;  %v435_v21 = vmul.f32 %v429_v19, %v417_v17  ;;  %v347_v22 = vpop.f32.mrf.mxu2  ;;  %v367_v24 = vpop.f32.mrf.mxu3 }
  0x98   : > { %v348_v26 = vadd.f32 %v347_v22, %v284_v9  ;;  %v368_v27 = vadd.f32 %v367_v24, %v284_v9  ;;  %v387_v28 = vpop.f32.mrf.mxu0  ;;  %v407_v30 = vpop.f32.mrf.mxu1 }
  0x99   : > { %v440_v32 = vmul.f32 %v434_v20, %v416_v16  ;;  %v441_v33 = vmul.f32 %v435_v21, %v417_v17  ;;  %v388_v34 = vadd.f32 %v387_v28, %v284_v9  ;;  %v408_v35 = vadd.f32 %v407_v30, %v284_v9 }
  0x9a   : > { %v418_v36 = vadd.f32 %v412_v23, %v348_v26  ;;  %v419_v37 = vadd.f32 %v413_v25, %v368_v27 }
  0x9b   : > { %v446_v38 = vadd.f32 %v440_v32, %v416_v16  ;;  %v447_v39 = vadd.f32 %v441_v33, %v417_v17  ;;  %v420_v40 = vadd.f32 %v414_v29, %v388_v34  ;;  %v421_v41 = vadd.f32 %v415_v31, %v408_v35 }
  0x9c   : > { %v430_v42 = vmul.f32 0.044715, %v418_v36  ;;  %v431_v43 = vmul.f32 0.044715, %v419_v37  ;;  %v424_v10 = vmul.f32 0.5, %v418_v36  ;;  %v425_v13 = vmul.f32 0.5, %v419_v37 }
  0x9d   : > { %v452_v44 = vmul.f32 0.7978846, %v446_v38  ;;  %v453_v45 = vmul.f32 0.7978846, %v447_v39  ;;  %v432_v48 = vmul.f32 0.044715, %v420_v40 }
  0x9e   : > { %v436_v46 = vmul.f32 %v430_v42, %v418_v36  ;;  %v437_v47 = vmul.f32 %v431_v43, %v419_v37  ;;  %v433_v49 = vmul.f32 0.044715, %v421_v41  ;;  %v426_v18 = vmul.f32 0.5, %v420_v40 }
  0x9f   : > { %630 = vtanh.f32 %v452_v44  ;;  %v438_v52 = vmul.f32 %v432_v48, %v420_v40  ;;  %v427_v20 = vmul.f32 0.5, %v421_v41 }
  0xa0   : > { %632 = vtanh.f32 %v453_v45  ;;  %v442_v50 = vmul.f32 %v436_v46, %v418_v36  ;;  %v443_v51 = vmul.f32 %v437_v47, %v419_v37  ;;  %v439_v53 = vmul.f32 %v433_v49, %v421_v41 }
  0xa1   : > { %v444_v56 = vmul.f32 %v438_v52, %v420_v40 }
  0xa2   : > { %v448_v54 = vadd.f32 %v442_v50, %v418_v36  ;;  %v449_v55 = vadd.f32 %v443_v51, %v419_v37  ;;  %v445_v57 = vmul.f32 %v439_v53, %v421_v41 }
  0xa3   : > { %v450_v60 = vadd.f32 %v444_v56, %v420_v40 }
  0xa4   : > { %v454_v58 = vmul.f32 0.7978846, %v448_v54  ;;  %v455_v59 = vmul.f32 0.7978846, %v449_v55  ;;  %v451_v62 = vadd.f32 %v445_v57, %v421_v41 }
  0xa5   : > { %v631_v61 = vpop.eup %630  ;;  %v456_v2 = vmul.f32 0.7978846, %v450_v60 }
  0xa6   : > { %v633_v63 = vpop.eup %632  ;;  %v464_v1 = vadd.f32 1.0, %v631_v61  ;;  %634 = vtanh.f32 %v454_v58  ;;  %v457_v5 = vmul.f32 0.7978846, %v451_v62 }
  0xa7   : > { %v465_v4 = vadd.f32 1.0, %v633_v63  ;;  %636 = vtanh.f32 %v455_v59 }
  0xa8   : > { %v470_v6 = vmul.f32 %v464_v1, %v422_v0  ;;  %638 = vtanh.f32 %v456_v2 }
  0xa9   : > { %v471_v7 = vmul.f32 %v465_v4, %v423_v3  ;;  %640 = vtanh.f32 %v457_v5 }
  0xaa   : > { %476 = vst [vmem:[%s271_s6] sm:$0xff] %v470_v6 }
  0xab   : > { %477 = vst [vmem:[%s271_s6 + $0x8] sm:$0xff] %v471_v7 }
  0xac   : > { %v635_v8 = vpop.eup %634 }
  0xad   : > { %v637_v9 = vpop.eup %636  ;;  %v466_v11 = vadd.f32 1.0, %v635_v8 }
  0xae   : > { %v639_v12 = vpop.eup %638  ;;  %v467_v14 = vadd.f32 1.0, %v637_v9 }
  0xaf   : > { %v641_v15 = vpop.eup %640  ;;  %v472_v16 = vmul.f32 %v466_v11, %v424_v10  ;;  %v468_v17 = vadd.f32 1.0, %v639_v12 }
  0xb0   : > { %v473_v19 = vmul.f32 %v467_v14, %v425_v13  ;;  %v469_v21 = vadd.f32 1.0, %v641_v15 }
  0xb1   : > { %v474_v22 = vmul.f32 %v468_v17, %v426_v18  ;;  %478 = vst [vmem:[%s271_s6 + $0x10] sm:$0xff] %v472_v16 }
  0xb2   : > { %v475_v23 = vmul.f32 %v469_v21, %v427_v20  ;;  %479 = vst [vmem:[%s271_s6 + $0x18] sm:$0xff] %v473_v19 }
  0xb3   : > { %480 = vst [vmem:[%s271_s6 + $0x20] sm:$0xff] %v474_v22 }
  0xb4   : > { %481 = vst [vmem:[%s271_s6 + $0x28] sm:$0xff] %v475_v23 }
  0xb5 PF: > { %s14_s17 = sadd.s32 1, %s664_s17   ;;  %s744_s15 = smov %s660_s16 }
  0xb6   : > { %p11_p5 = scmp.ge.s32.totalorder %s14_s17, 4   ;;  %s745_s16 = smov %s747_s18 }
  0xb8   :  { %13 = sbr.rel (!%p11_p5) target bundleno = 2 (0x2), region = 69 }

// kernel: fno3d_forward.18
= control target key start
LH: loop header
LB: loop body
LE: loop exit
PB: predicated region body
PF: predicated region fallthrough
CT: control target
= control target key end

     0   :  { %s626_s15 = smov 0   ;;  %s628_s16 = smov 0   ;;  %s679_s0 = inlined_call_operand.vmem [shape: f32[2,8,768], index: 0, kind: input, shape index: {}]   ;;  %s680_s1 = inlined_call_operand.vmem [shape: f32[2,8,768], index: 1, kind: input, shape index: {}, may-alias: {1,4}]   ;;  %s681_s2 = inlined_call_operand.vmem [shape: f32[8,8], index: 2, kind: input, shape index: {}]   ;;  %s682_s3 = inlined_call_operand.vmem [shape: f32[8,1], index: 3, kind: input, shape index: {}]   ;;  %s683_s4 = inlined_call_operand.vmem [shape: f32[2,8,768], index: 4, kind: output, shape index: {}, may-alias: {1,4}]  }
   0x1   :  { %s630_s17 = smov 0  }
   0x2 LB: > { %s26_s18 = sadd.s32 1, %s594_s16  ;;  %p537_p0 = scmp.ge.s32.totalorder %s598_s17, 1  ;;  %s598_s17 = sphi %s630_s17, %s14_s17   ;;  %s594_s16 = sphi %s628_s16, %s685_s16   ;;  %s590_s15 = sphi %s626_s15, %s684_s15  }
   0x3   : > { %p28_p1 = scmp.ge.s32.totalorder %s26_s18, 2  ;;  %p200_p2 = scmp.lt.s32.totalorder %s598_s17, 3 }
   0x5   : > { %s687_s18 = smov (%p28_p1, %s26_s18), 0  ;;  %p201_p3 = pnand %p537_p0, %p200_p2 }
   0x6   : > { %p244_p4 = scmp.lt.s32.totalorder (!%p201_p3), %s590_s15, 1 }
   0x7   : > { %204 = sbr.rel (%p201_p3) target bundleno = 160 (0xa0), region = 36 }
   0xc   : > { %v280_v0 = vld [vmem:[%s682_s3] sm:$0xff]  ;;  %v600_v1 = vmov 0   ;;  %s689_s15 = smov (!%p244_p4, %s590_s15), 1  ;;  %vm286_vm0 = vcmask 64512  }
   0xd   : > { %575 = vset.pattern.permute.xlu0 %v600_v1  ;;  %s647_s21 = smul.u32 48, %s689_s15  ;;  %v273_v2 = vld [vmem:[%s681_s2] sm:$0xff] }
   0xe   : > { %283 = vperm.xlu0 %575, %v280_v0  }
   0xf   : > { %s251_s24 = scalar_lea.vmem %s679_s0, %s647_s21  ;;  %s261_s29 = scalar_lea.vmem %s680_s1, %s647_s21 }
  0x10   : > { %v274_v3 = vld [vmem:[%s251_s24] sm:$0xff]  ;;  %v275_v4 = vld [vmem:[%s251_s24 + $0x8] sm:$0xff]  ;;  %v276_v7 = vld [vmem:[%s251_s24 + $0x10] sm:$0xff]  ;;  %s271_s6 = scalar_lea.vmem %s683_s4, %s647_s21 }
  0x11   : > { %v278_v5 = vld [vmem:[%s251_s24 + $0x20] sm:$0xff]  ;;  %305 = vmatpush.msra.mxu0 %v274_v3  ;;  %325 = vmatpush.msra.mxu1 %v275_v4  ;;  %v279_v6 = vld [vmem:[%s251_s24 + $0x28] sm:$0xff]  ;;  %v277_v8 = vld [vmem:[%s251_s24 + $0x18] sm:$0xff] }
  0x12   : > { %541 = vmatmul.msk.f32.vlgmr.msra.gmra.mxu0 %vm286_vm0, %v273_v2  ;;  %542 = vmatmul.msk.f32.vlgmr.msra.gmra.mxu1 %vm286_vm0, %v273_v2  ;;  %v410_v11 = vld [vmem:[%s261_s29] sm:$0xff]  ;;  %v411_v13 = vld [vmem:[%s261_s29 + $0x8] sm:$0xff]  ;;  %v412_v16 = vld [vmem:[%s261_s29 + $0x10] sm:$0xff] }
  0x13   : > { %385 = vmatpush.msrb.mxu0 %v278_v5  ;;  %405 = vmatpush.msrb.mxu1 %v279_v6  ;;  %v413_v17 = vld [vmem:[%s261_s29 + $0x18] sm:$0xff]  ;;  %v414_v18 = vld [vmem:[%s261_s29 + $0x20] sm:$0xff]  ;;  %v415_v19 = vld [vmem:[%s261_s29 + $0x28] sm:$0xff] }
  0x14   : > { %345 = vmatpush.msra.mxu2 %v276_v7  ;;  %365 = vmatpush.msra.mxu3 %v277_v8 }
  0x15   : > { %543 = vmatmul.msk.f32.vlgmr.msra.gmra.mxu2 %vm286_vm0, %v273_v2  ;;  %544 = vmatmul.msk.f32.vlgmr.msra.gmra.mxu3 %vm286_vm0, %v273_v2 }
  0x1a   : > { %545 = vmatmul.msk.f32.vlgmr.msrb.gmra.mxu0 %vm286_vm0, %v273_v2  ;;  %546 = vmatmul.msk.f32.vlgmr.msrb.gmra.mxu1 %vm286_vm0, %v273_v2 }
  0x80   : > { %v284_v9 = vpop.permute.xlu0 %283 }
  0x8f   : > { %v307_v10 = vpop.f32.mrf.mxu0  ;;  %v327_v12 = vpop.f32.mrf.mxu1 }
  0x90   : > { %v308_v14 = vadd.f32 %v307_v10, %v284_v9  ;;  %v328_v15 = vadd.f32 %v327_v12, %v284_v9 }
  0x92   : > { %v416_v20 = vadd.f32 %v410_v11, %v308_v14  ;;  %v417_v21 = vadd.f32 %v411_v13, %v328_v15 }
  0x94   : > { %422 = vst [vmem:[%s271_s6] sm:$0xff] %v416_v20 }
  0x95   : > { %423 = vst [vmem:[%s271_s6 + $0x8] sm:$0xff] %v417_v21 }
  0x97   : > { %v387_v22 = vpop.f32.mrf.mxu0  ;;  %v407_v23 = vpop.f32.mrf.mxu1 }
  0x98   : > { %v347_v24 = vpop.f32.mrf.mxu2  ;;  %v367_v25 = vpop.f32.mrf.mxu3  ;;  %v388_v26 = vadd.f32 %v387_v22, %v284_v9  ;;  %v408_v27 = vadd.f32 %v407_v23, %v284_v9 }
  0x99   : > { %v348_v28 = vadd.f32 %v347_v24, %v284_v9  ;;  %v368_v29 = vadd.f32 %v367_v25, %v284_v9 }
  0x9a   : > { %v420_v30 = vadd.f32 %v414_v18, %v388_v26  ;;  %v421_v33 = vadd.f32 %v415_v19, %v408_v27 }
  0x9b   : > { %v418_v31 = vadd.f32 %v412_v16, %v348_v28  ;;  %v419_v32 = vadd.f32 %v413_v17, %v368_v29 }
  0x9c   : > { %426 = vst [vmem:[%s271_s6 + $0x20] sm:$0xff] %v420_v30 }
  0x9d   : > { %424 = vst [vmem:[%s271_s6 + $0x10] sm:$0xff] %v418_v31 }
  0x9e   : > { %425 = vst [vmem:[%s271_s6 + $0x18] sm:$0xff] %v419_v32 }
  0x9f   : > { %427 = vst [vmem:[%s271_s6 + $0x28] sm:$0xff] %v421_v33 }
  0xa0 PF: > { %s14_s17 = sadd.s32 1, %s598_s17   ;;  %s684_s15 = smov %s594_s16 }
  0xa1   : > { %p11_p5 = scmp.ge.s32.totalorder %s14_s17, 4   ;;  %s685_s16 = smov %s687_s18 }
  0xa3   :  { %13 = sbr.rel (!%p11_p5) target bundleno = 2 (0x2), region = 69 }

// kernel: fno3d_forward.19
= control target key start
LH: loop header
LB: loop body
LE: loop exit
PB: predicated region body
PF: predicated region fallthrough
CT: control target
= control target key end

     0   :  { %s2308_s20 = smov 0   ;;  %s2310_s21 = smov 0   ;;  %s3905_s0 = inlined_call_operand.vmem [shape: f32[2,8,768], index: 0, kind: input, shape index: {}]   ;;  %s3906_s1 = inlined_call_operand.vmem [shape: f32[128,8], index: 1, kind: input, shape index: {}]   ;;  %s3907_s2 = inlined_call_operand.vmem [shape: f32[128,1], index: 2, kind: input, shape index: {}]   ;;  %s3908_s3 = inlined_call_operand.vmem [shape: f32[1,128], index: 3, kind: input, shape index: {}]   ;;  %s3909_s4 = inlined_call_operand.<no memory space> [shape: f32[1,1], index: 4, kind: input, shape index: {}]   ;;  %s3910_s5 = inlined_call_operand.vmem [shape: f32[2,1,768], index: 5, kind: output, shape index: {}]  }
   0x1   :  { %v10_v0 = vstv %s3909_s4  ;;  %s2312_s22 = smov 0  }
   0x2   :  { %11 = vst [vmem:[#allocation2] sm:$0x1] %v10_v0 }
   0x3 LB: > { %s29_s4 = sadd.s32 1, %s2268_s21  ;;  %p1925_p0 = scmp.ge.s32.totalorder %s2272_s22, 1  ;;  %s2272_s22 = sphi %s2312_s22, %s17_s22   ;;  %s2268_s21 = sphi %s2310_s21, %s4147_s21   ;;  %s2264_s20 = sphi %s2308_s20, %s4146_s20  }
   0x4   : > { %p31_p1 = scmp.ge.s32.totalorder %s29_s4, 2  ;;  %p210_p2 = scmp.lt.s32.totalorder %s2272_s22, 3 }
   0x6   : > { %s4149_s4 = smov (%p31_p1, %s29_s4), 0  ;;  %p211_p3 = pnand %p1925_p0, %p210_p2 }
   0x8   : > { %214 = sbr.rel (%p211_p3) target bundleno = 580 (0x244), region = 40 }
   0xd   : > { %v301_v1 = vld [vmem:[%s3907_s2 + $0x78] sm:$0xff]  ;;  %v299_v2 = vld [vmem:[%s3907_s2 + $0x68] sm:$0xff]  ;;  %p246_p4 = scmp.lt.s32.totalorder %s2264_s20, 1  ;;  %v2274_v3 = vmov 0   ;;  %v2344_v5 = vld [vmem:[%s3906_s1] sm:$0xff]  ;;  %vm382_vm0 = vcmask 64512  }
   0xe   : > { %2054 = vset.pattern.permute.xlu0 %v2274_v3  ;;  %2055 = vset.pattern.permute.xlu1 %v2274_v3  ;;  %v297_v4 = vld [vmem:[%s3907_s2 + $0x58] sm:$0xff]  ;;  %v2349_v8 = vld [vmem:[%s3906_s1 + $0x68] sm:$0xff]  ;;  %v300_v10 = vld [vmem:[%s3907_s2 + $0x70] sm:$0xff]  ;;  %vm1828_vm1 = vcmask 1043459   ;;  %vm1824_vm2 = vcmask 1040384   ;;  %vm1826_vm3 = vcmask 1041408  }
   0xf   : > { %379 = vperm.xlu0 %2054, %v301_v1   ;;  %369 = vperm.xlu1 %2055, %v299_v2   ;;  %s4151_s20 = smov (!%p246_p4, %s2264_s20), 1  ;;  %v298_v12 = vld [vmem:[%s3907_s2 + $0x60] sm:$0xff]  ;;  %v296_v13 = vld [vmem:[%s3907_s2 + $0x50] sm:$0xff]  ;;  %v2371_v16 = vld [vmem:[%s3906_s1 + $0x8] sm:$0xff]  ;;  %vm1830_vm4 = vcmask 1044483   ;;  %vm1832_vm5 = vcmask 1042432  }
  0x10   : > { %2056 = vset.pattern.permute.xlu2 %v2274_v3  ;;  %s2027_s29 = smul.u32 48, %s4151_s20  ;;  %v2376_v17 = vld [vmem:[%s3906_s1 + $0x70] sm:$0xff]  ;;  %v295_v18 = vld [vmem:[%s3907_s2 + $0x48] sm:$0xff]  ;;  %v294_v19 = vld [vmem:[%s3907_s2 + $0x40] sm:$0xff] }
  0x11   : > { %359 = vperm.xlu2 %2056, %v297_v4   ;;  %v293_v20 = vld [vmem:[%s3907_s2 + $0x38] sm:$0xff]  ;;  %v2398_v21 = vld [vmem:[%s3906_s1 + $0x10] sm:$0xff]  ;;  %v291_v24 = vld [vmem:[%s3907_s2 + $0x28] sm:$0xff] }
  0x12   : > { %s253_s7 = scalar_lea.vmem %s3905_s0, %s2027_s29  ;;  %v2403_v22 = vld [vmem:[%s3906_s1 + $0x78] sm:$0xff]  ;;  %v292_v23 = vld [vmem:[%s3907_s2 + $0x30] sm:$0xff]  ;;  %v290_v25 = vld [vmem:[%s3907_s2 + $0x20] sm:$0xff]  ;;  %s2028_s29 = smul.u32 6, %s4151_s20 }
  0x13   : > { %v280_v6 = vld [vmem:[%s253_s7] sm:$0xff]  ;;  %v281_v7 = vld [vmem:[%s253_s7 + $0x8] sm:$0xff]  ;;  %v282_v14 = vld [vmem:[%s253_s7 + $0x10] sm:$0xff] }
  0x14   : > { %446 = vmatpush.msra.mxu0 %v280_v6  ;;  %2025 = vmatpush.msra.mxu2 %v280_v6  ;;  %v284_v9 = vld [vmem:[%s253_s7 + $0x20] sm:$0xff]  ;;  %v285_v11 = vld [vmem:[%s253_s7 + $0x28] sm:$0xff]  ;;  %v283_v15 = vld [vmem:[%s253_s7 + $0x18] sm:$0xff]  ;;  %s262_s7 = scalar_lea.vmem %s3910_s5, %s2028_s29 }
  0x15   : > { %511 = vmatpush.msra.mxu1 %v281_v7  ;;  %2026 = vmatpush.msra.mxu3 %v281_v7  ;;  %v2425_v26 = vld [vmem:[%s3906_s1 + $0x18] sm:$0xff]  ;;  %v288_v28 = vld [vmem:[%s3907_s2 + $0x10] sm:$0xff]  ;;  %v287_v29 = vld [vmem:[%s3907_s2 + $0x8] sm:$0xff] }
  0x16   : > { %1927 = vmatmul.msk.f32.vlgmr.msra.gmra.mxu0 %vm382_vm0, %v2344_v5  ;;  %1940 = vmatmul.msk.f32.vlgmr.msra.gmra.mxu2 %vm382_vm0, %v2349_v8  ;;  %v289_v27 = vld [vmem:[%s3907_s2 + $0x18] sm:$0xff]  ;;  %v2447_v30 = vld [vmem:[%s3906_s1 + $0x20] sm:$0xff]  ;;  %v2463_v32 = vld [vmem:[%s3906_s1 + $0x28] sm:$0xff] }
  0x17   : > { %1943 = vmatmul.msk.f32.vlgmr.msra.gmra.mxu1 %vm382_vm0, %v2344_v5  ;;  %1956 = vmatmul.msk.f32.vlgmr.msra.gmra.mxu3 %vm382_vm0, %v2349_v8  ;;  %v286_v31 = vld [vmem:[%s3907_s2] sm:$0xff]  ;;  %v2476_v33 = vld [vmem:[%s3906_s1 + $0x30] sm:$0xff]  ;;  %v2489_v34 = vld [vmem:[%s3906_s1 + $0x38] sm:$0xff] }
  0x18   : > { %706 = vmatpush.msrb.mxu0 %v284_v9  ;;  %374 = vperm.xlu0 %2054, %v300_v10   ;;  %v2502_v35 = vld [vmem:[%s3906_s1 + $0x40] sm:$0xff]  ;;  %v2515_v36 = vld [vmem:[%s3906_s1 + $0x48] sm:$0xff]  ;;  %v2528_v37 = vld [vmem:[%s3906_s1 + $0x50] sm:$0xff] }
  0x19   : > { %771 = vmatpush.msrb.mxu1 %v285_v11  ;;  %364 = vperm.xlu1 %2055, %v298_v12   ;;  %v2541_v38 = vld [vmem:[%s3906_s1 + $0x58] sm:$0xff]  ;;  %v1686_v39 = vld [vmem:[#allocation2] sm:$0x1] }
  0x1a   : > { %354 = vperm.xlu2 %2056, %v296_v13   ;;  %576 = vmatpush.msrb.mxu2 %v282_v14  ;;  %v2554_v40 = vld [vmem:[%s3906_s1 + $0x60] sm:$0xff] }
  0x1b   : > { %641 = vmatpush.msrb.mxu3 %v283_v15 }
  0x1e   : > { %1928 = vmatmul.msk.f32.gmra.mxu0 %vm382_vm0, %v2371_v16  ;;  %1941 = vmatmul.msk.f32.gmra.mxu2 %vm382_vm0, %v2376_v17 }
  0x1f   : > { %1944 = vmatmul.msk.f32.gmra.mxu1 %vm382_vm0, %v2371_v16  ;;  %1957 = vmatmul.msk.f32.gmra.mxu3 %vm382_vm0, %v2376_v17 }
  0x20   : > { %349 = vperm.xlu0 %2054, %v295_v18  }
  0x21   : > { %344 = vperm.xlu1 %2055, %v294_v19  }
  0x22   : > { %339 = vperm.xlu2 %2056, %v293_v20  }
  0x26   : > { %1929 = vmatmul.msk.f32.gmra.mxu0 %vm382_vm0, %v2398_v21  ;;  %1942 = vmatmul.msk.f32.gmra.mxu2 %vm382_vm0, %v2403_v22 }
  0x27   : > { %1945 = vmatmul.msk.f32.gmra.mxu1 %vm382_vm0, %v2398_v21  ;;  %1958 = vmatmul.msk.f32.gmra.mxu3 %vm382_vm0, %v2403_v22 }
  0x28   : > { %334 = vperm.xlu0 %2054, %v292_v23  }
  0x29   : > { %329 = vperm.xlu1 %2055, %v291_v24  }
  0x2a   : > { %324 = vperm.xlu2 %2056, %v290_v25  }
  0x2e   : > { %1930 = vmatmul.msk.f32.gmra.mxu0 %vm382_vm0, %v2425_v26  ;;  %1959 = vmatmul.msk.f32.vlgmr.msrb.gmra.mxu2 %vm382_vm0, %v2344_v5 }
  0x2f   : > { %1946 = vmatmul.msk.f32.gmra.mxu1 %vm382_vm0, %v2425_v26  ;;  %1975 = vmatmul.msk.f32.vlgmr.msrb.gmra.mxu3 %vm382_vm0, %v2344_v5 }
  0x30   : > { %319 = vperm.xlu0 %2054, %v289_v27  }
  0x31   : > { %314 = vperm.xlu1 %2055, %v288_v28  }
  0x32   : > { %309 = vperm.xlu2 %2056, %v287_v29  }
  0x36   : > { %1931 = vmatmul.msk.f32.gmra.mxu0 %vm382_vm0, %v2447_v30  ;;  %1960 = vmatmul.msk.f32.gmra.mxu2 %vm382_vm0, %v2371_v16 }
  0x37   : > { %1947 = vmatmul.msk.f32.gmra.mxu1 %vm382_vm0, %v2447_v30  ;;  %1976 = vmatmul.msk.f32.gmra.mxu3 %vm382_vm0, %v2371_v16 }
  0x38   : > { %304 = vperm.xlu0 %2054, %v286_v31  }
  0x39   : > { %1689 = vperm.xlu1 %2055, %v1686_v39  }
  0x3e   : > { %1932 = vmatmul.msk.f32.gmra.mxu0 %vm382_vm0, %v2463_v32  ;;  %1961 = vmatmul.msk.f32.gmra.mxu2 %vm382_vm0, %v2398_v21 }
  0x3f   : > { %1948 = vmatmul.msk.f32.gmra.mxu1 %vm382_vm0, %v2463_v32  ;;  %1977 = vmatmul.msk.f32.gmra.mxu3 %vm382_vm0, %v2398_v21 }
  0x46   : > { %1933 = vmatmul.msk.f32.gmra.mxu0 %vm382_vm0, %v2476_v33  ;;  %1962 = vmatmul.msk.f32.gmra.mxu2 %vm382_vm0, %v2425_v26 }
  0x47   : > { %1949 = vmatmul.msk.f32.gmra.mxu1 %vm382_vm0, %v2476_v33  ;;  %1978 = vmatmul.msk.f32.gmra.mxu3 %vm382_vm0, %v2425_v26 }
  0x4e   : > { %1934 = vmatmul.msk.f32.gmra.mxu0 %vm382_vm0, %v2489_v34  ;;  %1963 = vmatmul.msk.f32.gmra.mxu2 %vm382_vm0, %v2447_v30 }
  0x4f   : > { %1950 = vmatmul.msk.f32.gmra.mxu1 %vm382_vm0, %v2489_v34  ;;  %1979 = vmatmul.msk.f32.gmra.mxu3 %vm382_vm0, %v2447_v30 }
  0x56   : > { %1935 = vmatmul.msk.f32.gmra.mxu0 %vm382_vm0, %v2502_v35  ;;  %1964 = vmatmul.msk.f32.gmra.mxu2 %vm382_vm0, %v2463_v32 }
  0x57   : > { %1951 = vmatmul.msk.f32.gmra.mxu1 %vm382_vm0, %v2502_v35  ;;  %1980 = vmatmul.msk.f32.gmra.mxu3 %vm382_vm0, %v2463_v32 }
  0x5e   : > { %1936 = vmatmul.msk.f32.gmra.mxu0 %vm382_vm0, %v2515_v36  ;;  %1965 = vmatmul.msk.f32.gmra.mxu2 %vm382_vm0, %v2476_v33 }
  0x5f   : > { %1952 = vmatmul.msk.f32.gmra.mxu1 %vm382_vm0, %v2515_v36  ;;  %1981 = vmatmul.msk.f32.gmra.mxu3 %vm382_vm0, %v2476_v33 }
  0x66   : > { %1937 = vmatmul.msk.f32.gmra.mxu0 %vm382_vm0, %v2528_v37  ;;  %1966 = vmatmul.msk.f32.gmra.mxu2 %vm382_vm0, %v2489_v34 }
  0x67   : > { %1953 = vmatmul.msk.f32.gmra.mxu1 %vm382_vm0, %v2528_v37  ;;  %1982 = vmatmul.msk.f32.gmra.mxu3 %vm382_vm0, %v2489_v34 }
  0x6b   : > { %v2596_v45 = vpop.permute.xlu2 %359 }
  0x6c   : > { %3981 = vst [vmem:[#allocation5_spill] sm:$0xff] %v2596_v45 }
  0x6e   : > { %1938 = vmatmul.msk.f32.gmra.mxu0 %vm382_vm0, %v2541_v38  ;;  %1967 = vmatmul.msk.f32.gmra.mxu2 %vm382_vm0, %v2502_v35 }
  0x6f   : > { %1954 = vmatmul.msk.f32.gmra.mxu1 %vm382_vm0, %v2541_v38  ;;  %1983 = vmatmul.msk.f32.gmra.mxu3 %vm382_vm0, %v2502_v35 }
  0x74   : > { %v2628_v54 = vpop.permute.xlu2 %354 }
  0x75   : > { %3984 = vst [vmem:[#allocation8_spill] sm:$0xff] %v2628_v54 }
  0x76   : > { %1939 = vmatmul.msk.f32.gmra.mxu0 %vm382_vm0, %v2554_v40  ;;  %1968 = vmatmul.msk.f32.gmra.mxu2 %vm382_vm0, %v2515_v36 }
  0x77   : > { %1955 = vmatmul.msk.f32.gmra.mxu1 %vm382_vm0, %v2554_v40  ;;  %1984 = vmatmul.msk.f32.gmra.mxu3 %vm382_vm0, %v2515_v36 }
  0x7c   : > { %v2664_v13 = vpop.permute.xlu2 %339 }
  0x7d   : > { %3987 = vst [vmem:[#allocation11_spill] sm:$0xff] %v2664_v13 }
  0x7e   : > { %1969 = vmatmul.msk.f32.gmra.mxu2 %vm382_vm0, %v2528_v37  ;;  %1991 = vmatmul.msk.f32.vlgmr.msrb.gmra.mxu0 %vm382_vm0, %v2344_v5 }
  0x7f   : > { %1985 = vmatmul.msk.f32.gmra.mxu3 %vm382_vm0, %v2528_v37  ;;  %2007 = vmatmul.msk.f32.vlgmr.msrb.gmra.mxu1 %vm382_vm0, %v2344_v5 }
  0x81   : > { %v2588_v41 = vpop.permute.xlu1 %369  ;;  %v2592_v43 = vpop.permute.xlu0 %379 }
  0x82   : > { %3979 = vst [vmem:[#allocation3_spill] sm:$0xff] %v2588_v41 }
  0x83   : > { %3980 = vst [vmem:[#allocation4_spill] sm:$0xff] %v2592_v43 }
  0x86   : > { %1970 = vmatmul.msk.f32.gmra.mxu2 %vm382_vm0, %v2541_v38  ;;  %1992 = vmatmul.msk.f32.gmra.mxu0 %vm382_vm0, %v2371_v16 }
  0x87   : > { %1986 = vmatmul.msk.f32.gmra.mxu3 %vm382_vm0, %v2541_v38  ;;  %2008 = vmatmul.msk.f32.gmra.mxu1 %vm382_vm0, %v2371_v16 }
  0x8a   : > { %v2618_v53 = vpop.permute.xlu0 %374 }
  0x8b   : > { %v2613_v51 = vpop.permute.xlu1 %364  ;;  %3983 = vst [vmem:[#allocation7_spill] sm:$0xff] %v2618_v53 }
  0x8c   : > { %3982 = vst [vmem:[#allocation6_spill] sm:$0xff] %v2613_v51 }
  0x8e   : > { %1971 = vmatmul.msk.f32.gmra.mxu2 %vm382_vm0, %v2554_v40  ;;  %1993 = vmatmul.msk.f32.gmra.mxu0 %vm382_vm0, %v2398_v21 }
  0x8f   : > { %1987 = vmatmul.msk.f32.gmra.mxu3 %vm382_vm0, %v2554_v40  ;;  %2009 = vmatmul.msk.f32.gmra.mxu1 %vm382_vm0, %v2398_v21 }
  0x92   : > { %v2658_v6 = vpop.permute.xlu0 %349 }
  0x93   : > { %v2590_v42 = vpop.f32.mrf.mxu0  ;;  %v2651_v4 = vpop.permute.xlu1 %344  ;;  %3986 = vst [vmem:[#allocation10_spill] sm:$0xff] %v2658_v6 }
  0x94   : > { %v2594_v44 = vpop.f32.mrf.mxu1  ;;  %3985 = vst [vmem:[#allocation9_spill] sm:$0xff] %v2651_v4 }
  0x96   : > { %1972 = vmatmul.msk.f32.gmra.mxu2 %vm382_vm0, %v2349_v8  ;;  %1994 = vmatmul.msk.f32.gmra.mxu0 %vm382_vm0, %v2425_v26 }
  0x97   : > { %1988 = vmatmul.msk.f32.gmra.mxu3 %vm382_vm0, %v2349_v8  ;;  %2010 = vmatmul.msk.f32.gmra.mxu1 %vm382_vm0, %v2425_v26 }
  0x99   : > { %v487_v46 = vpop.f32.mrf.mxu2 }
  0x9a   : > { %v552_v47 = vpop.f32.mrf.mxu3  ;;  %v2609_v49 = vadd.f32 %v487_v46, %v2588_v41 }
  0x9b   : > { %v2606_v48 = vpop.f32.mrf.mxu0  ;;  %v2616_v52 = vadd.f32 %v552_v47, %v2588_v41  ;;  %v2678_v39 = vpop.permute.xlu1 %329 }
  0x9c   : > { %v2611_v50 = vpop.f32.mrf.mxu1  ;;  %v995_v55 = vmul.f32 0.044715, %v2609_v49  ;;  %3988 = vst [vmem:[#allocation12_spill] sm:$0xff] %v2678_v39 }
  0x9d   : > { %v996_v56 = vmul.f32 0.044715, %v2616_v52 }
  0x9e   : > { %1973 = vmatmul.msk.f32.gmra.mxu2 %vm382_vm0, %v2376_v17  ;;  %1995 = vmatmul.msk.f32.gmra.mxu0 %vm382_vm0, %v2447_v30  ;;  %v1091_v0 = vmul.f32 %v995_v55, %v2609_v49 }
  0x9f   : > { %1989 = vmatmul.msk.f32.gmra.mxu3 %vm382_vm0, %v2376_v17  ;;  %2011 = vmatmul.msk.f32.gmra.mxu1 %vm382_vm0, %v2447_v30  ;;  %v1092_v2 = vmul.f32 %v996_v56, %v2616_v52  ;;  %v2682_v56 = vpop.permute.xlu0 %334 }
  0xa0   : > { %v1187_v9 = vmul.f32 %v1091_v0, %v2609_v49  ;;  %3989 = vst [vmem:[#allocation13_spill] sm:$0xff] %v2682_v56 }
  0xa1   : > { %v490_v57 = vpop.f32.mrf.mxu2  ;;  %v1188_v12 = vmul.f32 %v1092_v2, %v2616_v52 }
  0xa2   : > { %v2633_v58 = vadd.f32 %v490_v57, %v2618_v53  ;;  %v555_v59 = vpop.f32.mrf.mxu3  ;;  %v1283_v24 = vadd.f32 %v1187_v9, %v2609_v49 }
  0xa3   : > { %v2636_v60 = vadd.f32 %v555_v59, %v2618_v53  ;;  %v2638_v61 = vpop.f32.mrf.mxu0  ;;  %v1284_v26 = vadd.f32 %v1188_v12, %v2616_v52 }
  0xa4   : > { %v1001_v62 = vmul.f32 0.044715, %v2633_v58  ;;  %v2641_v63 = vpop.f32.mrf.mxu1 }
  0xa5   : > { %v1002_v1 = vmul.f32 0.044715, %v2636_v60  ;;  %v1380_v55 = vmul.f32 0.7978846, %v1284_v26 }
  0xa6   : > { %1974 = vmatmul.msk.f32.gmra.mxu2 %vm382_vm0, %v2403_v22  ;;  %1996 = vmatmul.msk.f32.gmra.mxu0 %vm382_vm0, %v2463_v32  ;;  %v1097_v3 = vmul.f32 %v1001_v62, %v2633_v58 }
  0xa7   : > { %1990 = vmatmul.msk.f32.gmra.mxu3 %vm382_vm0, %v2403_v22  ;;  %2012 = vmatmul.msk.f32.gmra.mxu1 %vm382_vm0, %v2463_v32  ;;  %v1098_v5 = vmul.f32 %v1002_v1, %v2636_v60  ;;  %v1379_v32 = vmul.f32 0.7978846, %v1283_v24  ;;  %v2686_v1 = vpop.permute.xlu2 %324  ;;  %v2701_v26 = vpop.permute.xlu0 %319 }
  0xa8   : > { %v1193_v7 = vmul.f32 %v1097_v3, %v2633_v58  ;;  %3990 = vst [vmem:[#allocation14_spill] sm:$0xff] %v2686_v1 }
  0xa9   : > { %v493_v10 = vpop.f32.mrf.mxu2  ;;  %v1194_v11 = vmul.f32 %v1098_v5, %v2636_v60  ;;  %3992 = vst [vmem:[#allocation16_spill] sm:$0xff] %v2701_v26 }
  0xaa   : > { %v494_v14 = vadd.f32 %v493_v10, %v2592_v43  ;;  %v558_v15 = vpop.f32.mrf.mxu3  ;;  %v1289_v16 = vadd.f32 %v1193_v7, %v2633_v58 }
  0xab   : > { %v559_v18 = vadd.f32 %v558_v15, %v2592_v43  ;;  %v457_v19 = vpop.f32.mrf.mxu0  ;;  %v1290_v20 = vadd.f32 %v1194_v11, %v2636_v60  ;;  %v2696_v15 = vpop.permute.xlu1 %314 }
  0xac   : > { %v1007_v21 = vmul.f32 0.044715, %v494_v14  ;;  %v2670_v23 = vpop.f32.mrf.mxu1  ;;  %v1385_v28 = vmul.f32 0.7978846, %v1289_v16  ;;  %3991 = vst [vmem:[#allocation15_spill] sm:$0xff] %v2696_v15 }
  0xad   : > { %v1008_v25 = vmul.f32 0.044715, %v559_v18  ;;  %v1386_v30 = vmul.f32 0.7978846, %v1290_v20  ;;  %v911_v20 = vmul.f32 0.5, %v494_v14 }
  0xae   : > { %v1103_v27 = vmul.f32 %v1007_v21, %v494_v14  ;;  %1997 = vmatmul.msk.f32.gmra.mxu0 %vm382_vm0, %v2476_v33  ;;  %2057 = vtanh.f32 %v1385_v28  ;;  %v905_v21 = vmul.f32 0.5, %v2633_v58  ;;  %v906_v28 = vmul.f32 0.5, %v2636_v60 }
  0xaf   : > { %v1104_v29 = vmul.f32 %v1008_v25, %v559_v18  ;;  %2013 = vmatmul.msk.f32.gmra.mxu1 %vm382_vm0, %v2476_v33  ;;  %2059 = vtanh.f32 %v1386_v30  ;;  %v2714_v58 = vadd.f32 %v2638_v61, %v2696_v15  ;;  %v900_v60 = vmul.f32 0.5, %v2616_v52 }
  0xb0   : > { %v1199_v31 = vmul.f32 %v1103_v27, %v494_v14  ;;  %2061 = vtanh.f32 %v1379_v32  ;;  %v912_v27 = vmul.f32 0.5, %v559_v18 }
  0xb1   : > { %v1200_v46 = vmul.f32 %v1104_v29, %v559_v18  ;;  %v2680_v47 = vpop.f32.mrf.mxu2  ;;  %2063 = vtanh.f32 %v1380_v55  ;;  %v2710_v55 = vpop.permute.xlu2 %309 }
  0xb2   : > { %v2684_v57 = vpop.f32.mrf.mxu3  ;;  %v1295_v59 = vadd.f32 %v1199_v31, %v494_v14  ;;  %v2707_v31 = vadd.f32 %v457_v19, %v2701_v26  ;;  %3993 = vst [vmem:[#allocation17_spill] sm:$0xff] %v2710_v55  ;;  %v2727_v61 = vadd.f32 %v2606_v48, %v2710_v55 }
  0xb3   : > { %v460_v62 = vpop.f32.mrf.mxu0  ;;  %v1296_v0 = vadd.f32 %v1200_v46, %v559_v18  ;;  %v899_v46 = vmul.f32 0.5, %v2609_v49  ;;  %v2723_v49 = vadd.f32 %v2670_v23, %v2701_v26 }
  0xb4   : > { %v525_v33 = vpop.f32.mrf.mxu1  ;;  %v1391_v2 = vmul.f32 0.7978846, %v1295_v59  ;;  %v2058_v5 = vpop.eup %2057  ;;  %v2736_v23 = vadd.f32 %v460_v62, %v2686_v1 }
  0xb5   : > { %v1392_v3 = vmul.f32 0.7978846, %v1296_v0  ;;  %v2060_v7 = vpop.eup %2059  ;;  %v1577_v24 = vadd.f32 1.0, %v2058_v5  ;;  %v935_v5 = vmul.f32 0.044715, %v2707_v31 }
  0xb6   : > { %1998 = vmatmul.msk.f32.gmra.mxu0 %vm382_vm0, %v2489_v34  ;;  %2065 = vtanh.f32 %v1391_v2  ;;  %v2062_v10 = vpop.eup %2061  ;;  %v1578_v29 = vadd.f32 1.0, %v2060_v7  ;;  %v936_v48 = vmul.f32 0.044715, %v2723_v49 }
  0xb7   : > { %2014 = vmatmul.msk.f32.gmra.mxu1 %vm382_vm0, %v2489_v34  ;;  %2067 = vtanh.f32 %v1392_v3  ;;  %v2064_v12 = vpop.eup %2063  ;;  %v1571_v14 = vadd.f32 1.0, %v2062_v10  ;;  %v1673_v0 = vmul.f32 %v1577_v24, %v905_v21  ;;  %v2742_v21 = vadd.f32 %v525_v33, %v2686_v1 }
  0xb8   : > { %v1572_v59 = vadd.f32 1.0, %v2064_v12  ;;  %v1674_v3 = vmul.f32 %v1578_v29, %v906_v28  ;;  %v517_v28 = vadd.f32 %v2611_v50, %v2710_v55  ;;  %v941_v33 = vmul.f32 0.044715, %v2736_v23 }
  0xb9   : > { %v2692_v9 = vpop.f32.mrf.mxu2  ;;  %v1667_v52 = vmul.f32 %v1571_v14, %v899_v46  ;;  %v2758_v29 = vadd.f32 %v2641_v63, %v2696_v15 }
  0xba   : > { %v2694_v11 = vpop.f32.mrf.mxu3  ;;  %v1668_v12 = vmul.f32 %v1572_v59, %v900_v60  ;;  %v924_v59 = vmul.f32 0.044715, %v517_v28  ;;  %v1037_v63 = vmul.f32 %v941_v33, %v2736_v23 }
  0xbb   : > { %v2698_v16 = vpop.f32.mrf.mxu0 }
  0xbc   : > { %v2066_v25 = vpop.eup %2065  ;;  %v2703_v34 = vpop.f32.mrf.mxu1 }
  0xbd   : > { %v2068_v30 = vpop.eup %2067  ;;  %v1583_v32 = vadd.f32 1.0, %v2066_v25  ;;  %v923_v25 = vmul.f32 0.044715, %v2727_v61 }
  0xbe   : > { %1999 = vmatmul.msk.f32.gmra.mxu0 %vm382_vm0, %v2502_v35  ;;  %v1584_v18 = vadd.f32 1.0, %v2068_v30  ;;  %v942_v30 = vmul.f32 0.044715, %v2742_v21 }
  0xbf   : > { %2015 = vmatmul.msk.f32.gmra.mxu1 %vm382_vm0, %v2502_v35  ;;  %v1679_v19 = vmul.f32 %v1583_v32, %v911_v20  ;;  %v929_v35 = vmul.f32 0.044715, %v2714_v58  ;;  %v1032_v32 = vmul.f32 %v936_v48, %v2723_v49  ;;  %v1133_v48 = vmul.f32 %v1037_v63, %v2736_v23 }
  0xc0   : > { %v1680_v2 = vmul.f32 %v1584_v18, %v912_v27  ;;  %v1031_v27 = vmul.f32 %v935_v5, %v2707_v31  ;;  %v1019_v18 = vmul.f32 %v923_v25, %v2727_v61  ;;  %v1020_v25 = vmul.f32 %v924_v59, %v517_v28 }
  0xc1   : > { %v2730_v7 = vpop.f32.mrf.mxu2  ;;  %1693 = vmatpush.msra.mxu2 %v1679_v19  ;;  %v1025_v62 = vmul.f32 %v929_v35, %v2714_v58  ;;  %v930_v19 = vmul.f32 0.044715, %v2758_v29 }
  0xc2   : > { %v2733_v10 = vpop.f32.mrf.mxu3  ;;  %1713 = vmatpush.msra.mxu3 %v1680_v2  ;;  %v1127_v14 = vmul.f32 %v1031_v27, %v2707_v31  ;;  %v1038_v2 = vmul.f32 %v942_v30, %v2742_v21  ;;  %v2791_v27 = vadd.f32 %v2703_v34, %v2678_v39  ;;  %v1229_v34 = vadd.f32 %v1133_v48, %v2736_v23  ;;  %v2815_v48 = vpop.permute.xlu0 %304 }
  0xc3   : > { %v2738_v20 = vpop.f32.mrf.mxu0  ;;  %1694 = vmatpush.msra.mxu2 %v1673_v0  ;;  %v1121_v60 = vmul.f32 %v1025_v62, %v2714_v58  ;;  %v1026_v30 = vmul.f32 %v930_v19, %v2758_v29  ;;  %v1116_v63 = vmul.f32 %v1020_v25, %v517_v28  ;;  %3994 = vst [vmem:[#allocation18_spill] sm:$0xff] %v2815_v48 }
  0xc4   : > { %v2744_v24 = vpop.f32.mrf.mxu1  ;;  %1714 = vmatpush.msra.mxu3 %v1674_v3  ;;  %v1128_v3 = vmul.f32 %v1032_v32, %v2723_v49  ;;  %v1223_v5 = vadd.f32 %v1127_v14, %v2707_v31  ;;  %v1134_v62 = vmul.f32 %v1038_v2, %v2742_v21  ;;  %v948_v2 = vmul.f32 0.044715, %v2791_v27 }
  0xc5   : > { %1695 = vmatpush.msra.mxu2 %v1667_v52  ;;  %v1115_v52 = vmul.f32 %v1019_v18, %v2727_v61  ;;  %v1217_v35 = vadd.f32 %v1121_v60, %v2714_v58  ;;  %v2830_v53 = vadd.f32 %v2684_v57, %v2815_v48  ;;  %v2850_v57 = vmul.f32 0.5, %v2758_v29 }
  0xc6   : > { %2000 = vmatmul.msk.f32.gmra.mxu0 %vm382_vm0, %v2515_v36  ;;  %1715 = vmatpush.msra.mxu3 %v1668_v12  ;;  %v2784_v12 = vadd.f32 %v2698_v16, %v2678_v39  ;;  %v1224_v33 = vadd.f32 %v1128_v3, %v2723_v49  ;;  %v1319_v16 = vmul.f32 0.7978846, %v1223_v5  ;;  %v1230_v19 = vadd.f32 %v1134_v62, %v2742_v21 }
  0xc7   : > { %2016 = vmatmul.msk.f32.gmra.mxu1 %vm382_vm0, %v2515_v36  ;;  %v1211_v14 = vadd.f32 %v1115_v52, %v2727_v61  ;;  %v1122_v5 = vmul.f32 %v1026_v30, %v2758_v29  ;;  %v1325_v62 = vmul.f32 0.7978846, %v1229_v34  ;;  %v1212_v30 = vadd.f32 %v1116_v63, %v517_v28  ;;  %3996 = vst [vmem:[#allocation20_spill] sm:$0xff] %v2830_v53 }
  0xc8   : > { %v947_v60 = vmul.f32 0.044715, %v2784_v12  ;;  %v1320_v43 = vmul.f32 0.7978846, %v1224_v33  ;;  %2069 = vtanh.f32 %v1319_v16  ;;  %v2820_v33 = vmul.f32 0.5, %v517_v28 }
  0xc9   : > { %v2762_v46 = vpop.f32.mrf.mxu2  ;;  %v1307_v52 = vmul.f32 0.7978846, %v1211_v14  ;;  %v1044_v16 = vmul.f32 %v948_v2, %v2791_v27  ;;  %v1326_v14 = vmul.f32 0.7978846, %v1230_v19  ;;  %v2837_v28 = vadd.f32 %v2590_v42, %v2815_v48 }
  0xca   : > { %v2766_v50 = vpop.f32.mrf.mxu3  ;;  %v1043_v25 = vmul.f32 %v947_v60, %v2784_v12  ;;  %v833_v60 = vmul.f32 0.5, %v2714_v58  ;;  %v2854_v58 = vadd.f32 %v2692_v9, %v2710_v55  ;;  %v2858_v42 = vadd.f32 %v2694_v11, %v2710_v55 }
  0xcb   : > { %v2769_v36 = vpop.f32.mrf.mxu0  ;;  %v2865_v19 = vadd.f32 %v2744_v24, %v2682_v56  ;;  %v2874_v11 = vmul.f32 0.044715, %v2830_v53 }
  0xcc   : > { %v2773_v0 = vpop.f32.mrf.mxu1  ;;  %3997 = vst [vmem:[#allocation21_spill] sm:$0xff] %v2854_v58  ;;  %v1139_v2 = vmul.f32 %v1043_v25, %v2784_v12  ;;  %v839_v25 = vmul.f32 0.5, %v2707_v31  ;;  %v2888_v31 = vadd.f32 %v2730_v7, %v2696_v15  ;;  %v2894_v53 = vmul.f32 0.044715, %v2858_v42 }
  0xcd   : > { %3998 = vst [vmem:[#allocation22_spill] sm:$0xff] %v2858_v42 }
  0xce   : > { %2001 = vmatmul.msk.f32.gmra.mxu0 %vm382_vm0, %v2528_v37  ;;  %v2070_v63 = vpop.eup %2069  ;;  %4000 = vst [vmem:[#allocation24_spill] sm:$0xff] %v2874_v11 }
  0xcf   : > { %2017 = vmatmul.msk.f32.gmra.mxu1 %vm382_vm0, %v2528_v37  ;;  %v1313_v37 = vmul.f32 0.7978846, %v1217_v35  ;;  %v2813_v35 = vmul.f32 0.5, %v2727_v61  ;;  %v2826_v61 = vadd.f32 %v2680_v47, %v2815_v48  ;;  %v2845_v47 = vadd.f32 %v2738_v20, %v2682_v56  ;;  %4002 = vst [vmem:[#allocation26_spill] sm:$0xff] %v2888_v31 }
  0xd0   : > { %4003 = vst [vmem:[#allocation27_spill] sm:$0xff] %v2894_v53 }
  0xd1   : > { %v2796_v32 = vpop.f32.mrf.mxu2  ;;  %2071 = vtanh.f32 %v1313_v37  ;;  %v1218_v37 = vadd.f32 %v1122_v5, %v2758_v29  ;;  %3995 = vst [vmem:[#allocation19_spill] sm:$0xff] %v2826_v61  ;;  %v1140_v5 = vmul.f32 %v1044_v16, %v2791_v27  ;;  %v953_v24 = vmul.f32 0.044715, %v2845_v47 }
  0xd2   : > { %v2799_v18 = vpop.f32.mrf.mxu3  ;;  %2073 = vtanh.f32 %v1320_v43  ;;  %v2841_v43 = vadd.f32 %v2594_v44, %v2815_v48  ;;  %v845_v16 = vmul.f32 0.5, %v2736_v23  ;;  %v954_v23 = vmul.f32 0.044715, %v2865_v19 }
  0xd3   : > { %v2802_v59 = vpop.f32.mrf.mxu0  ;;  %2075 = vtanh.f32 %v1307_v52  ;;  %v1314_v9 = vmul.f32 0.7978846, %v1218_v37  ;;  %v2871_v52 = vmul.f32 0.044715, %v2826_v61  ;;  %v1511_v37 = vadd.f32 1.0, %v2070_v63 }
  0xd4   : > { %v2806_v3 = vpop.f32.mrf.mxu1  ;;  %2077 = vtanh.f32 %v1325_v62  ;;  %v840_v62 = vmul.f32 0.5, %v2723_v49  ;;  %v1235_v49 = vadd.f32 %v1139_v2, %v2784_v12  ;;  %v2900_v61 = vadd.f32 %v2733_v10, %v2696_v15 }
  0xd5   : > { %2079 = vtanh.f32 %v1326_v14  ;;  %3999 = vst [vmem:[#allocation23_spill] sm:$0xff] %v2871_v52  ;;  %v846_v14 = vmul.f32 0.5, %v2742_v21  ;;  %v2884_v52 = vmul.f32 0.044715, %v2854_v58  ;;  %v1236_v21 = vadd.f32 %v1140_v5, %v2791_v27 }
  0xd6   : > { %2002 = vmatmul.msk.f32.gmra.mxu0 %vm382_vm0, %v2541_v38  ;;  %2081 = vtanh.f32 %v1314_v9  ;;  %4004 = vst [vmem:[#allocation28_spill] sm:$0xff] %v2900_v61  ;;  %v2908_v2 = vmul.f32 0.5, %v2791_v27  ;;  %v1049_v5 = vmul.f32 %v953_v24, %v2845_v47  ;;  %v2913_v9 = vmul.f32 %v1511_v37, %v839_v25 }
  0xd7   : > { %2018 = vmatmul.msk.f32.gmra.mxu1 %vm382_vm0, %v2541_v38  ;;  %v2072_v20 = vpop.eup %2071  ;;  %4001 = vst [vmem:[#allocation25_spill] sm:$0xff] %v2884_v52  ;;  %v1308_v52 = vmul.f32 0.7978846, %v1212_v30  ;;  %v2916_v10 = vmul.f32 0.044715, %v2888_v31  ;;  %v1050_v25 = vmul.f32 %v954_v23, %v2865_v19 }
  0xd8   : > { %v2074_v55 = vpop.eup %2073  ;;  %v1505_v11 = vadd.f32 1.0, %v2072_v20  ;;  %4006 = vst [vmem:[#allocation30_spill] sm:$0xff] %v2913_v9  ;;  %v1331_v27 = vmul.f32 0.7978846, %v1235_v49  ;;  %v1332_v24 = vmul.f32 0.7978846, %v1236_v21 }
  0xd9   : > { %v2832_v38 = vpop.f32.mrf.mxu2  ;;  %v2076_v48 = vpop.eup %2075  ;;  %v1512_v20 = vadd.f32 1.0, %v2074_v55  ;;  %v2929_v30 = vmul.f32 0.044715, %v2900_v61  ;;  %v917_v23 = vmul.f32 0.044715, %v2837_v28 }
  0xda   : > { %v2847_v34 = vpop.f32.mrf.mxu3  ;;  %v2078_v63 = vpop.eup %2077  ;;  %v1499_v41 = vadd.f32 1.0, %v2076_v48  ;;  %v2922_v58 = vmul.f32 %v1505_v11, %v833_v60  ;;  %v1145_v60 = vmul.f32 %v1049_v5, %v2845_v47  ;;  %2083 = vtanh.f32 %v1331_v27 }
  0xdb   : > { %v2860_v44 = vpop.f32.mrf.mxu0  ;;  %v2080_v53 = vpop.eup %2079  ;;  %v1517_v48 = vadd.f32 1.0, %v2078_v63  ;;  %v2934_v9 = vmul.f32 %v1512_v20, %v840_v62  ;;  %v2953_v62 = vmul.f32 0.5, %v2837_v28  ;;  %v1146_v63 = vmul.f32 %v1050_v25, %v2865_v19 }
  0xdc   : > { %v2867_v29 = vpop.f32.mrf.mxu1  ;;  %4007 = vst [vmem:[#allocation31_spill] sm:$0xff] %v2922_v58  ;;  %v2082_v49 = vpop.eup %2081  ;;  %v2943_v11 = vmul.f32 %v1499_v41, %v2813_v35  ;;  %2085 = vtanh.f32 %v1332_v24  ;;  %v2961_v35 = vadd.f32 %v2762_v46, %v2701_v26  ;;  %v1013_v25 = vmul.f32 %v917_v23, %v2837_v28 }
  0xdd   : > { %4008 = vst [vmem:[#allocation32_spill] sm:$0xff] %v2934_v9  ;;  %v2957_v41 = vmul.f32 %v1517_v48, %v845_v16  ;;  %v1506_v27 = vadd.f32 1.0, %v2082_v49  ;;  %v1241_v16 = vadd.f32 %v1145_v60, %v2845_v47  ;;  %2087 = vtanh.f32 %v1308_v52 }
  0xde   : > { %2003 = vmatmul.msk.f32.gmra.mxu0 %vm382_vm0, %v2554_v40  ;;  %4009 = vst [vmem:[#allocation33_spill] sm:$0xff] %v2943_v11  ;;  %v2970_v11 = vadd.f32 %v2860_v44, %v2658_v6  ;;  %v2978_v46 = vadd.f32 %v2766_v50, %v2701_v26  ;;  %v2986_v24 = vadd.f32 %v2867_v29, %v2658_v6 }
  0xdf   : > { %2019 = vmatmul.msk.f32.gmra.mxu1 %vm382_vm0, %v2554_v40  ;;  %v2905_v40 = vmul.f32 0.5, %v2784_v12  ;;  %v2920_v12 = vadd.f32 %v2769_v36, %v2664_v13  ;;  %v1518_v36 = vadd.f32 1.0, %v2080_v53  ;;  %v2950_v53 = vmul.f32 0.5, %v2865_v19  ;;  %4010 = vst [vmem:[#allocation34_spill] sm:$0xff] %v2957_v41 }
  0xe0   : > { %4011 = vst [vmem:[#allocation35_spill] sm:$0xff] %v2961_v35  ;;  %v2998_v49 = vpop.eup %2083  ;;  %v3002_v29 = vadd.f32 %v2806_v3, %v2651_v4  ;;  %v3009_v23 = vmul.f32 %v1506_v27, %v2850_v57  ;;  %v1109_v3 = vmul.f32 %v1013_v25, %v2837_v28 }
  0xe1   : > { %v2902_v7 = vpop.f32.mrf.mxu2  ;;  %v2966_v5 = vmul.f32 %v1518_v36, %v846_v14  ;;  %4015 = vst [vmem:[#allocation39_spill] sm:$0xff] %v2978_v46  ;;  %v2982_v14 = vadd.f32 %v2773_v0, %v2664_v13  ;;  %v1242_v0 = vadd.f32 %v1146_v63, %v2865_v19  ;;  %v1337_v63 = vmul.f32 0.7978846, %v1241_v16 }
  0xe2   : > { %v2910_v42 = vpop.f32.mrf.mxu3  ;;  %4016 = vst [vmem:[#allocation40_spill] sm:$0xff] %v3009_v23  ;;  %v3030_v23 = vmul.f32 0.044715, %v2961_v35  ;;  %v966_v9 = vmul.f32 0.044715, %v3002_v29 }
  0xe3   : > { %4005 = vst [vmem:[#allocation29_spill] sm:$0xff] %v2910_v42  ;;  %v478_v15 = vpop.f32.mrf.mxu0  ;;  %v1338_v25 = vmul.f32 0.7978846, %v1242_v0  ;;  %2089 = vtanh.f32 %v1337_v63 }
  0xe4   : > { %v2925_v55 = vadd.f32 %v478_v15, %v2628_v54  ;;  %v543_v42 = vpop.f32.mrf.mxu1  ;;  %v2939_v15 = vmul.f32 0.5, %v2845_v47  ;;  %4013 = vst [vmem:[#allocation37_spill] sm:$0xff] %v2966_v5  ;;  %v2991_v47 = vadd.f32 %v2802_v59, %v2651_v4 }
  0xe5   : > { %v2932_v37 = vadd.f32 %v543_v42, %v2628_v54  ;;  %v959_v42 = vmul.f32 0.044715, %v2920_v12  ;;  %2091 = vtanh.f32 %v1338_v25 }
  0xe6   : > { %2004 = vmatmul.msk.f32.gmra.mxu0 %vm382_vm0, %v2349_v8  ;;  %v977_v21 = vmul.f32 0.044715, %v2925_v55  ;;  %v965_v26 = vmul.f32 0.044715, %v2991_v47 }
  0xe7   : > { %2020 = vmatmul.msk.f32.gmra.mxu1 %vm382_vm0, %v2349_v8  ;;  %v978_v8 = vmul.f32 0.044715, %v2932_v37  ;;  %v1055_v48 = vmul.f32 %v959_v42, %v2920_v12  ;;  %v3011_v42 = vpop.eup %2085 }
  0xe8   : > { %v1073_v36 = vmul.f32 %v977_v21, %v2925_v55  ;;  %v971_v21 = vmul.f32 0.044715, %v2970_v11  ;;  %v3024_v27 = vpop.eup %2087 }
  0xe9   : > { %v2964_v20 = vpop.f32.mrf.mxu2  ;;  %v1074_v59 = vmul.f32 %v978_v8, %v2932_v37  ;;  %v1151_v57 = vmul.f32 %v1055_v48, %v2920_v12 }
  0xea   : > { %4012 = vst [vmem:[#allocation36_spill] sm:$0xff] %v2964_v20  ;;  %v2972_v58 = vpop.f32.mrf.mxu3  ;;  %v1169_v16 = vmul.f32 %v1073_v36, %v2925_v55  ;;  %v1205_v36 = vadd.f32 %v1109_v3, %v2837_v28  ;;  %v1062_v3 = vmul.f32 %v966_v9, %v3002_v29 }
  0xeb   : > { %4014 = vst [vmem:[#allocation38_spill] sm:$0xff] %v2972_v58  ;;  %v481_v44 = vpop.f32.mrf.mxu0  ;;  %v1170_v48 = vmul.f32 %v1074_v59, %v2932_v37 }
  0xec   : > { %v2994_v52 = vadd.f32 %v481_v44, %v2596_v45  ;;  %v546_v50 = vpop.f32.mrf.mxu1  ;;  %v960_v44 = vmul.f32 0.044715, %v2982_v14 }
  0xed   : > { %v3005_v60 = vadd.f32 %v546_v50, %v2596_v45  ;;  %v972_v50 = vmul.f32 0.044715, %v2986_v24  ;;  %v1266_v63 = vadd.f32 %v1170_v48, %v2932_v37  ;;  %v2090_v48 = vpop.eup %2089 }
  0xee   : > { %v983_v19 = vmul.f32 0.044715, %v2994_v52  ;;  %2005 = vmatmul.msk.f32.gmra.mxu0 %vm382_vm0, %v2376_v17  ;;  %v2092_v13 = vpop.eup %2091 }
  0xef   : > { %v984_v8 = vmul.f32 0.044715, %v3005_v60  ;;  %2021 = vmatmul.msk.f32.gmra.mxu1 %vm382_vm0, %v2376_v17  ;;  %v1068_v4 = vmul.f32 %v972_v50, %v2986_v24  ;;  %v918_v50 = vmul.f32 0.044715, %v2841_v43  ;;  %v1362_v20 = vmul.f32 0.7978846, %v1266_v63 }
  0xf0   : > { %v1079_v45 = vmul.f32 %v983_v19, %v2994_v52  ;;  %v1067_v19 = vmul.f32 %v971_v21, %v2970_v11  ;;  %v1061_v21 = vmul.f32 %v965_v26, %v2991_v47  ;;  %v1301_v26 = vmul.f32 0.7978846, %v1205_v36 }
  0xf1   : > { %v3033_v5 = vpop.f32.mrf.mxu2  ;;  %v1080_v17 = vmul.f32 %v984_v8, %v3005_v60  ;;  %v1056_v8 = vmul.f32 %v960_v44, %v2982_v14  ;;  %v1164_v9 = vmul.f32 %v1068_v4, %v2986_v24 }
  0xf2   : > { %4017 = vst [vmem:[#allocation41_spill] sm:$0xff] %v3033_v5  ;;  %v3037_v41 = vpop.f32.mrf.mxu3  ;;  %v1175_v54 = vmul.f32 %v1079_v45, %v2994_v52  ;;  %v1247_v5 = vadd.f32 %v1151_v57, %v2920_v12  ;;  %v1265_v45 = vadd.f32 %v1169_v16, %v2925_v55  ;;  %v1163_v16 = vmul.f32 %v1067_v19, %v2970_v11 }
  0xf3   : > { %4018 = vst [vmem:[#allocation42_spill] sm:$0xff] %v3037_v41  ;;  %v484_v0 = vpop.f32.mrf.mxu0  ;;  %v1176_v6 = vmul.f32 %v1080_v17, %v3005_v60  ;;  %v1157_v58 = vmul.f32 %v1061_v21, %v2991_v47  ;;  %2093 = vtanh.f32 %v1301_v26  ;;  %v1260_v63 = vadd.f32 %v1164_v9, %v2986_v24 }
  0xf4   : > { %v3047_v59 = vadd.f32 %v484_v0, %v2613_v51  ;;  %v549_v41 = vpop.f32.mrf.mxu1  ;;  %v1271_v57 = vadd.f32 %v1175_v54, %v2994_v52  ;;  %v1343_v17 = vmul.f32 0.7978846, %v1247_v5  ;;  %v1152_v54 = vmul.f32 %v1056_v8, %v2982_v14 }
  0xf5   : > { %v3052_v28 = vadd.f32 %v549_v41, %v2613_v51  ;;  %v1272_v41 = vadd.f32 %v1176_v6, %v3005_v60  ;;  %v1361_v51 = vmul.f32 0.7978846, %v1265_v45  ;;  %v1014_v6 = vmul.f32 %v918_v50, %v2841_v43 }
  0xf6   : > { %v989_v44 = vmul.f32 0.044715, %v3047_v59  ;;  %2006 = vmatmul.msk.f32.gmra.mxu0 %vm382_vm0, %v2403_v22  ;;  %v1259_v45 = vadd.f32 %v1163_v16, %v2970_v11  ;;  %2095 = vtanh.f32 %v1343_v17 }
  0xf7   : > { %v990_v25 = vmul.f32 0.044715, %v3052_v28  ;;  %2022 = vmatmul.msk.f32.gmra.mxu1 %vm382_vm0, %v2403_v22  ;;  %v1158_v22 = vmul.f32 %v1062_v3, %v3002_v29  ;;  %2097 = vtanh.f32 %v1361_v51  ;;  %v1110_v17 = vmul.f32 %v1014_v6, %v2841_v43 }
  0xf8   : > { %v1085_v0 = vmul.f32 %v989_v44, %v3047_v59  ;;  %v1367_v44 = vmul.f32 0.7978846, %v1271_v57  ;;  %v3088_v57 = vmul.f32 0.5, %v2841_v43  ;;  %2099 = vtanh.f32 %v1362_v20 }
  0xf9   : > { %v3070_v19 = vpop.f32.mrf.mxu2  ;;  %v1086_v36 = vmul.f32 %v990_v25, %v3052_v28  ;;  %v1253_v25 = vadd.f32 %v1157_v58, %v2991_v47  ;;  %v1254_v26 = vadd.f32 %v1158_v22, %v3002_v29  ;;  %v1355_v9 = vmul.f32 0.7978846, %v1259_v45 }
  0xfa   : > { %4019 = vst [vmem:[#allocation43_spill] sm:$0xff] %v3070_v19  ;;  %v3075_v4 = vpop.f32.mrf.mxu3  ;;  %v1181_v5 = vmul.f32 %v1085_v0, %v3047_v59  ;;  %v1368_v19 = vmul.f32 0.7978846, %v1272_v41  ;;  %v1248_v41 = vadd.f32 %v1152_v54, %v2982_v14  ;;  %2101 = vtanh.f32 %v1367_v44 }
  0xfb   : > { %v3079_v21 = vpop.f32.mrf.mxu0  ;;  %v1182_v8 = vmul.f32 %v1086_v36, %v3052_v28  ;;  %v1356_v51 = vmul.f32 0.7978846, %v1260_v63  ;;  %v1523_v58 = vadd.f32 1.0, %v2998_v49  ;;  %v1524_v20 = vadd.f32 1.0, %v3011_v42 }
  0xfc   : > { %4020 = vst [vmem:[#allocation44_spill] sm:$0xff] %v3079_v21  ;;  %v3083_v3 = vpop.f32.mrf.mxu1  ;;  %v1277_v50 = vadd.f32 %v1181_v5, %v3047_v59  ;;  %2103 = vtanh.f32 %v1368_v19  ;;  %v3095_v5 = vpop.eup %2093  ;;  %v1500_v22 = vadd.f32 1.0, %v3024_v27  ;;  %v3103_v54 = vadd.f32 %v2796_v32, %v2686_v1 }
  0xfd   : > { %4021 = vst [vmem:[#allocation45_spill] sm:$0xff] %v3083_v3  ;;  %v1278_v16 = vadd.f32 %v1182_v8, %v3052_v28  ;;  %v1349_v3 = vmul.f32 0.7978846, %v1253_v25  ;;  %v3099_v8 = vpop.eup %2095  ;;  %v3107_v19 = vadd.f32 %v2799_v18, %v2686_v1  ;;  %v1350_v49 = vmul.f32 0.7978846, %v1254_v26 }
  0xfe   : > { %v1373_v0 = vmul.f32 0.7978846, %v1277_v50  ;;  %v2098_v44 = vpop.eup %2097  ;;  %v3112_v45 = vmul.f32 0.044715, %v2978_v46  ;;  %v1344_v27 = vmul.f32 0.7978846, %v1248_v41  ;;  %v1206_v63 = vadd.f32 %v1110_v17, %v2841_v43 }
  0xff   : > { %v1374_v36 = vmul.f32 0.7978846, %v1278_v16  ;;  %4022 = vst [vmem:[#allocation46_spill] sm:$0xff] %v3107_v19  ;;  %v2100_v32 = vpop.eup %2099  ;;  %v3120_v18 = vmul.f32 0.5, %v2920_v12  ;;  %v3123_v25 = vmul.f32 0.5, %v2982_v14  ;;  %v1529_v16 = vadd.f32 1.0, %v2090_v48 }
 0x100   : > { %2105 = vtanh.f32 %v1373_v0  ;;  %v2102_v26 = vpop.eup %2101  ;;  %v3131_v43 = vmul.f32 %v1524_v20, %v2908_v2  ;;  %v3134_v41 = vmul.f32 %v1500_v22, %v2820_v33  ;;  %v943_v12 = vmul.f32 0.044715, %v3103_v54 }
 0x101   : > { %v3109_v6 = vpop.f32.mrf.mxu2  ;;  %2107 = vtanh.f32 %v1374_v36  ;;  %v944_v14 = vmul.f32 0.044715, %v3107_v19  ;;  %v1530_v48 = vadd.f32 1.0, %v2092_v13  ;;  %v1302_v2 = vmul.f32 0.7978846, %v1206_v63 }
 0x102   : > { %v3114_v42 = vpop.f32.mrf.mxu3  ;;  %2109 = vtanh.f32 %v1355_v9  ;;  %v3128_v9 = vmul.f32 %v1523_v58, %v2905_v40  ;;  %v2104_v17 = vpop.eup %2103  ;;  %v3142_v40 = vmul.f32 0.5, %v3002_v29  ;;  %v893_v33 = vmul.f32 0.5, %v3047_v59 }
 0x103   : > { %v3117_v50 = vpop.f32.mrf.mxu0  ;;  %2111 = vtanh.f32 %v1356_v51  ;;  %v3139_v51 = vmul.f32 0.5, %v2991_v47  ;;  %v1559_v20 = vadd.f32 1.0, %v2102_v26  ;;  %v3146_v22 = vmul.f32 %v1529_v16, %v2939_v15 }
 0x104   : > { %4023 = vst [vmem:[#allocation47_spill] sm:$0xff] %v3117_v50  ;;  %v3125_v0 = vpop.f32.mrf.mxu1  ;;  %2113 = vtanh.f32 %v1349_v3  ;;  %v3150_v13 = vadd.f32 %v2832_v38, %v2678_v39  ;;  %v894_v47 = vmul.f32 0.5, %v3052_v28  ;;  %v1560_v29 = vadd.f32 1.0, %v2104_v17 }
 0x105   : > { %4024 = vst [vmem:[#allocation48_spill] sm:$0xff] %v3125_v0  ;;  %2115 = vtanh.f32 %v1350_v49  ;;  %v887_v59 = vmul.f32 0.5, %v2994_v52  ;;  %v3157_v26 = vmul.f32 %v1530_v48, %v2950_v53  ;;  %v888_v38 = vmul.f32 0.5, %v3005_v60 }
 0x106   : > { %v2106_v36 = vpop.eup %2105  ;;  %2117 = vtanh.f32 %v1344_v27  ;;  %v1554_v21 = vadd.f32 1.0, %v2100_v32  ;;  %v3164_v17 = vadd.f32 %v2847_v34, %v2678_v39  ;;  %v881_v53 = vmul.f32 0.5, %v2925_v55 }
 0x107   : > { %v2108_v3 = vpop.eup %2107  ;;  %v1565_v58 = vadd.f32 1.0, %v2106_v36  ;;  %v1553_v36 = vadd.f32 1.0, %v2098_v44  ;;  %2119 = vtanh.f32 %v1302_v2  ;;  %v1655_v52 = vmul.f32 %v1559_v20, %v887_v59 }
 0x108   : > { %v2110_v1 = vpop.eup %2109  ;;  %v1566_v49 = vadd.f32 1.0, %v2108_v3  ;;  %4025 = vst [vmem:[#allocation49_spill] sm:$0xff] %v3164_v17  ;;  %v882_v60 = vmul.f32 0.5, %v2932_v37  ;;  %v1027_v2 = vmul.f32 %v2916_v10, %v2888_v31  ;;  %v1033_v55 = vmul.f32 %v3030_v23, %v2961_v35 }
 0x109   : > { %v2112_v0 = vpop.eup %2111  ;;  %v3153_v27 = vpop.f32.mrf.mxu2  ;;  %v1661_v63 = vmul.f32 %v1565_v58, %v893_v33  ;;  %v1547_v44 = vadd.f32 1.0, %v2110_v1  ;;  %v1656_v58 = vmul.f32 %v1560_v29, %v888_v38  ;;  %v1649_v34 = vmul.f32 %v1553_v36, %v881_v53 }
 0x10a   : > { %v2114_v15 = vpop.eup %2113  ;;  %v3159_v16 = vpop.f32.mrf.mxu3  ;;  %v1662_v50 = vmul.f32 %v1566_v49, %v894_v47  ;;  %v1548_v32 = vadd.f32 1.0, %v2112_v0  ;;  %v875_v47 = vmul.f32 0.5, %v2970_v11  ;;  %v1650_v1 = vmul.f32 %v1554_v21, %v882_v60 }
 0x10b   : > { %v2116_v28 = vpop.eup %2115  ;;  %v3166_v3 = vpop.f32.mrf.mxu0  ;;  %1696 = vmatpush.msra.mxu2 %v1661_v63  ;;  %v1541_v49 = vadd.f32 1.0, %v2114_v15  ;;  %v876_v20 = vmul.f32 0.5, %v2986_v24  ;;  %v1039_v29 = vmul.f32 %v943_v12, %v3103_v54  ;;  %v949_v37 = vmul.f32 0.044715, %v3150_v13 }
 0x10c   : > { %4026 = vst [vmem:[#allocation50_spill] sm:$0xff] %v3166_v3  ;;  %v2118_v48 = vpop.eup %2117  ;;  %v3169_v33 = vpop.f32.mrf.mxu1  ;;  %1716 = vmatpush.msra.mxu3 %v1662_v50  ;;  %v1542_v50 = vadd.f32 1.0, %v2116_v28  ;;  %v1643_v0 = vmul.f32 %v1547_v44, %v875_v47  ;;  %v1535_v10 = vadd.f32 1.0, %v3099_v8  ;;  %v1040_v63 = vmul.f32 %v944_v14, %v3107_v19  ;;  %v4028_v28 = vld [vmem:[#allocation29_spill] sm:$0xff] }
 0x10d   : > { %4027 = vst [vmem:[#allocation51_spill] sm:$0xff] %v3169_v33  ;;  %1697 = vmatpush.msra.mxu2 %v1655_v52  ;;  %v2120_v11 = vpop.eup %2119  ;;  %v1644_v59 = vmul.f32 %v1548_v32, %v876_v20  ;;  %v1536_v36 = vadd.f32 1.0, %v2118_v48  ;;  %v1034_v23 = vmul.f32 %v3112_v45, %v2978_v46  ;;  %v1123_v24 = vmul.f32 %v1027_v2, %v2888_v31  ;;  %v4032_v47 = vld [vmem:[#allocation25_spill] sm:$0xff] }
 0x10e   : > { %1717 = vmatpush.msra.mxu3 %v1656_v58  ;;  %v950_v21 = vmul.f32 0.044715, %v3164_v17  ;;  %v1637_v15 = vmul.f32 %v1541_v49, %v3139_v51  ;;  %v1493_v8 = vadd.f32 1.0, %v3095_v5  ;;  %v1129_v14 = vmul.f32 %v1033_v55, %v2961_v35 }
 0x10f   : > { %1698 = vmatpush.msra.mxu2 %v1649_v34  ;;  %v3193_v38 = vadd.f32 %v2902_v7, %v2682_v56  ;;  %v3197_v45 = vadd.f32 %v4028_v28, %v2682_v56  ;;  %v1638_v53 = vmul.f32 %v1542_v50, %v3142_v40  ;;  %v1135_v44 = vmul.f32 %v1039_v29, %v3103_v54  ;;  %v4031_v34 = vld [vmem:[#allocation21_spill] sm:$0xff]  ;;  %v4033_v29 = vld [vmem:[#allocation11_spill] sm:$0xff] }
 0x110   : > { %1718 = vmatpush.msra.mxu3 %v1650_v1  ;;  %v1631_v5 = vmul.f32 %v1535_v10, %v3120_v18  ;;  %v1494_v48 = vadd.f32 1.0, %v2120_v11  ;;  %v1045_v7 = vmul.f32 %v949_v37, %v3150_v13  ;;  %v1136_v58 = vmul.f32 %v1040_v63, %v3107_v19  ;;  %v4034_v37 = vld [vmem:[#allocation36_spill] sm:$0xff]  ;;  %v4035_v10 = vld [vmem:[#allocation38_spill] sm:$0xff] }
 0x111   : > { %v3186_v12 = vpop.f32.mrf.mxu2  ;;  %1699 = vmatpush.msra.mxu2 %v1643_v0  ;;  %v1632_v32 = vmul.f32 %v1536_v36, %v3123_v25  ;;  %v1130_v2 = vmul.f32 %v1034_v23, %v2978_v46  ;;  %v1219_v40 = vadd.f32 %v1123_v24, %v2888_v31  ;;  %v1021_v49 = vmul.f32 %v4032_v47, %v4031_v34  ;;  %v4036_v36 = vld [vmem:[#allocation9_spill] sm:$0xff] }
 0x112   : > { %v3199_v52 = vpop.f32.mrf.mxu3  ;;  %1719 = vmatpush.msra.mxu3 %v1644_v59  ;;  %v3216_v18 = vmul.f32 %v1493_v8, %v2953_v62  ;;  %v1046_v55 = vmul.f32 %v950_v21, %v3164_v17  ;;  %v1225_v1 = vadd.f32 %v1129_v14, %v2961_v35  ;;  %v1028_v20 = vmul.f32 %v2929_v30, %v2900_v61  ;;  %v4037_v23 = vld [vmem:[#allocation41_spill] sm:$0xff] }
 0x113   : > { %v3203_v51 = vpop.f32.mrf.mxu0  ;;  %1700 = vmatpush.msra.mxu2 %v1637_v15  ;;  %v955_v25 = vmul.f32 0.044715, %v3193_v38  ;;  %v3224_v50 = vmul.f32 0.044715, %v3197_v45  ;;  %v3228_v0 = vadd.f32 %v4034_v37, %v4033_v29  ;;  %v1231_v62 = vadd.f32 %v1135_v44, %v3103_v54 }
 0x114   : > { %4029 = vst [vmem:[#allocation29_spill] sm:$0xff] %v3203_v51  ;;  %v3208_v60 = vpop.f32.mrf.mxu1  ;;  %1720 = vmatpush.msra.mxu3 %v1638_v53  ;;  %v3233_v63 = vadd.f32 %v4035_v10, %v4033_v29  ;;  %v3237_v30 = vmul.f32 %v1494_v48, %v3088_v57  ;;  %v1141_v11 = vmul.f32 %v1045_v7, %v3150_v13  ;;  %v1315_v15 = vmul.f32 0.7978846, %v1219_v40  ;;  %v4040_v48 = vld [vmem:[#allocation43_spill] sm:$0xff]  ;;  %v4041_v40 = vld [vmem:[#allocation8_spill] sm:$0xff] }
 0x115   : > { %4030 = vst [vmem:[#allocation52_spill] sm:$0xff] %v3208_v60  ;;  %1701 = vmatpush.msra.mxu2 %v1631_v5  ;;  %v1232_v59 = vadd.f32 %v1136_v58, %v3107_v19  ;;  %v3243_v24 = vadd.f32 %v4037_v23, %v4036_v36  ;;  %v1226_v21 = vadd.f32 %v1130_v2, %v2978_v46  ;;  %v1321_v53 = vmul.f32 0.7978846, %v1225_v1  ;;  %v4039_v5 = vld [vmem:[#allocation10_spill] sm:$0xff] }
 0x116   : > { %1721 = vmatpush.msra.mxu3 %v1632_v32  ;;  %v3248_v8 = vmul.f32 %v1021_v49, %v4031_v34  ;;  %v1142_v28 = vmul.f32 %v1046_v55, %v3164_v17  ;;  %v1124_v44 = vmul.f32 %v1028_v20, %v2900_v61  ;;  %v3260_v7 = vadd.f32 %v4040_v48, %v4039_v5  ;;  %v4043_v55 = vld [vmem:[#allocation34_spill] sm:$0xff]  ;;  %v4047_v48 = vld [vmem:[#allocation32_spill] sm:$0xff] }
 0x117   : > { %1702 = vmatpush.msra.mxu2 %v3146_v22  ;;  %v4038_v22 = vld [vmem:[#allocation42_spill] sm:$0xff]  ;;  %v3264_v58 = vadd.f32 %v3075_v4, %v4039_v5  ;;  %v1327_v2 = vmul.f32 0.7978846, %v1231_v62  ;;  %v3270_v47 = vadd.f32 %v3109_v6, %v4041_v40  ;;  %v1237_v1 = vadd.f32 %v1141_v11, %v3150_v13  ;;  %v4045_v62 = vld [vmem:[#allocation37_spill] sm:$0xff]  ;;  %v4056_v5 = vld [vmem:[#allocation7_spill] sm:$0xff] }
 0x118   : > { %1722 = vmatpush.msra.mxu3 %v3157_v26  ;;  %v3252_v57 = vadd.f32 %v4038_v22, %v4036_v36  ;;  %v961_v26 = vmul.f32 0.044715, %v3228_v0  ;;  %v1328_v20 = vmul.f32 0.7978846, %v1232_v59  ;;  %v967_v4 = vmul.f32 0.044715, %v3243_v24 }
 0x119   : > { %v617_v14 = vpop.f32.mrf.mxu2  ;;  %1703 = vmatpush.msra.mxu2 %v3128_v9  ;;  %v962_v9 = vmul.f32 0.044715, %v3233_v63  ;;  %v3279_v37 = vadd.f32 %v3114_v42, %v4041_v40  ;;  %v1322_v10 = vmul.f32 0.7978846, %v1226_v21  ;;  %2121 = vtanh.f32 %v1315_v15  ;;  %v4046_v23 = vld [vmem:[#allocation30_spill] sm:$0xff]  ;;  %v4050_v40 = vld [vmem:[#allocation40_spill] sm:$0xff] }
 0x11a   : > { %v682_v32 = vpop.f32.mrf.mxu3  ;;  %1723 = vmatpush.msra.mxu3 %v3131_v43  ;;  %v968_v6 = vmul.f32 0.044715, %v3252_v57  ;;  %v1238_v22 = vadd.f32 %v1142_v28, %v3164_v17  ;;  %2123 = vtanh.f32 %v1321_v53  ;;  %v3288_v11 = vadd.f32 %v1124_v44, %v2900_v61 }
 0x11b   : > { %v3272_v49 = vpop.f32.mrf.mxu0  ;;  %1704 = vmatpush.msra.mxu2 %v4043_v55  ;;  %v3291_v59 = vmul.f32 0.044715, %v3260_v7  ;;  %v3294_v42 = vmul.f32 0.044715, %v3264_v58  ;;  %v1057_v21 = vmul.f32 %v961_v26, %v3228_v0  ;;  %2125 = vtanh.f32 %v1327_v2  ;;  %v4048_v55 = vld [vmem:[#allocation31_spill] sm:$0xff]  ;;  %v4051_v2 = vld [vmem:[#allocation6_spill] sm:$0xff] }
 0x11c   : > { %4042 = vst [vmem:[#allocation21_spill] sm:$0xff] %v3272_v49  ;;  %v3281_v43 = vpop.f32.mrf.mxu1  ;;  %1724 = vmatpush.msra.mxu3 %v4045_v62  ;;  %v3299_v15 = vmul.f32 0.044715, %v3270_v47  ;;  %v1051_v28 = vmul.f32 %v955_v25, %v3193_v38  ;;  %v1333_v53 = vmul.f32 0.7978846, %v1237_v1  ;;  %2127 = vtanh.f32 %v1328_v20  ;;  %v4049_v62 = vld [vmem:[#allocation3_spill] sm:$0xff] }
 0x11d   : > { %4044 = vst [vmem:[#allocation25_spill] sm:$0xff] %v3281_v43  ;;  %1705 = vmatpush.msra.mxu2 %v4046_v23  ;;  %v3304_v44 = vmul.f32 0.044715, %v3279_v37  ;;  %v3307_v23 = vadd.f32 %v617_v14, %v4049_v62  ;;  %v1063_v26 = vmul.f32 %v967_v4, %v3243_v24  ;;  %2129 = vtanh.f32 %v1322_v10  ;;  %v4052_v1 = vld [vmem:[#allocation33_spill] sm:$0xff]  ;;  %v3322_v14 = vld [vmem:[%s3908_s3] sm:$0x1] }
 0x11e   : > { %1725 = vmatpush.msra.mxu3 %v4047_v48  ;;  %v3313_v48 = vadd.f32 %v3186_v12, %v4051_v2  ;;  %4053 = vst [vmem:[#allocation36_spill] sm:$0xff] %v3322_v14  ;;  %v1334_v20 = vmul.f32 0.7978846, %v1238_v22  ;;  %v4055_v10 = vld [vmem:[#allocation5_spill] sm:$0xff]  ;;  %2131 = vtanh.f32 %v1333_v53  ;;  %v3378_v39 = vadd.f32 %v3199_v52, %v4051_v2  ;;  %v4062_v2 = vld [vmem:[#allocation4_spill] sm:$0xff] }
 0x11f   : > { %1706 = vmatpush.msra.mxu2 %v4048_v55  ;;  %v3316_v55 = vadd.f32 %v682_v32, %v4049_v62  ;;  %v3325_v4 = vpop.eup %2121  ;;  %v3329_v12 = vadd.f32 %v3153_v27, %v4055_v10  ;;  %v1052_v62 = vmul.f32 %v3224_v50, %v3197_v45  ;;  %v997_v50 = vmul.f32 0.044715, %v3307_v23 }
 0x120   : > { %1726 = vmatpush.msra.mxu3 %v4050_v40  ;;  %v1064_v40 = vmul.f32 %v968_v6, %v3252_v57  ;;  %4054 = vst [vmem:[#allocation38_spill] sm:$0xff] %v3325_v4  ;;  %v3338_v29 = vpop.eup %2123  ;;  %v3342_v6 = vadd.f32 %v3159_v16, %v4055_v10  ;;  %v1159_v16 = vmul.f32 %v1063_v26, %v3243_v24  ;;  %2133 = vtanh.f32 %v1334_v20 }
 0x121   : > { %v620_v25 = vpop.f32.mrf.mxu2  ;;  %1707 = vmatpush.msra.mxu2 %v4052_v1  ;;  %v1153_v1 = vmul.f32 %v1057_v21, %v3228_v0  ;;  %4057 = vst [vmem:[#allocation41_spill] sm:$0xff] %v3338_v29  ;;  %v3351_v21 = vpop.eup %2125  ;;  %v998_v53 = vmul.f32 0.044715, %v3316_v55  ;;  %v1093_v60 = vmul.f32 %v997_v50, %v3307_v23 }
 0x122   : > { %v3332_v32 = vadd.f32 %v620_v25, %v4056_v5  ;;  %v685_v36 = vpop.f32.mrf.mxu3  ;;  %1727 = vmatpush.msra.mxu3 %v3134_v41  ;;  %v1147_v41 = vmul.f32 %v1051_v28, %v3193_v38  ;;  %v991_v28 = vmul.f32 0.044715, %v3313_v48  ;;  %v1160_v10 = vmul.f32 %v1064_v40, %v3252_v57 }
 0x123   : > { %v3345_v27 = vadd.f32 %v685_v36, %v4056_v5  ;;  %v3347_v22 = vpop.f32.mrf.mxu0  ;;  %1708 = vmatpush.msra.mxu2 %v3216_v18  ;;  %v1058_v36 = vmul.f32 %v962_v9, %v3233_v63  ;;  %v3361_v18 = vpop.eup %2127  ;;  %v1249_v26 = vadd.f32 %v1153_v1, %v3228_v0  ;;  %v1148_v9 = vmul.f32 %v1052_v62, %v3197_v45 }
 0x124   : > { %4058 = vst [vmem:[#allocation42_spill] sm:$0xff] %v3347_v22  ;;  %v1003_v25 = vmul.f32 0.044715, %v3332_v32  ;;  %v3355_v56 = vpop.f32.mrf.mxu1  ;;  %1728 = vmatpush.msra.mxu3 %v3237_v30  ;;  %1709 = vmatmul.f32.vlgmr.msra.gmra.mxu2 %v3322_v14  ;;  %v985_v30 = vmul.f32 0.044715, %v3329_v12  ;;  %v3382_v40 = vadd.f32 %v1147_v41, %v3193_v38  ;;  %v1255_v1 = vadd.f32 %v1159_v16, %v3243_v24 }
 0x125   : > { %4059 = vst [vmem:[#allocation43_spill] sm:$0xff] %v3355_v56  ;;  %v1004_v5 = vmul.f32 0.044715, %v3345_v27  ;;  %1729 = vmatmul.f32.vlgmr.msra.gmra.mxu3 %v3322_v14  ;;  %v3368_v56 = vpop.eup %2129  ;;  %v3374_v22 = vmul.f32 0.044715, %v3342_v6  ;;  %v1154_v62 = vmul.f32 %v1058_v36, %v3233_v63  ;;  %v1094_v52 = vmul.f32 %v998_v53, %v3316_v55 }
 0x126   : > { %4060 = vst [vmem:[#allocation34_spill] sm:$0xff] %v3361_v18  ;;  %v1099_v43 = vmul.f32 %v1003_v25, %v3332_v32  ;;  %v3388_v20 = vpop.eup %2131  ;;  %v1087_v25 = vmul.f32 %v991_v28, %v3313_v48  ;;  %v1256_v41 = vadd.f32 %v1160_v10, %v3252_v57  ;;  %v1189_v16 = vmul.f32 %v1093_v60, %v3307_v23 }
 0x127   : > { %4061 = vst [vmem:[#allocation37_spill] sm:$0xff] %v3368_v56  ;;  %v1100_v49 = vmul.f32 %v1004_v5, %v3345_v27  ;;  %v1345_v36 = vmul.f32 0.7978846, %v1249_v26  ;;  %v1190_v28 = vmul.f32 %v1094_v52, %v3316_v55  ;;  %v1244_v10 = vadd.f32 %v1148_v9, %v3197_v45  ;;  %v3407_v53 = vpop.eup %2133 }
 0x128   : > { %v1195_v14 = vmul.f32 %v1099_v43, %v3332_v32  ;;  %4064 = vst [vmem:[#allocation32_spill] sm:$0xff] %v3407_v53  ;;  %v1351_v26 = vmul.f32 0.7978846, %v1255_v1  ;;  %v1250_v52 = vadd.f32 %v1154_v62, %v3233_v63  ;;  %v1285_v46 = vadd.f32 %v1189_v16, %v3307_v23 }
 0x129   : > { %v623_v51 = vpop.f32.mrf.mxu2  ;;  %v1196_v50 = vmul.f32 %v1100_v49, %v3345_v27  ;;  %v1183_v49 = vmul.f32 %v1087_v25, %v3313_v48  ;;  %2135 = vtanh.f32 %v1345_v36  ;;  %v1069_v1 = vmul.f32 %v3291_v59, %v3260_v7 }
 0x12a   : > { %v3395_v33 = vadd.f32 %v623_v51, %v4062_v2  ;;  %v688_v5 = vpop.f32.mrf.mxu3  ;;  %v1291_v43 = vadd.f32 %v1195_v14, %v3332_v32  ;;  %v1352_v14 = vmul.f32 0.7978846, %v1256_v41  ;;  %v1381_v31 = vmul.f32 0.7978846, %v1285_v46 }
 0x12b   : > { %v3400_v3 = vadd.f32 %v688_v5, %v4062_v2  ;;  %v3402_v61 = vpop.f32.mrf.mxu0  ;;  %v1292_v60 = vadd.f32 %v1196_v50, %v3345_v27  ;;  %v992_v5 = vmul.f32 0.044715, %v3378_v39  ;;  %v1286_v50 = vadd.f32 %v1190_v28, %v3316_v55 }
 0x12c   : > { %4063 = vst [vmem:[#allocation30_spill] sm:$0xff] %v3402_v61  ;;  %v1009_v51 = vmul.f32 0.044715, %v3395_v33  ;;  %v3410_v56 = vpop.f32.mrf.mxu1  ;;  %v1387_v61 = vmul.f32 0.7978846, %v1291_v43  ;;  %v1279_v41 = vadd.f32 %v1183_v49, %v3313_v48  ;;  %2137 = vtanh.f32 %v1351_v26 }
 0x12d   : > { %4065 = vst [vmem:[#allocation31_spill] sm:$0xff] %v3410_v56  ;;  %v1010_v2 = vmul.f32 0.044715, %v3400_v3  ;;  %v1388_v4 = vmul.f32 0.7978846, %v1292_v60  ;;  %v1088_v16 = vmul.f32 %v992_v5, %v3378_v39  ;;  %2139 = vtanh.f32 %v1352_v14 }
 0x12e   : > { %v1105_v9 = vmul.f32 %v1009_v51, %v3395_v33  ;;  %v1382_v43 = vmul.f32 0.7978846, %v1286_v50  ;;  %2141 = vtanh.f32 %v1387_v61  ;;  %v1081_v36 = vmul.f32 %v985_v30, %v3329_v12 }
 0x12f   : > { %v1106_v56 = vmul.f32 %v1010_v2, %v3400_v3  ;;  %v1070_v59 = vmul.f32 %v3294_v42, %v3264_v58  ;;  %2143 = vtanh.f32 %v1388_v4  ;;  %v1184_v51 = vmul.f32 %v1088_v16, %v3378_v39  ;;  %v3436_v60 = vpop.eup %2135 }
 0x130   : > { %v1201_v25 = vmul.f32 %v1105_v9, %v3395_v33  ;;  %2145 = vtanh.f32 %v1381_v31  ;;  %v1375_v61 = vmul.f32 0.7978846, %v1279_v41  ;;  %v1177_v30 = vmul.f32 %v1081_v36, %v3329_v12 }
 0x131   : > { %v1202_v62 = vmul.f32 %v1106_v56, %v3400_v3  ;;  %v1165_v56 = vmul.f32 %v1069_v1, %v3260_v7  ;;  %2147 = vtanh.f32 %v1382_v43  ;;  %v1280_v42 = vadd.f32 %v1184_v51, %v3378_v39  ;;  %v4069_v43 = vld [vmem:[#allocation27_spill] sm:$0xff] }
 0x132   : > { %v1297_v2 = vadd.f32 %v1201_v25, %v3395_v33  ;;  %v1082_v4 = vmul.f32 %v3374_v22, %v3342_v6  ;;  %v3444_v14 = vpop.eup %2137  ;;  %v1273_v9 = vadd.f32 %v1177_v30, %v3329_v12  ;;  %v1166_v50 = vmul.f32 %v1070_v59, %v3264_v58  ;;  %v4071_v59 = vld [vmem:[#allocation23_spill] sm:$0xff] }
 0x133   : > { %v3431_v28 = vpop.f32.mrf.mxu0  ;;  %v1298_v46 = vadd.f32 %v1202_v62, %v3400_v3  ;;  %v3449_v1 = vmul.f32 0.7978846, %v3382_v40  ;;  %v3451_v31 = vpop.eup %2139  ;;  %v1376_v25 = vmul.f32 0.7978846, %v1280_v42  ;;  %v3453_v41 = vmul.f32 0.7978846, %v1244_v10 }
 0x134   : > { %4066 = vst [vmem:[#allocation40_spill] sm:$0xff] %v3431_v28  ;;  %v3438_v49 = vpop.f32.mrf.mxu1  ;;  %v1393_v26 = vmul.f32 0.7978846, %v1297_v2  ;;  %v4068_v62 = vld [vmem:[#allocation22_spill] sm:$0xff]  ;;  %v2142_v22 = vpop.eup %2141  ;;  %v1369_v2 = vmul.f32 0.7978846, %v1273_v9  ;;  %v1178_v36 = vmul.f32 %v1082_v4, %v3342_v6  ;;  %v1261_v10 = vadd.f32 %v1165_v56, %v3260_v7 }
 0x135   : > { %4067 = vst [vmem:[#allocation33_spill] sm:$0xff] %v3438_v49  ;;  %v1394_v5 = vmul.f32 0.7978846, %v1298_v46  ;;  %v3457_v16 = vmul.f32 %v4069_v43, %v4068_v62  ;;  %v4070_v46 = vld [vmem:[#allocation19_spill] sm:$0xff]  ;;  %v2144_v40 = vpop.eup %2143  ;;  %v3467_v30 = vmul.f32 0.7978846, %v1250_v52  ;;  %v1262_v4 = vadd.f32 %v1166_v50, %v3264_v58 }
 0x136   : > { %2149 = vtanh.f32 %v1393_v26  ;;  %v3462_v51 = vmul.f32 %v4071_v59, %v4070_v46  ;;  %v1075_v26 = vmul.f32 %v3299_v15, %v3270_v47  ;;  %v907_v42 = vmul.f32 0.5, %v3332_v32 }
 0x137   : > { %2151 = vtanh.f32 %v1394_v5  ;;  %v2146_v5 = vpop.eup %2145  ;;  %v901_v59 = vmul.f32 0.5, %v3307_v23  ;;  %v1076_v52 = vmul.f32 %v3304_v44, %v3279_v37  ;;  %v913_v32 = vmul.f32 0.5, %v3395_v33 }
 0x138   : > { %2153 = vtanh.f32 %v1375_v61  ;;  %v1274_v61 = vadd.f32 %v1178_v36, %v3342_v6  ;;  %v2148_v9 = vpop.eup %2147  ;;  %v1171_v15 = vmul.f32 %v1075_v26, %v3270_v47  ;;  %v895_v50 = vmul.f32 0.5, %v3313_v48 }
 0x139   : > { %2155 = vtanh.f32 %v1376_v25  ;;  %v908_v25 = vmul.f32 0.5, %v3345_v27  ;;  %v914_v27 = vmul.f32 0.5, %v3400_v3  ;;  %v1579_v23 = vadd.f32 1.0, %v2142_v22 }
 0x13a   : > { %2157 = vtanh.f32 %v1369_v2  ;;  %v902_v2 = vmul.f32 0.5, %v3316_v55  ;;  %v1370_v36 = vmul.f32 0.7978846, %v1274_v61  ;;  %v1267_v26 = vadd.f32 %v1171_v15, %v3270_v47 }
 0x13b   : > { %v3472_v43 = vpop.f32.mrf.mxu0  ;;  %v1580_v44 = vadd.f32 1.0, %v2144_v40  ;;  %v1573_v35 = vadd.f32 1.0, %v2146_v5  ;;  %v1357_v53 = vmul.f32 0.7978846, %v1261_v10  ;;  %v1574_v17 = vadd.f32 1.0, %v2148_v9 }
 0x13c   : > { %4072 = vst [vmem:[#allocation22_spill] sm:$0xff] %v3472_v43  ;;  %v2150_v56 = vpop.eup %2149  ;;  %v3479_v49 = vpop.f32.mrf.mxu1  ;;  %2159 = vtanh.f32 %v1370_v36  ;;  %v1363_v55 = vmul.f32 0.7978846, %v1267_v26  ;;  %v1675_v22 = vmul.f32 %v1579_v23, %v907_v42  ;;  %v1358_v40 = vmul.f32 0.7978846, %v1262_v4  ;;  %v4074_v4 = vld [vmem:[#allocation20_spill] sm:$0xff] }
 0x13d   : > { %4073 = vst [vmem:[#allocation27_spill] sm:$0xff] %v3479_v49  ;;  %v2152_v43 = vpop.eup %2151  ;;  %v1585_v28 = vadd.f32 1.0, %v2150_v56  ;;  %v1172_v49 = vmul.f32 %v1076_v52, %v3279_v37  ;;  %v896_v56 = vmul.f32 0.5, %v3378_v39  ;;  %v1669_v10 = vmul.f32 %v1573_v35, %v901_v59 }
 0x13e   : > { %v2154_v18 = vpop.eup %2153  ;;  %v1586_v19 = vadd.f32 1.0, %v2152_v43  ;;  %2161 = vtanh.f32 %v1363_v55  ;;  %v1676_v43 = vmul.f32 %v1580_v44, %v908_v25  ;;  %v890_v42 = vmul.f32 0.5, %v3342_v6 }
 0x13f   : > { %v2156_v29 = vpop.eup %2155  ;;  %v1681_v33 = vmul.f32 %v1585_v28, %v913_v32  ;;  %v1268_v3 = vadd.f32 %v1172_v49, %v3279_v37  ;;  %v1567_v15 = vadd.f32 1.0, %v2154_v18  ;;  %2163 = vtanh.f32 %v1357_v53 }
 0x140   : > { %v2158_v48 = vpop.eup %2157  ;;  %v1682_v61 = vmul.f32 %v1586_v19, %v914_v27  ;;  %v1568_v52 = vadd.f32 1.0, %v2156_v29  ;;  %v889_v19 = vmul.f32 0.5, %v3329_v12  ;;  %2165 = vtanh.f32 %v1358_v40  ;;  %v4075_v29 = vld [vmem:[#allocation24_spill] sm:$0xff] }
 0x141   : > { %1733 = vmatpush.msrb.mxu2 %v1681_v33  ;;  %v1364_v36 = vmul.f32 0.7978846, %v1268_v3  ;;  %v1561_v5 = vadd.f32 1.0, %v2158_v48  ;;  %v1670_v18 = vmul.f32 %v1574_v17, %v902_v2  ;;  %v1016_v9 = vmul.f32 %v4075_v29, %v4074_v4 }
 0x142   : > { %1753 = vmatpush.msrb.mxu3 %v1682_v61  ;;  %v2160_v39 = vpop.eup %2159  ;;  %v1663_v53 = vmul.f32 %v1567_v15, %v895_v50  ;;  %v1111_v35 = vmul.f32 %v3462_v51, %v4070_v46  ;;  %v1664_v12 = vmul.f32 %v1568_v52, %v896_v56  ;;  %v883_v59 = vmul.f32 0.5, %v3270_v47 }
 0x143   : > { %v3489_v28 = vpop.f32.mrf.mxu0  ;;  %1734 = vmatpush.msrb.mxu2 %v1675_v22  ;;  %2167 = vtanh.f32 %v1364_v36  ;;  %v1562_v25 = vadd.f32 1.0, %v2160_v39  ;;  %v1118_v17 = vmul.f32 %v3457_v16, %v4068_v62  ;;  %v1657_v32 = vmul.f32 %v1561_v5, %v889_v19 }
 0x144   : > { %v3492_v49 = vpop.f32.mrf.mxu1  ;;  %1754 = vmatpush.msrb.mxu3 %v1676_v43  ;;  %2169 = vtanh.f32 %v3449_v1  ;;  %v2162_v6 = vpop.eup %2161  ;;  %v1316_v2 = vmul.f32 0.7978846, %v3288_v11  ;;  %v1213_v1 = vadd.f32 %v3248_v8, %v4031_v34  ;;  %v877_v47 = vmul.f32 0.5, %v3260_v7 }
 0x145   : > { %1735 = vmatpush.msrb.mxu2 %v1669_v10  ;;  %2171 = vtanh.f32 %v3467_v30  ;;  %v2164_v51 = vpop.eup %2163  ;;  %v1658_v50 = vmul.f32 %v1562_v25, %v890_v42  ;;  %v1555_v27 = vadd.f32 1.0, %v2162_v6  ;;  %v1112_v30 = vmul.f32 %v1016_v9, %v4074_v4 }
 0x146   : > { %1755 = vmatpush.msrb.mxu3 %v1670_v18  ;;  %2173 = vtanh.f32 %v3453_v41  ;;  %v2166_v23 = vpop.eup %2165  ;;  %v884_v16 = vmul.f32 0.5, %v3279_v37  ;;  %v1549_v26 = vadd.f32 1.0, %v2164_v51  ;;  %v853_v41 = vmul.f32 0.5, %v3150_v13  ;;  %v4078_v51 = vld [vmem:[#allocation35_spill] sm:$0xff] }
 0x147   : > { %1736 = vmatpush.msrb.mxu2 %v1663_v53  ;;  %v1207_v11 = vadd.f32 %v1111_v35, %v4070_v46  ;;  %v1651_v8 = vmul.f32 %v1555_v27, %v883_v59  ;;  %v871_v33 = vmul.f32 0.5, %v3243_v24  ;;  %v1543_v55 = vadd.f32 1.0, %v3444_v14  ;;  %v4079_v27 = vld [vmem:[#allocation41_spill] sm:$0xff] }
 0x148   : > { %1756 = vmatpush.msrb.mxu3 %v1664_v12  ;;  %v1214_v7 = vadd.f32 %v1118_v17, %v4068_v62  ;;  %v878_v37 = vmul.f32 0.5, %v3264_v58  ;;  %v1550_v3 = vadd.f32 1.0, %v2166_v23  ;;  %v1309_v22 = vmul.f32 0.7978846, %v1213_v1 }
 0x149   : > { %1737 = vmatpush.msrb.mxu2 %v1657_v32  ;;  %v2168_v44 = vpop.eup %2167  ;;  %v1645_v40 = vmul.f32 %v1549_v26, %v877_v47  ;;  %v865_v43 = vmul.f32 0.5, %v3228_v0  ;;  %v1537_v24 = vadd.f32 1.0, %v3436_v60  ;;  %v1208_v14 = vadd.f32 %v1112_v30, %v4074_v4  ;;  %v4077_v32 = vld [vmem:[#allocation32_spill] sm:$0xff]  ;;  %v4080_v30 = vld [vmem:[#allocation46_spill] sm:$0xff] }
 0x14a   : > { %1757 = vmatpush.msrb.mxu3 %v1658_v50  ;;  %v2170_v48 = vpop.eup %2169  ;;  %v1556_v56 = vadd.f32 1.0, %v2168_v44  ;;  %v872_v10 = vmul.f32 0.5, %v3252_v57  ;;  %v1544_v19 = vadd.f32 1.0, %v3451_v31  ;;  %v1303_v58 = vmul.f32 0.7978846, %v1207_v11 }
 0x14b   : > { %v3516_v61 = vpop.f32.mrf.mxu0  ;;  %v2172_v13 = vpop.eup %2171  ;;  %1738 = vmatpush.msrb.mxu2 %v1651_v8  ;;  %v1639_v5 = vmul.f32 %v1543_v55, %v871_v33  ;;  %v859_v39 = vmul.f32 0.5, %v3193_v38  ;;  %v1531_v18 = vadd.f32 1.0, %v2170_v48  ;;  %v1310_v42 = vmul.f32 0.7978846, %v1214_v7  ;;  %v4082_v8 = vld [vmem:[#allocation26_spill] sm:$0xff] }
 0x14c   : > { %v3519_v15 = vpop.f32.mrf.mxu1  ;;  %v2174_v52 = vpop.eup %2173  ;;  %v1652_v36 = vmul.f32 %v1556_v56, %v884_v16  ;;  %v1646_v29 = vmul.f32 %v1550_v3, %v878_v37  ;;  %v866_v0 = vmul.f32 0.5, %v3233_v63  ;;  %v1538_v60 = vadd.f32 1.0, %v2172_v13  ;;  %v4081_v16 = vld [vmem:[#allocation34_spill] sm:$0xff]  ;;  %v4084_v56 = vld [vmem:[#allocation39_spill] sm:$0xff]  ;;  %v4085_v3 = vld [vmem:[#allocation37_spill] sm:$0xff] }
 0x14d   : > { %1739 = vmatpush.msrb.mxu2 %v1645_v40  ;;  %2175 = vtanh.f32 %v1309_v22  ;;  %v1633_v9 = vmul.f32 %v1537_v24, %v865_v43  ;;  %v1525_v53 = vadd.f32 1.0, %v3388_v20  ;;  %v1304_v57 = vmul.f32 0.7978846, %v1208_v14  ;;  %v4076_v20 = vld [vmem:[#allocation49_spill] sm:$0xff]  ;;  %v4083_v55 = vld [vmem:[#allocation38_spill] sm:$0xff] }
 0x14e   : > { %1758 = vmatpush.msrb.mxu3 %v1652_v36  ;;  %2177 = vtanh.f32 %v1316_v2  ;;  %v1640_v31 = vmul.f32 %v1544_v19, %v872_v10  ;;  %v860_v25 = vmul.f32 0.5, %v3197_v45  ;;  %v1532_v35 = vadd.f32 1.0, %v2174_v52  ;;  %v4086_v52 = vld [vmem:[#allocation28_spill] sm:$0xff] }
 0x14f   : > { %1740 = vmatpush.msrb.mxu2 %v1639_v5  ;;  %2179 = vtanh.f32 %v1303_v58  ;;  %v1627_v38 = vmul.f32 %v1531_v18, %v859_v39  ;;  %v847_v12 = vmul.f32 0.5, %v3103_v54  ;;  %v1519_v63 = vadd.f32 1.0, %v3351_v21 }
 0x150   : > { %1759 = vmatpush.msrb.mxu3 %v1646_v29  ;;  %2181 = vtanh.f32 %v1310_v42  ;;  %v1634_v59 = vmul.f32 %v1538_v60, %v866_v0  ;;  %v854_v6 = vmul.f32 0.5, %v4076_v20  ;;  %v1526_v2 = vadd.f32 1.0, %v4077_v32 }
 0x151   : > { %1741 = vmatpush.msrb.mxu2 %v1633_v9  ;;  %v1621_v45 = vmul.f32 %v1525_v53, %v853_v41  ;;  %v841_v50 = vmul.f32 0.5, %v4078_v51  ;;  %v1513_v47 = vadd.f32 1.0, %v4079_v27  ;;  %2183 = vtanh.f32 %v1304_v57  ;;  %v4101_v27 = vld [vmem:[#allocation16_spill] sm:$0xff] }
 0x152   : > { %1760 = vmatpush.msrb.mxu3 %v1640_v31  ;;  %v1628_v21 = vmul.f32 %v1532_v35, %v860_v25  ;;  %v848_v23 = vmul.f32 0.5, %v4080_v30  ;;  %v1520_v26 = vadd.f32 1.0, %v4081_v16  ;;  %v1615_v44 = vmul.f32 %v1519_v63, %v847_v12  ;;  %v4087_v25 = vld [vmem:[#allocation18_spill] sm:$0xff]  ;;  %v4088_v35 = vld [vmem:[#allocation44_spill] sm:$0xff]  ;;  %v4090_v12 = vld [vmem:[#allocation17_spill] sm:$0xff] }
 0x153   : > { %v3532_v17 = vpop.f32.mrf.mxu0  ;;  %1742 = vmatpush.msrb.mxu2 %v1627_v38  ;;  %v2176_v54 = vpop.eup %2175  ;;  %v835_v33 = vmul.f32 0.5, %v4082_v8  ;;  %v1507_v7 = vadd.f32 1.0, %v4083_v55  ;;  %v1622_v48 = vmul.f32 %v1526_v2, %v854_v6  ;;  %v842_v37 = vmul.f32 0.5, %v4084_v56  ;;  %v4091_v63 = vld [vmem:[#allocation47_spill] sm:$0xff]  ;;  %v4105_v16 = vld [vmem:[#allocation45_spill] sm:$0xff]  ;;  %v4112_v56 = vld [vmem:[#allocation12_spill] sm:$0xff] }
 0x154   : > { %v3536_v1 = vpop.f32.mrf.mxu1  ;;  %1761 = vmatpush.msrb.mxu3 %v1634_v59  ;;  %v2178_v11 = vpop.eup %2177  ;;  %v1514_v22 = vadd.f32 1.0, %v4085_v3  ;;  %v1609_v40 = vmul.f32 %v1513_v47, %v841_v50  ;;  %v829_v43 = vmul.f32 0.5, %v4031_v34  ;;  %v1501_v24 = vadd.f32 1.0, %v2176_v54  ;;  %v4093_v59 = vld [vmem:[#allocation48_spill] sm:$0xff]  ;;  %v4095_v6 = vld [vmem:[#allocation15_spill] sm:$0xff]  ;;  %v4102_v47 = vld [vmem:[#allocation29_spill] sm:$0xff] }
 0x155   : > { %1743 = vmatpush.msrb.mxu2 %v1621_v45  ;;  %v2180_v41 = vpop.eup %2179  ;;  %v1616_v14 = vmul.f32 %v1520_v26, %v848_v23  ;;  %v836_v36 = vmul.f32 0.5, %v4086_v52  ;;  %v1508_v10 = vadd.f32 1.0, %v2178_v11  ;;  %v1603_v58 = vmul.f32 %v1507_v7, %v835_v33  ;;  %v4098_v2 = vld [vmem:[#allocation51_spill] sm:$0xff]  ;;  %v4100_v50 = vld [vmem:[#allocation36_spill] sm:$0xff]  ;;  %v4107_v11 = vld [vmem:[#allocation14_spill] sm:$0xff] }
 0x156   : > { %1762 = vmatpush.msrb.mxu3 %v1628_v21  ;;  %v2182_v13 = vpop.eup %2181  ;;  %v823_v5 = vmul.f32 0.5, %v4070_v46  ;;  %v1495_v39 = vadd.f32 1.0, %v2180_v41  ;;  %v1610_v18 = vmul.f32 %v1514_v22, %v842_v37  ;;  %v830_v29 = vmul.f32 0.5, %v4068_v62  ;;  %v4103_v21 = vld [vmem:[#allocation52_spill] sm:$0xff]  ;;  %v4109_v33 = vld [vmem:[#allocation25_spill] sm:$0xff]  ;;  %v4113_v37 = vld [vmem:[#allocation42_spill] sm:$0xff] }
 0x157   : > { %1744 = vmatpush.msrb.mxu2 %v1615_v44  ;;  %v2184_v19 = vpop.eup %2183  ;;  %v1502_v0 = vadd.f32 1.0, %v2182_v13  ;;  %v1597_v34 = vmul.f32 %v1501_v24, %v829_v43  ;;  %v1604_v9 = vmul.f32 %v1508_v10, %v836_v36  ;;  %v824_v53 = vmul.f32 0.5, %v4074_v4  ;;  %v4096_v4 = vld [vmem:[#allocation50_spill] sm:$0xff]  ;;  %v4108_v44 = vld [vmem:[#allocation21_spill] sm:$0xff]  ;;  %v4114_v22 = vld [vmem:[#allocation43_spill] sm:$0xff] }
 0x158   : > { %1763 = vmatpush.msrb.mxu3 %v1622_v48  ;;  %v1496_v57 = vadd.f32 1.0, %v2184_v19  ;;  %v1591_v31 = vmul.f32 %v1495_v39, %v823_v5  ;;  %v3553_v46 = vadd.f32 %v4088_v35, %v4087_v25  ;;  %v3557_v62 = vadd.f32 %v4091_v63, %v4090_v12  ;;  %v4118_v52 = vld [vmem:[#allocation30_spill] sm:$0xff]  ;;  %v4119_v10 = vld [vmem:[#allocation31_spill] sm:$0xff] }
 0x159   : > { %1745 = vmatpush.msrb.mxu2 %v1609_v40  ;;  %v1598_v38 = vmul.f32 %v1502_v0, %v830_v29  ;;  %v3561_v20 = vadd.f32 %v4093_v59, %v4090_v12  ;;  %v3565_v32 = vadd.f32 %v4096_v4, %v4095_v6  ;;  %v3569_v45 = vadd.f32 %v4098_v2, %v4095_v6  ;;  %v4121_v39 = vld [vmem:[#allocation11_spill] sm:$0xff]  ;;  %v4125_v12 = vld [vmem:[#allocation9_spill] sm:$0xff]  ;;  %v4126_v63 = vld [vmem:[#allocation22_spill] sm:$0xff] }
 0x15a   : > { %1764 = vmatpush.msrb.mxu3 %v1616_v14  ;;  %4089 = vst [vmem:[#allocation19_spill] sm:$0xff] %v3553_v46  ;;  %v1592_v51 = vmul.f32 %v1496_v57, %v824_v53  ;;  %v3574_v54 = vadd.f32 %v4102_v47, %v4101_v27  ;;  %v3578_v30 = vadd.f32 %v4103_v21, %v4101_v27  ;;  %v3581_v23 = vmul.f32 0.044715, %v3553_v46  ;;  %v4117_v14 = vld [vmem:[#allocation13_spill] sm:$0xff]  ;;  %v4123_v0 = vld [vmem:[#allocation3_spill] sm:$0xff]  ;;  %v4127_v6 = vld [vmem:[#allocation6_spill] sm:$0xff] }
 0x15b   : > { %v744_v42 = vpop.f32.mrf.mxu0  ;;  %1746 = vmatpush.msrb.mxu2 %v1603_v58  ;;  %4092 = vst [vmem:[#allocation23_spill] sm:$0xff] %v3557_v62  ;;  %v3585_v26 = vadd.f32 %v4105_v16, %v4087_v25  ;;  %v3589_v8 = vadd.f32 %v4108_v44, %v4107_v11  ;;  %v3593_v55 = vadd.f32 %v4109_v33, %v4107_v11  ;;  %v3596_v41 = vmul.f32 0.044715, %v3557_v62  ;;  %v4124_v57 = vld [vmem:[#allocation33_spill] sm:$0xff]  ;;  %v4129_v16 = vld [vmem:[#allocation10_spill] sm:$0xff] }
 0x15c   : > { %v809_v60 = vpop.f32.mrf.mxu1  ;;  %1765 = vmatpush.msrb.mxu3 %v1610_v18  ;;  %4094 = vst [vmem:[#allocation20_spill] sm:$0xff] %v3561_v20  ;;  %v3599_v48 = vmul.f32 0.044715, %v3561_v20  ;;  %v3603_v3 = vadd.f32 %v4113_v37, %v4112_v56  ;;  %v3607_v13 = vadd.f32 %v4114_v22, %v4112_v56  ;;  %v3611_v43 = vmul.f32 0.044715, %v3565_v32  ;;  %v4122_v18 = vld [vmem:[#allocation40_spill] sm:$0xff] }
 0x15d   : > { %1747 = vmatpush.msrb.mxu2 %v1597_v34  ;;  %4097 = vst [vmem:[#allocation24_spill] sm:$0xff] %v3565_v32  ;;  %v3614_v24 = vmul.f32 0.044715, %v3569_v45  ;;  %v3618_v36 = vadd.f32 %v4118_v52, %v4117_v14  ;;  %v3622_v19 = vadd.f32 %v4119_v10, %v4117_v14  ;;  %v3625_v58 = vmul.f32 0.044715, %v3574_v54  ;;  %v4131_v56 = vld [vmem:[#allocation5_spill] sm:$0xff] }
 0x15e   : > { %1766 = vmatpush.msrb.mxu3 %v1604_v9  ;;  %4099 = vst [vmem:[#allocation49_spill] sm:$0xff] %v3569_v45  ;;  %v3628_v5 = vmul.f32 0.044715, %v3578_v30  ;;  %v3632_v29 = vadd.f32 %v4122_v18, %v4121_v39  ;;  %v3638_v9 = vmul.f32 0.044715, %v3589_v8  ;;  %v3658_v59 = vadd.f32 %v4126_v63, %v4125_v12  ;;  %v4132_v52 = vld [vmem:[#allocation7_spill] sm:$0xff] }
 0x15f   : > { %1748 = vmatpush.msrb.mxu2 %v1591_v31  ;;  %4104 = vst [vmem:[#allocation32_spill] sm:$0xff] %v3581_v23  ;;  %v3641_v53 = vmul.f32 0.044715, %v3593_v55  ;;  %v3645_v31 = vadd.f32 %v4124_v57, %v4121_v39  ;;  %v3651_v35 = vmul.f32 0.044715, %v3603_v3  ;;  %v3661_v4 = vadd.f32 %v744_v42, %v4127_v6 }
 0x160   : > { %1767 = vmatpush.msrb.mxu3 %v1598_v38  ;;  %1749 = vmatmul.f32.vlgmr.msrb.gmra.mxu2 %v4100_v50  ;;  %4106 = vst [vmem:[#allocation35_spill] sm:$0xff] %v3585_v26  ;;  %v3654_v38 = vmul.f32 0.044715, %v3607_v13  ;;  %v3664_v2 = vmul.f32 0.044715, %v3618_v36  ;;  %v3674_v47 = vadd.f32 %v809_v60, %v4127_v6  ;;  %v3681_v42 = vadd.f32 %v3489_v28, %v4129_v16 }
 0x161   : > { %4110 = vst [vmem:[#allocation41_spill] sm:$0xff] %v3596_v41  ;;  %v3677_v21 = vmul.f32 0.044715, %v3632_v29  ;;  %v3685_v11 = vadd.f32 %v3492_v49, %v4129_v16  ;;  %v3689_v33 = vmul.f32 0.044715, %v3645_v31  ;;  %v3697_v37 = vadd.f32 %v3532_v17, %v4131_v56 }
 0x162   : > { %1768 = vmatpush.msrb.mxu3 %v1592_v51  ;;  %4111 = vst [vmem:[#allocation46_spill] sm:$0xff] %v3599_v48  ;;  %v3667_v51 = vmul.f32 0.044715, %v3622_v19  ;;  %v993_v14 = vmul.f32 0.044715, %v3661_v4  ;;  %v3714_v17 = vadd.f32 %v3536_v1, %v4131_v56 }
 0x163   : > { %v747_v7 = vpop.f32.mrf.mxu0  ;;  %1769 = vmatmul.f32.vlgmr.msrb.gmra.mxu3 %v4100_v50  ;;  %4115 = vst [vmem:[#allocation34_spill] sm:$0xff] %v3611_v43  ;;  %v4128_v50 = vld [vmem:[#allocation27_spill] sm:$0xff]  ;;  %v994_v18 = vmul.f32 0.044715, %v3674_v47  ;;  %v3719_v57 = vmul.f32 0.044715, %v3681_v42 }
 0x164   : > { %v812_v40 = vpop.f32.mrf.mxu1  ;;  %4116 = vst [vmem:[#allocation26_spill] sm:$0xff] %v3614_v24  ;;  %v3635_v34 = vadd.f32 %v747_v7, %v4123_v0  ;;  %v3671_v27 = vadd.f32 %v4128_v50, %v4125_v12  ;;  %v4130_v7 = vld [vmem:[#allocation8_spill] sm:$0xff]  ;;  %v987_v50 = vmul.f32 0.044715, %v3697_v37 }
 0x165   : > { %4120 = vst [vmem:[#allocation38_spill] sm:$0xff] %v3628_v5  ;;  %v3648_v25 = vadd.f32 %v812_v40, %v4123_v0  ;;  %v3693_v60 = vadd.f32 %v3516_v61, %v4130_v7  ;;  %v3701_v40 = vmul.f32 0.044715, %v3658_v59  ;;  %v3705_v49 = vadd.f32 %v3519_v15, %v4130_v7 }
 0x166   : > { %v999_v44 = vmul.f32 0.044715, %v3635_v34  ;;  %v3710_v39 = vmul.f32 0.044715, %v3671_v27  ;;  %v3722_v15 = vmul.f32 0.044715, %v3685_v11  ;;  %v1083_v26 = vmul.f32 %v987_v50, %v3697_v37 }
 0x167   : > { %v1000_v28 = vmul.f32 0.044715, %v3648_v25  ;;  %v981_v6 = vmul.f32 0.044715, %v3693_v60  ;;  %v982_v7 = vmul.f32 0.044715, %v3705_v49 }
 0x168   : > { %v1095_v63 = vmul.f32 %v999_v44, %v3635_v34  ;;  %v1090_v44 = vmul.f32 %v994_v18, %v3674_v47 }
 0x169   : > { %v1096_v1 = vmul.f32 %v1000_v28, %v3648_v25 }
 0x16b   : > { %v750_v22 = vpop.f32.mrf.mxu0  ;;  %v1192_v46 = vmul.f32 %v1096_v1, %v3648_v25 }
 0x16c   : > { %v751_v10 = vadd.f32 %v750_v22, %v4132_v52  ;;  %v815_v61 = vpop.f32.mrf.mxu1  ;;  %v1191_v22 = vmul.f32 %v1095_v63, %v3635_v34 }
 0x16d   : > { %v816_v0 = vadd.f32 %v815_v61, %v4132_v52  ;;  %v1089_v52 = vmul.f32 %v993_v14, %v3661_v4  ;;  %v988_v61 = vmul.f32 0.044715, %v3714_v17  ;;  %v1288_v63 = vadd.f32 %v1192_v46, %v3648_v25 }
 0x16e   : > { %v1005_v12 = vmul.f32 0.044715, %v751_v10  ;;  %v3734_v48 = vmul.f32 0.5, %v751_v10  ;;  %v1287_v41 = vadd.f32 %v1191_v22, %v3635_v34  ;;  %v1186_v14 = vmul.f32 %v1090_v44, %v3674_v47 }
 0x16f   : > { %v1006_v16 = vmul.f32 0.044715, %v816_v0  ;;  %v1185_v28 = vmul.f32 %v1089_v52, %v3661_v4  ;;  %v1384_v32 = vmul.f32 0.7978846, %v1288_v63  ;;  %v903_v46 = vmul.f32 0.5, %v3635_v34 }
 0x170   : > { %v1101_v56 = vmul.f32 %v1005_v12, %v751_v10  ;;  %v1383_v18 = vmul.f32 0.7978846, %v1287_v41  ;;  %v1282_v52 = vadd.f32 %v1186_v14, %v3674_v47  ;;  %v3746_v50 = vmul.f32 0.5, %v816_v0 }
 0x171   : > { %v1102_v23 = vmul.f32 %v1006_v16, %v816_v0  ;;  %v4133_v16 = vld [vmem:[#allocation4_spill] sm:$0xff]  ;;  %v1281_v43 = vadd.f32 %v1185_v28, %v3661_v4  ;;  %v1179_v63 = vmul.f32 %v1083_v26, %v3697_v37  ;;  %v1084_v34 = vmul.f32 %v988_v61, %v3714_v17 }
 0x172   : > { %v1197_v20 = vmul.f32 %v1101_v56, %v751_v10  ;;  %2185 = vtanh.f32 %v1383_v18  ;;  %v1078_v26 = vmul.f32 %v982_v7, %v3705_v49 }
 0x173   : > { %v753_v62 = vpop.f32.mrf.mxu0  ;;  %v1198_v12 = vmul.f32 %v1102_v23, %v816_v0  ;;  %2187 = vtanh.f32 %v1384_v32  ;;  %v1377_v41 = vmul.f32 0.7978846, %v1281_v43  ;;  %v1275_v32 = vadd.f32 %v1179_v63, %v3697_v37 }
 0x174   : > { %v754_v24 = vadd.f32 %v753_v62, %v4133_v16  ;;  %v818_v1 = vpop.f32.mrf.mxu1  ;;  %v1293_v45 = vadd.f32 %v1197_v20, %v751_v10  ;;  %v1378_v10 = vmul.f32 0.7978846, %v1282_v52 }
 0x175   : > { %v819_v56 = vadd.f32 %v818_v1, %v4133_v16  ;;  %v1294_v22 = vadd.f32 %v1198_v12, %v816_v0  ;;  %v904_v12 = vmul.f32 0.5, %v3648_v25  ;;  %v898_v1 = vmul.f32 0.5, %v3674_v47 }
 0x176   : > { %v1011_v23 = vmul.f32 0.044715, %v754_v24  ;;  %v1389_v5 = vmul.f32 0.7978846, %v1293_v45  ;;  %v897_v45 = vmul.f32 0.5, %v3661_v4  ;;  %v1180_v25 = vmul.f32 %v1084_v34, %v3714_v17 }
 0x177   : > { %v1012_v44 = vmul.f32 0.044715, %v819_v56  ;;  %v1390_v62 = vmul.f32 0.7978846, %v1294_v22  ;;  %v3758_v4 = vmul.f32 0.5, %v3697_v37  ;;  %v3764_v37 = vmul.f32 0.5, %v3714_v17 }
 0x178   : > { %v1107_v20 = vmul.f32 %v1011_v23, %v754_v24  ;;  %2189 = vtanh.f32 %v1389_v5  ;;  %v1077_v5 = vmul.f32 %v981_v6, %v3693_v60  ;;  %v2186_v43 = vpop.eup %2185  ;;  %v1371_v61 = vmul.f32 0.7978846, %v1275_v32 }
 0x179   : > { %v1108_v28 = vmul.f32 %v1012_v44, %v819_v56  ;;  %2191 = vtanh.f32 %v1390_v62  ;;  %v2188_v18 = vpop.eup %2187  ;;  %v915_v44 = vmul.f32 0.5, %v754_v24  ;;  %v1276_v6 = vadd.f32 %v1180_v25, %v3714_v17 }
 0x17a   : > { %v1203_v14 = vmul.f32 %v1107_v20, %v754_v24  ;;  %2193 = vtanh.f32 %v1377_v41  ;;  %v1173_v52 = vmul.f32 %v1077_v5, %v3693_v60  ;;  %v1174_v20 = vmul.f32 %v1078_v26, %v3705_v49 }
 0x17b   : > { %v1204_v0 = vmul.f32 %v1108_v28, %v819_v56  ;;  %2195 = vtanh.f32 %v1378_v10  ;;  %v916_v41 = vmul.f32 0.5, %v819_v56  ;;  %v1575_v28 = vadd.f32 1.0, %v2186_v43 }
 0x17c   : > { %v1299_v16 = vadd.f32 %v1203_v14, %v754_v24  ;;  %2197 = vtanh.f32 %v1371_v61  ;;  %v1576_v63 = vadd.f32 1.0, %v2188_v18  ;;  %v1372_v14 = vmul.f32 0.7978846, %v1276_v6 }
 0x17d   : > { %v1300_v22 = vadd.f32 %v1204_v0, %v819_v56  ;;  %v3767_v0 = vmul.f32 0.5, %v3693_v60  ;;  %v1269_v32 = vadd.f32 %v1173_v52, %v3693_v60  ;;  %v1270_v43 = vadd.f32 %v1174_v20, %v3705_v49 }
 0x17e   : > { %v2190_v23 = vpop.eup %2189  ;;  %v1395_v62 = vmul.f32 0.7978846, %v1299_v16  ;;  %v1671_v16 = vmul.f32 %v1575_v28, %v903_v46  ;;  %v3772_v26 = vmul.f32 0.5, %v3705_v49  ;;  %v1071_v17 = vmul.f32 %v3719_v57, %v3681_v42 }
 0x17f   : > { %v2192_v47 = vpop.eup %2191  ;;  %v1396_v10 = vmul.f32 0.7978846, %v1300_v22  ;;  %v1581_v24 = vadd.f32 1.0, %v2190_v23  ;;  %v1365_v25 = vmul.f32 0.7978846, %v1269_v32  ;;  %v1672_v18 = vmul.f32 %v1576_v63, %v904_v12 }
 0x180   : > { %v2194_v7 = vpop.eup %2193  ;;  %2199 = vtanh.f32 %v1395_v62  ;;  %v1582_v5 = vadd.f32 1.0, %v2192_v47  ;;  %v1366_v61 = vmul.f32 0.7978846, %v1270_v43  ;;  %v1072_v23 = vmul.f32 %v3722_v15, %v3685_v11 }
 0x181   : > { %v2196_v34 = vpop.eup %2195  ;;  %2201 = vtanh.f32 %v1396_v10  ;;  %v1569_v56 = vadd.f32 1.0, %v2194_v7  ;;  %v1677_v52 = vmul.f32 %v1581_v24, %v3734_v48  ;;  %v1167_v62 = vmul.f32 %v1071_v17, %v3681_v42 }
 0x182   : > { %2203 = vtanh.f32 %v1372_v14  ;;  %v1570_v22 = vadd.f32 1.0, %v2196_v34  ;;  %v2198_v60 = vpop.eup %2197  ;;  %v1065_v46 = vmul.f32 %v3701_v40, %v3658_v59  ;;  %v1678_v6 = vmul.f32 %v1582_v5, %v3746_v50 }
 0x183   : > { %2205 = vtanh.f32 %v1365_v25  ;;  %v1665_v20 = vmul.f32 %v1569_v56, %v897_v45  ;;  %v1168_v57 = vmul.f32 %v1072_v23, %v3685_v11  ;;  %v1263_v15 = vadd.f32 %v1167_v62, %v3681_v42 }
 0x184   : > { %2207 = vtanh.f32 %v1366_v61  ;;  %v1161_v10 = vmul.f32 %v1065_v46, %v3658_v59  ;;  %v1066_v48 = vmul.f32 %v3710_v39, %v3671_v27  ;;  %v1666_v63 = vmul.f32 %v1570_v22, %v898_v1 }
 0x185   : > { %v3789_v40 = vmul.f32 0.5, %v3681_v42  ;;  %v1264_v50 = vadd.f32 %v1168_v57, %v3685_v11  ;;  %v1563_v14 = vadd.f32 1.0, %v2198_v60  ;;  %v1359_v34 = vmul.f32 0.7978846, %v1263_v15 }
 0x186   : > { %v2200_v49 = vpop.eup %2199  ;;  %v1257_v24 = vadd.f32 %v1161_v10, %v3658_v59  ;;  %v1162_v56 = vmul.f32 %v1066_v48, %v3671_v27  ;;  %v1059_v39 = vmul.f32 %v3677_v21, %v3632_v29  ;;  %v880_v42 = vmul.f32 0.5, %v3685_v11 }
 0x187   : > { %v2202_v12 = vpop.eup %2201  ;;  %v1587_v47 = vadd.f32 1.0, %v2200_v49  ;;  %v1360_v5 = vmul.f32 0.7978846, %v1264_v50  ;;  %2209 = vtanh.f32 %v1359_v34  ;;  %v3801_v21 = vmul.f32 0.5, %v3671_v27 }
 0x188   : > { %v2204_v28 = vpop.eup %2203  ;;  %v1588_v7 = vadd.f32 1.0, %v2202_v12  ;;  %v1353_v25 = vmul.f32 0.7978846, %v1257_v24  ;;  %v1155_v22 = vmul.f32 %v1059_v39, %v3632_v29  ;;  %v1060_v23 = vmul.f32 %v3689_v33, %v3645_v31 }
 0x189   : > { %v1683_v45 = vmul.f32 %v1587_v47, %v915_v44  ;;  %v2206_v43 = vpop.eup %2205  ;;  %v1564_v1 = vadd.f32 1.0, %v2204_v28  ;;  %2211 = vtanh.f32 %v1360_v5  ;;  %v873_v44 = vmul.f32 0.5, %v3658_v59 }
 0x18a   : > { %v1684_v32 = vmul.f32 %v1588_v7, %v916_v41  ;;  %v2208_v17 = vpop.eup %2207  ;;  %v1258_v41 = vadd.f32 %v1162_v56, %v3671_v27  ;;  %v1557_v61 = vadd.f32 1.0, %v2206_v43  ;;  %2213 = vtanh.f32 %v1353_v25 }
 0x18b   : > { %1773 = vmatpush.msra.mxu2 %v1683_v45  ;;  %v1659_v11 = vmul.f32 %v1563_v14, %v3758_v4  ;;  %v1251_v62 = vadd.f32 %v1155_v22, %v3632_v29  ;;  %v1053_v59 = vmul.f32 %v3664_v2, %v3618_v36  ;;  %v3811_v46 = vmul.f32 0.5, %v3632_v29 }
 0x18c   : > { %1793 = vmatpush.msra.mxu3 %v1684_v32  ;;  %v1354_v60 = vmul.f32 0.7978846, %v1258_v41  ;;  %v1156_v27 = vmul.f32 %v1060_v23, %v3645_v31  ;;  %v1054_v33 = vmul.f32 %v3667_v51, %v3622_v19  ;;  %v1558_v49 = vadd.f32 1.0, %v2208_v17 }
 0x18d   : > { %1774 = vmatpush.msra.mxu2 %v1677_v52  ;;  %v1660_v52 = vmul.f32 %v1564_v1, %v3764_v37  ;;  %v1347_v4 = vmul.f32 0.7978846, %v1251_v62  ;;  %v2210_v57 = vpop.eup %2209  ;;  %v1653_v2 = vmul.f32 %v1557_v61, %v3767_v0  ;;  %v1048_v47 = vmul.f32 %v3654_v38, %v3607_v13 }
 0x18e   : > { %1794 = vmatpush.msra.mxu3 %v1678_v6  ;;  %2215 = vtanh.f32 %v1354_v60  ;;  %v1149_v6 = vmul.f32 %v1053_v59, %v3618_v36  ;;  %v1252_v37 = vadd.f32 %v1156_v27, %v3645_v31  ;;  %v1150_v29 = vmul.f32 %v1054_v33, %v3622_v19  ;;  %v4135_v59 = vld [vmem:[#allocation24_spill] sm:$0xff] }
 0x18f   : > { %1775 = vmatpush.msra.mxu2 %v1671_v16  ;;  %v1047_v16 = vmul.f32 %v3651_v35, %v3603_v3  ;;  %v2212_v12 = vpop.eup %2211  ;;  %v1551_v51 = vadd.f32 1.0, %v2210_v57  ;;  %2217 = vtanh.f32 %v1347_v4  ;;  %v1654_v35 = vmul.f32 %v1558_v49, %v3772_v26 }
 0x190   : > { %1795 = vmatpush.msra.mxu3 %v1672_v18  ;;  %v1245_v18 = vadd.f32 %v1149_v6, %v3618_v36  ;;  %v2214_v15 = vpop.eup %2213  ;;  %v1348_v0 = vmul.f32 0.7978846, %v1252_v37  ;;  %v1246_v10 = vadd.f32 %v1150_v29, %v3622_v19  ;;  %v1041_v56 = vmul.f32 %v3638_v9, %v3589_v8 }
 0x191   : > { %1776 = vmatpush.msra.mxu2 %v1665_v20  ;;  %v1552_v20 = vadd.f32 1.0, %v2212_v12  ;;  %v1143_v48 = vmul.f32 %v1047_v16, %v3603_v3  ;;  %v1545_v28 = vadd.f32 1.0, %v2214_v15  ;;  %v1647_v50 = vmul.f32 %v1551_v51, %v3789_v40 }
 0x192   : > { %1796 = vmatpush.msra.mxu3 %v1666_v63  ;;  %v1341_v7 = vmul.f32 0.7978846, %v1245_v18  ;;  %v1144_v63 = vmul.f32 %v1048_v47, %v3607_v13  ;;  %2219 = vtanh.f32 %v1348_v0  ;;  %v1342_v38 = vmul.f32 0.7978846, %v1246_v10  ;;  %v4137_v10 = vld [vmem:[#allocation49_spill] sm:$0xff] }
 0x193   : > { %1777 = vmatpush.msra.mxu2 %v1659_v11  ;;  %v1239_v45 = vadd.f32 %v1143_v48, %v3603_v3  ;;  %v1648_v34 = vmul.f32 %v1552_v20, %v880_v42  ;;  %v1641_v24 = vmul.f32 %v1545_v28, %v873_v44  ;;  %v868_v40 = vmul.f32 0.5, %v3645_v31  ;;  %v4138_v48 = vld [vmem:[#allocation26_spill] sm:$0xff]  ;;  %v4139_v28 = vld [vmem:[#allocation35_spill] sm:$0xff] }
 0x194   : > { %1797 = vmatpush.msra.mxu3 %v1660_v52  ;;  %v2216_v14 = vpop.eup %2215  ;;  %2221 = vtanh.f32 %v1341_v7  ;;  %v1240_v32 = vadd.f32 %v1144_v63, %v3607_v13  ;;  %v861_v43 = vmul.f32 0.5, %v3618_v36  ;;  %v1042_v42 = vmul.f32 %v3641_v53, %v3593_v55  ;;  %v4136_v52 = vld [vmem:[#allocation34_spill] sm:$0xff] }
 0x195   : > { %1778 = vmatpush.msra.mxu2 %v1653_v2  ;;  %v1546_v26 = vadd.f32 1.0, %v2216_v14  ;;  %2223 = vtanh.f32 %v1342_v38  ;;  %v1335_v5 = vmul.f32 0.7978846, %v1239_v45  ;;  %v2218_v39 = vpop.eup %2217  ;;  %v1137_v44 = vmul.f32 %v1041_v56, %v3589_v8  ;;  %v4140_v14 = vld [vmem:[#allocation23_spill] sm:$0xff] }
 0x196   : > { %1798 = vmatpush.msra.mxu3 %v1654_v35  ;;  %v1336_v1 = vmul.f32 0.7978846, %v1240_v32  ;;  %v1539_v17 = vadd.f32 1.0, %v2218_v39  ;;  %v862_v41 = vmul.f32 0.5, %v3622_v19  ;;  %v1138_v9 = vmul.f32 %v1042_v42, %v3593_v55  ;;  %v4142_v32 = vld [vmem:[#allocation20_spill] sm:$0xff] }
 0x197   : > { %1779 = vmatpush.msra.mxu2 %v1647_v50  ;;  %v1642_v25 = vmul.f32 %v1546_v26, %v3801_v21  ;;  %2225 = vtanh.f32 %v1335_v5  ;;  %v1035_v31 = vmul.f32 %v3625_v58, %v3574_v54  ;;  %v855_v53 = vmul.f32 0.5, %v3603_v3  ;;  %v4134_v21 = vld [vmem:[#allocation38_spill] sm:$0xff] }
 0x198   : > { %1799 = vmatpush.msra.mxu3 %v1648_v34  ;;  %2227 = vtanh.f32 %v1336_v1  ;;  %v2220_v36 = vpop.eup %2219  ;;  %v1635_v22 = vmul.f32 %v1539_v17, %v3811_v46  ;;  %v1233_v61 = vadd.f32 %v1137_v44, %v3589_v8  ;;  %v1036_v23 = vmul.f32 %v4134_v21, %v3578_v30  ;;  %v4141_v34 = vld [vmem:[#allocation41_spill] sm:$0xff]  ;;  %v4143_v26 = vld [vmem:[#allocation46_spill] sm:$0xff]  ;;  %v4145_v1 = vld [vmem:[#allocation32_spill] sm:$0xff] }
 0x199   : > { %1780 = vmatpush.msra.mxu2 %v1641_v24  ;;  %v1540_v60 = vadd.f32 1.0, %v2220_v36  ;;  %v1234_v19 = vadd.f32 %v1138_v9, %v3593_v55  ;;  %v1131_v62 = vmul.f32 %v1035_v31, %v3574_v54  ;;  %v1029_v58 = vmul.f32 %v4136_v52, %v4135_v59 }
 0x19a   : > { %1800 = vmatpush.msra.mxu3 %v1642_v25  ;;  %v2222_v11 = vpop.eup %2221  ;;  %v856_v46 = vmul.f32 0.5, %v3607_v13  ;;  %v1329_v3 = vmul.f32 0.7978846, %v1233_v61  ;;  %v1132_v49 = vmul.f32 %v1036_v23, %v3578_v30  ;;  %v1030_v35 = vmul.f32 %v4138_v48, %v4137_v10 }
 0x19b   : > { %v2224_v27 = vpop.eup %2223  ;;  %1781 = vmatpush.msra.mxu2 %v1635_v22  ;;  %v1533_v33 = vadd.f32 1.0, %v2222_v11  ;;  %v1636_v4 = vmul.f32 %v1540_v60, %v868_v40  ;;  %v1330_v57 = vmul.f32 0.7978846, %v1234_v19  ;;  %v1227_v2 = vadd.f32 %v1131_v62, %v3574_v54 }
 0x19c   : > { %v1534_v6 = vadd.f32 1.0, %v2224_v27  ;;  %2229 = vtanh.f32 %v1329_v3  ;;  %v1228_v16 = vadd.f32 %v1132_v49, %v3578_v30  ;;  %v1125_v12 = vmul.f32 %v1029_v58, %v4135_v59 }
 0x19d   : > { %v2226_v37 = vpop.eup %2225  ;;  %v1629_v29 = vmul.f32 %v1533_v33, %v861_v43  ;;  %1801 = vmatpush.msra.mxu3 %v1636_v4  ;;  %2231 = vtanh.f32 %v1330_v57  ;;  %v1323_v13 = vmul.f32 0.7978846, %v1227_v2  ;;  %v922_v7 = vmul.f32 0.044715, %v4139_v28  ;;  %v4144_v43 = vld [vmem:[#allocation19_spill] sm:$0xff] }
 0x19e   : > { %v2228_v51 = vpop.eup %2227  ;;  %v1630_v18 = vmul.f32 %v1534_v6, %v862_v41  ;;  %v1527_v47 = vadd.f32 1.0, %v2226_v37  ;;  %v1324_v20 = vmul.f32 0.7978846, %v1228_v16  ;;  %v1221_v0 = vadd.f32 %v1125_v12, %v4135_v59 }
 0x19f   : > { %1782 = vmatpush.msra.mxu2 %v1629_v29  ;;  %v1528_v15 = vadd.f32 1.0, %v2228_v51  ;;  %2233 = vtanh.f32 %v1323_v13  ;;  %v1126_v45 = vmul.f32 %v1030_v35, %v4137_v10  ;;  %v1023_v24 = vmul.f32 %v4141_v34, %v4140_v14  ;;  %v2249_v34 = vld [vmem:[%s3908_s3] sm:$0x1] }
 0x1a0   : > { %1802 = vmatpush.msra.mxu3 %v1630_v18  ;;  %v1623_v63 = vmul.f32 %v1527_v47, %v855_v53  ;;  %2235 = vtanh.f32 %v1324_v20  ;;  %v1317_v38 = vmul.f32 0.7978846, %v1221_v0  ;;  %v1024_v5 = vmul.f32 %v4143_v26, %v4142_v32 }
 0x1a1   : > { %v1624_v50 = vmul.f32 %v1528_v15, %v856_v46  ;;  %v849_v39 = vmul.f32 0.5, %v3589_v8  ;;  %v1222_v40 = vadd.f32 %v1126_v45, %v4137_v10  ;;  %v1017_v42 = vmul.f32 %v4145_v1, %v4144_v43 }
 0x1a2   : > { %1783 = vmatpush.msra.mxu2 %v1623_v63  ;;  %v2230_v56 = vpop.eup %2229  ;;  %2237 = vtanh.f32 %v1317_v38  ;;  %v850_v44 = vmul.f32 0.5, %v3593_v55  ;;  %v1119_v41 = vmul.f32 %v1023_v24, %v4140_v14  ;;  %v1120_v9 = vmul.f32 %v1024_v5, %v4142_v32  ;;  %v1690_v5 = vpop.permute.xlu1 %1689 }
 0x1a3   : > { %1803 = vmatpush.msra.mxu3 %v1624_v50  ;;  %v2232_v25 = vpop.eup %2231  ;;  %v1521_v17 = vadd.f32 1.0, %v2230_v56  ;;  %v1318_v36 = vmul.f32 0.7978846, %v1222_v40  ;;  %v1113_v22 = vmul.f32 %v1017_v42, %v4144_v43  ;;  %v1018_v8 = vmul.f32 %v922_v7, %v4139_v28 }
 0x1a4   : > { %v1522_v31 = vadd.f32 1.0, %v2232_v25  ;;  %v843_v21 = vmul.f32 0.5, %v3574_v54  ;;  %v1215_v23 = vadd.f32 %v1119_v41, %v4140_v14  ;;  %v1216_v11 = vadd.f32 %v1120_v9, %v4142_v32 }
 0x1a5   : > { %v2234_v53 = vpop.eup %2233  ;;  %v1617_v61 = vmul.f32 %v1521_v17, %v849_v39  ;;  %v844_v62 = vmul.f32 0.5, %v3578_v30  ;;  %2239 = vtanh.f32 %v1318_v36  ;;  %v1209_v33 = vadd.f32 %v1113_v22, %v4144_v43 }
 0x1a6   : > { %v2236_v60 = vpop.eup %2235  ;;  %v1618_v55 = vmul.f32 %v1522_v31, %v850_v44  ;;  %v1515_v19 = vadd.f32 1.0, %v2234_v53  ;;  %v1311_v58 = vmul.f32 0.7978846, %v1215_v23  ;;  %v1312_v27 = vmul.f32 0.7978846, %v1216_v11 }
 0x1a7   : > { %1784 = vmatpush.msra.mxu2 %v1617_v61  ;;  %v1516_v52 = vadd.f32 1.0, %v2236_v60  ;;  %v837_v54 = vmul.f32 0.5, %v4135_v59  ;;  %v1114_v49 = vmul.f32 %v1018_v8, %v4139_v28  ;;  %v1305_v57 = vmul.f32 0.7978846, %v1209_v33  ;;  %v1710_v24 = vpop.f32.mrf.mxu2 }
 0x1a8   : > { %v2238_v46 = vpop.eup %2237  ;;  %1804 = vmatpush.msra.mxu3 %v1618_v55  ;;  %v1611_v3 = vmul.f32 %v1515_v19, %v843_v21  ;;  %2241 = vtanh.f32 %v1311_v58  ;;  %v838_v16 = vmul.f32 0.5, %v4137_v10  ;;  %v831_v47 = vmul.f32 0.5, %v4140_v14 }
 0x1a9   : > { %v1612_v4 = vmul.f32 %v1516_v52, %v844_v62  ;;  %v1509_v6 = vadd.f32 1.0, %v2238_v46  ;;  %2243 = vtanh.f32 %v1312_v27  ;;  %v1210_v30 = vadd.f32 %v1114_v49, %v4139_v28 }
 0x1aa   : > { %1785 = vmatpush.msra.mxu2 %v1611_v3  ;;  %2245 = vtanh.f32 %v1305_v57  ;;  %v832_v20 = vmul.f32 0.5, %v4142_v32  ;;  %v825_v35 = vmul.f32 0.5, %v4144_v43  ;;  %v826_v38 = vmul.f32 0.5, %v4139_v28  ;;  %v1730_v32 = vpop.f32.mrf.mxu3 }
 0x1ab   : > { %1805 = vmatpush.msra.mxu3 %v1612_v4  ;;  %v1605_v2 = vmul.f32 %v1509_v6, %v837_v54  ;;  %v2240_v37 = vpop.eup %2239  ;;  %v1306_v29 = vmul.f32 0.7978846, %v1210_v30  ;;  %v1692_v39 = vperm.slane %v1690_v5, 0  ;;  %v1835_v9 = vlaneseq }
 0x1ac   : > { %v1510_v12 = vadd.f32 1.0, %v2240_v37 }
 0x1ad   : > { %1786 = vmatpush.msra.mxu2 %v1605_v2  ;;  %2247 = vtanh.f32 %v1306_v29  ;;  %v1731_v40 = vadd.f32 %v1730_v32, %v1692_v39  ;;  %v1711_v22 = vadd.f32 %v1710_v24, %v1692_v39  ;;  %vm1837_vm6 = vcmp.lt.s32.totalorder %v1835_v9, 768 }
 0x1ae   : > { %v2242_v59 = vpop.eup %2241  ;;  %v1606_v51 = vmul.f32 %v1510_v12, %v838_v16 }
 0x1af   : > { %v2244_v18 = vpop.eup %2243  ;;  %v1503_v13 = vadd.f32 1.0, %v2242_v59  ;;  %v1819_v25 = vrot.slane %v1731_v40, 7 }
 0x1b0   : > { %v2246_v15 = vpop.eup %2245  ;;  %1806 = vmatpush.msra.mxu3 %v1606_v51  ;;  %v1504_v0 = vadd.f32 1.0, %v2244_v18 }
 0x1b1   : > { %v1599_v48 = vmul.f32 %v1503_v13, %v831_v47  ;;  %v1497_v7 = vadd.f32 1.0, %v2246_v15  ;;  %v1825_v61 = vsel %vm1824_vm2, %v1711_v22, %v1819_v25 }
 0x1b2   : > { %v1600_v63 = vmul.f32 %v1504_v0, %v832_v20 }
 0x1b3   : > { %v2248_v50 = vpop.eup %2247  ;;  %1787 = vmatpush.msra.mxu2 %v1599_v48  ;;  %v1593_v10 = vmul.f32 %v1497_v7, %v825_v35 }
 0x1b4   : > { %1807 = vmatpush.msra.mxu3 %v1600_v63  ;;  %v1498_v45 = vadd.f32 1.0, %v2248_v50 }
 0x1b5   : > { %1788 = vmatpush.msra.mxu2 %v1593_v10 }
 0x1b6   : > { %v1594_v14 = vmul.f32 %v1498_v45, %v826_v38  ;;  %1789 = vmatmul.f32.vlgmr.msra.gmra.mxu2 %v2249_v34 }
 0x1b8   : > { %1808 = vmatpush.msra.mxu3 %v1594_v14 }
 0x1b9   : > { %1809 = vmatmul.f32.vlgmr.msra.gmra.mxu3 %v2249_v34 }
 0x1e3   : > { %v1750_v26 = vpop.f32.mrf.mxu2 }
 0x1e4   : > { %v1751_v28 = vadd.f32 %v1750_v26, %v1692_v39 }
 0x1e6   : > { %v1770_v56 = vpop.f32.mrf.mxu3  ;;  %v1820_v31 = vrot.slane %v1751_v28, 6 }
 0x1e7   : > { %v1771_v43 = vadd.f32 %v1770_v56, %v1692_v39 }
 0x1e8   : > { %v1827_v21 = vsel %vm1826_vm3, %v1825_v61, %v1820_v31 }
 0x1e9   : > { %v1821_v17 = vrot.slane %v1771_v43, 5 }
 0x239   : > { %v1790_v1 = vpop.f32.mrf.mxu2 }
 0x23a   : > { %v1791_v42 = vadd.f32 %v1790_v1, %v1692_v39 }
 0x23c   : > { %v1822_v44 = vrot.slane %v1791_v42, 4  ;;  %v1810_v41 = vpop.f32.mrf.mxu3 }
 0x23d   : > { %v1811_v36 = vadd.f32 %v1810_v41, %v1692_v39 }
 0x23e   : > { %v1829_v8 = vsel %vm1828_vm1, %v1821_v17, %v1822_v44 }
 0x23f   : > { %v1823_v53 = vrot.slane %v1811_v36, 3 }
 0x241   : > { %v1831_v23 = vsel %vm1830_vm4, %v1829_v8, %v1823_v53 }
 0x242   : > { %v1833_v11 = vsel %vm1832_vm5, %v1827_v21, %v1831_v23 }
 0x243   : > { %1839 = vst.msk [vmem:[%s262_s7] sm:$0x3f] %vm1837_vm6, %v1833_v11 }
 0x244 PF: > { %s17_s22 = sadd.s32 1, %s2272_s22   ;;  %s4146_s20 = smov %s2268_s21 }
 0x245   : > { %p14_p5 = scmp.ge.s32.totalorder %s17_s22, 4   ;;  %s4147_s21 = smov %s4149_s4 }
 0x247   :  { %16 = sbr.rel (!%p14_p5) target bundleno = 3 (0x3), region = 70 }

</bundles_post_ra>
